<compile_context>
chip_gen: v5e
topology: v5e:2x2
jax: 0.10.0
libtpu: 0.0.40
codegen_flags: <defaults>
</compile_context>

<pallas_src>
import functools

import jax
import jax.numpy as jnp
from jax import lax
from jax.experimental import pallas as pl
from jax.experimental.pallas import tpu as pltpu

# Left sublane padding of the in-kernel padded activation buffer. Must be >= 1
# (conv halo) and a multiple of 8 so the interior store is sublane-aligned.
_LPAD = 8


# ---------------------------------------------------------------------------
# Fused ConvBlock kernel: one grid step = one batch image through the block.
# ---------------------------------------------------------------------------

def _convblock_kernel(n_convs, H, W, chans, x_ref, *refs):
    """refs layout:
        w_0, p_0, ..., w_{n-1}, p_{n-1}, sel     (inputs)
        o_ref                                     (output)
        pad0[, pad1]                              (VMEM scratch)
    w_i: [9*Cin_i, Cout_i] matmul weight; p_i: [3, Cout_i] = (bias, scale, shift).
    sel: [2*Ho*Wo, Ho*W] stacked even/odd 0/1 selection matrix for the W-pool.
    """
    ws = [refs[2 * i] for i in range(n_convs)]
    ps = [refs[2 * i + 1] for i in range(n_convs)]
    sel_ref = refs[2 * n_convs]
    o_ref = refs[2 * n_convs + 1]
    pads = refs[2 * n_convs + 2:]

    Ho, Wo = H // 2, W // 2

    h = None  # current activation, flat [H*W, C]: spatial on sublanes, C on lanes
    for i in range(n_convs):
        cin, cout = chans[i], chans[i + 1]
        pad_ref = pads[0] if i == 0 else pads[-1]

        # Zero-padded activation buffer; border zeros implement padding=1.
        # Zero on first use of each scratch (cheap VMEM stores); interior is
        # fully overwritten right after, borders stay zero for later convs.
        if i <= 1:
            pad_ref[...] = jnp.zeros(pad_ref.shape, pad_ref.dtype)
        if i == 0:
            pad_ref[1:H + 1, _LPAD:_LPAD + W, :] = x_ref[0]
        else:
            pad_ref[1:H + 1, _LPAD:_LPAD + W, :] = h.reshape(H, W, cin)

        w_ref, p_ref = ws[i], ps[i]

        # In-kernel im2col: 3x3 conv = sum of 9 shifted-window GEMM taps, all
        # read from VMEM (no HBM-materialized patches).
        acc = jnp.zeros((H * W, cout), jnp.float32)
        for dh in range(3):
            for dw in range(3):
                t = dh * 3 + dw
                c0 = _LPAD - 1 + dw
                tap = pad_ref[dh:dh + H, c0:c0 + W, :]
                acc = acc + jnp.dot(tap.reshape(H * W, cin),
                                    w_ref[t * cin:(t + 1) * cin, :],
                                    preferred_element_type=jnp.float32)

        p = p_ref[...]                              # [3, cout]
        z = jnp.maximum(acc + p[0:1, :], 0.0)       # conv bias + ReLU
        h = z * p[1:2, :] + p[2:3, :]               # folded eval-mode BatchNorm

    # -------- fused 2x2 / stride-2 max pool epilogue --------
    C = chans[-1]
    h4 = h.reshape(Ho, 2, W, C)                     # leading-dim split (free)
    rmax = jnp.maximum(h4[:, 0], h4[:, 1])          # pool along H -> [Ho, W, C]
    rm = rmax.reshape(Ho * W, C)
    # Pool along W: one stacked even/odd 0/1 selection matmul on the MXU, then
    # a single VPU max over the leading pair axis.
    eo = jnp.dot(sel_ref[...], rm, preferred_element_type=jnp.float32)
    eo = eo.reshape(2, Ho * Wo, C)
    pooled = jnp.maximum(eo[0], eo[1])              # [Ho*Wo, C]

    # Dropout2d is identity in eval mode.
    # TODO(synk): train-mode Dropout2d / batch-statistics BatchNorm not reproduced.
    o_ref[0] = pooled.reshape(Ho, Wo, C).astype(o_ref.dtype)


# ---------------------------------------------------------------------------
# Parameter prep (done once) and wrapper around pallas_call.
# ---------------------------------------------------------------------------

def prepare_convblock_params(torch_params, eps=1e-5):
    """PyTorch-layout params -> kernel params (pre-transposed weight, folded BN)."""
    kparams = []
    for (w, b, gamma, beta, mean, var) in torch_params:
        cout, cin = w.shape[0], w.shape[1]
        w2 = jnp.transpose(w, (2, 3, 1, 0)).reshape(9 * cin, cout)   # [9*Cin, Cout]
        scale = gamma / jnp.sqrt(var + eps)
        shift = beta - mean * scale
        p3 = jnp.stack([b, scale, shift], axis=0)                    # [3, Cout]
        kparams.append((w2.astype(jnp.float32), p3.astype(jnp.float32)))
    return kparams


def convblock_forward(x_nchw, kparams):
    """Eval-mode ConvBlock forward. x_nchw: [B, Cin, H, W] -> [B, Cout, H/2, W/2]."""
    B, Cin, H, W = x_nchw.shape
    n = len(kparams)
    chans = [Cin] + [int(w2.shape[1]) for (w2, _) in kparams]
    assert H % 2 == 0 and W % 16 == 0, "kernel assumes even H and W % 16 == 0"
    assert len(set(chans[1:])) == 1, "convs after the first share out_channels"
    Cout, Ho, Wo = chans[-1], H // 2, W // 2
    WP = W + 2 * _LPAD

    # Layout glue only: NCHW -> NHWC so channels sit on the TPU lane axis.
    x_nhwc = jnp.transpose(x_nchw, (0, 2, 3, 1)).astype(jnp.float32)

    # Stacked even/odd 0/1 selection matrix for the W-direction pool
    # (constant-folded under jit; fetched into VMEM once).
    rows = jnp.arange(Ho * Wo)[:, None]
    cols = jnp.arange(Ho * W)[None, :]
    sel_e = (cols == 2 * rows).astype(jnp.float32)
    sel_o = (cols == 2 * rows + 1).astype(jnp.float32)
    sel = jnp.concatenate([sel_e, sel_o], axis=0)    # [2*Ho*Wo, Ho*W]

    operands = [x_nhwc]
    in_specs = [pl.BlockSpec((1, H, W, Cin), lambda b: (b, 0, 0, 0))]
    for (w2, p3) in kparams:
        operands += [w2, p3]
        in_specs += [pl.BlockSpec(w2.shape, lambda b: (0, 0)),
                     pl.BlockSpec(p3.shape, lambda b: (0, 0))]
    operands += [sel]
    in_specs += [pl.BlockSpec(sel.shape, lambda b: (0, 0))]

    scratch_shapes = [pltpu.VMEM((H + 2, WP, chans[0]), jnp.float32)]
    if n >= 2:
        scratch_shapes.append(pltpu.VMEM((H + 2, WP, chans[1]), jnp.float32))

    out_nhwc = pl.pallas_call(
        functools.partial(_convblock_kernel, n, H, W, tuple(chans)),
        out_shape=jax.ShapeDtypeStruct((B, Ho, Wo, Cout), jnp.float32),
        grid=(B,),
        in_specs=in_specs,
        out_specs=pl.BlockSpec((1, Ho, Wo, Cout), lambda b: (b, 0, 0, 0)),
        scratch_shapes=scratch_shapes,
        compiler_params=pltpu.CompilerParams(
            dimension_semantics=("parallel",),      # megacore split over batch
            vmem_limit_bytes=32 * 1024 * 1024,      # explicit, v7x-safe budget
        ),
    )(*operands)

    return jnp.transpose(out_nhwc, (0, 3, 1, 2))    # back to NCHW (PyTorch layout)


# ---------------------------------------------------------------------------
# Pure-JAX reference + parameter init (PyTorch layout) for the sanity check.
# ---------------------------------------------------------------------------

def init_convblock_params(key, in_channels, out_channels, convs_in_block):
    params = []
    cin = in_channels
    for _ in range(convs_in_block):
        key, k1, k2, k3, k4, k5, k6 = jax.random.split(key, 7)
        w = 0.1 * jax.random.normal(k1, (out_channels, cin, 3, 3), jnp.float32)
        b = 0.05 * jax.random.normal(k2, (out_channels,), jnp.float32)
        gamma = 1.0 + 0.1 * jax.random.normal(k3, (out_channels,), jnp.float32)
        beta = 0.05 * jax.random.normal(k4, (out_channels,), jnp.float32)
        mean = 0.1 * jax.random.normal(k5, (out_channels,), jnp.float32)
        var = 0.5 + jax.random.uniform(k6, (out_channels,), jnp.float32)
        params.append((w, b, gamma, beta, mean, var))
        cin = out_channels
    return params


def convblock_reference(x_nchw, torch_params, eps=1e-5):
    h = x_nchw.astype(jnp.float32)
    for (w, b, gamma, beta, mean, var) in torch_params:
        h = lax.conv_general_dilated(
            h, w, window_strides=(1, 1), padding=((1, 1), (1, 1)),
            dimension_numbers=("NCHW", "OIHW", "NCHW"),
            precision=lax.Precision.HIGHEST)
        h = jnp.maximum(h + b[None, :, None, None], 0.0)
        scale = gamma / jnp.sqrt(var + eps)
        shift = beta - mean * scale
        h = h * scale[None, :, None, None] + shift[None, :, None, None]
    B, C, HH, WW = h.shape
    h = h.reshape(B, C, HH // 2, 2, WW // 2, 2).max(axis=(3, 5))
    return h  # Dropout2d: identity in eval mode


# ---------------------------------------------------------------------------
# Main
# ---------------------------------------------------------------------------

if __name__ == "__main__":
    key = jax.random.PRNGKey(0)
    kx, kp = jax.random.split(key)

    # ConvBlock(in_channels=4, out_channels=16, convs_in_block=2), 16x16 input.
    B, CIN, H, W = 2, 4, 16, 16
    COUT, CONVS_IN_BLOCK = 16, 2

    x = jax.random.normal(kx, (B, CIN, H, W), jnp.float32)           # NCHW
    torch_params = init_convblock_params(kp, CIN, COUT, CONVS_IN_BLOCK)
    kparams = prepare_convblock_params(torch_params)                 # prep once

    fwd = jax.jit(convblock_forward)
    out = jax.block_until_ready(fwd(x, kparams))
    ref = jax.block_until_ready(convblock_reference(x, torch_params))

    assert out.shape == (B, COUT, H // 2, W // 2), out.shape
    max_err = float(jnp.max(jnp.abs(out - ref)))
    assert jnp.allclose(out, ref, atol=2e-2, rtol=2e-2), max_err
    print("KERNEL_OK")
</pallas_src>

<mosaic_0001>
module attributes {stable_mosaic.version = 11 : i64} {
  func.func @_convblock_kernel(%arg0: i32, %arg1: memref<1x16x16x4xf32, #tpu.memory_space<vmem>>, %arg2: memref<36x16xf32, #tpu.memory_space<vmem>>, %arg3: memref<3x16xf32, #tpu.memory_space<vmem>>, %arg4: memref<144x16xf32, #tpu.memory_space<vmem>>, %arg5: memref<3x16xf32, #tpu.memory_space<vmem>>, %arg6: memref<128x128xf32, #tpu.memory_space<vmem>>, %arg7: memref<1x8x8x16xf32, #tpu.memory_space<vmem>>, %arg8: memref<18x32x4xf32, #tpu.memory_space<vmem>>, %arg9: memref<18x32x16xf32, #tpu.memory_space<vmem>>) attributes {dimension_semantics = [#tpu.dimension_semantics<parallel>], iteration_bounds = array<i64: 2>, scalar_prefetch = 0 : i64, scratch_operands = 2 : i64, tpu.core_type = #tpu.core_type<tc>, window_params = [{transform_indices = @transform_0, window_bounds = array<i64: 1, 16, 16, 4>}, {pipeline_mode = #tpu.pipeline_mode<synchronous>, transform_indices = @transform_1, window_bounds = array<i64: 36, 16>}, {pipeline_mode = #tpu.pipeline_mode<synchronous>, transform_indices = @transform_2, window_bounds = array<i64: 3, 16>}, {pipeline_mode = #tpu.pipeline_mode<synchronous>, transform_indices = @transform_3, window_bounds = array<i64: 144, 16>}, {pipeline_mode = #tpu.pipeline_mode<synchronous>, transform_indices = @transform_4, window_bounds = array<i64: 3, 16>}, {pipeline_mode = #tpu.pipeline_mode<synchronous>, transform_indices = @transform_5, window_bounds = array<i64: 128, 128>}, {transform_indices = @transform_6, window_bounds = array<i64: 1, 8, 8, 16>}]} {
    %cst = arith.constant 0.000000e+00 : f32
    %0 = vector.broadcast %cst : f32 to vector<18x32x4xf32>
    %c0 = arith.constant 0 : index
    %c0_0 = arith.constant 0 : index
    %c0_1 = arith.constant 0 : index
    %1 = vector.load %arg8[%c0, %c0_0, %c0_1] : memref<18x32x4xf32, #tpu.memory_space<vmem>>, vector<18x32x4xf32>
    tpu.vector_store %arg8[%c0, %c0_0, %c0_1], %0 {strides = array<i32>} : memref<18x32x4xf32, #tpu.memory_space<vmem>>, vector<18x32x4xf32>,
    %c0_2 = arith.constant 0 : index
    %c0_3 = arith.constant 0 : index
    %c0_4 = arith.constant 0 : index
    %c0_5 = arith.constant 0 : index
    %2 = vector.load %arg1[%c0_2, %c0_3, %c0_4, %c0_5] : memref<1x16x16x4xf32, #tpu.memory_space<vmem>>, vector<1x16x16x4xf32>
    %3 = vector.shape_cast %2 : vector<1x16x16x4xf32> to vector<16x16x4xf32>
    %c1 = arith.constant 1 : index
    %c8 = arith.constant 8 : index
    %c0_6 = arith.constant 0 : index
    %4 = vector.load %arg8[%c1, %c8, %c0_6] : memref<18x32x4xf32, #tpu.memory_space<vmem>>, vector<16x16x4xf32>
    tpu.vector_store %arg8[%c1, %c8, %c0_6], %3 {strides = array<i32>} : memref<18x32x4xf32, #tpu.memory_space<vmem>>, vector<16x16x4xf32>,
    %cst_7 = arith.constant 0.000000e+00 : f32
    %5 = vector.broadcast %cst_7 : f32 to vector<256x16xf32>
    %c0_8 = arith.constant 0 : index
    %c7 = arith.constant 7 : index
    %c0_9 = arith.constant 0 : index
    %6 = vector.load %arg8[%c0_8, %c7, %c0_9] : memref<18x32x4xf32, #tpu.memory_space<vmem>>, vector<16x16x4xf32>
    %7 = vector.shape_cast %6 : vector<16x16x4xf32> to vector<256x4xf32>
    %c0_10 = arith.constant 0 : index
    %c0_11 = arith.constant 0 : index
    %8 = vector.load %arg2[%c0_10, %c0_11] : memref<36x16xf32, #tpu.memory_space<vmem>>, vector<4x16xf32>
    %cst_12 = arith.constant dense<0.000000e+00> : vector<256x16xf32>
    %9 = tpu.matmul %7, %8, %cst_12 {dimension_numbers = #tpu.dot_dimension_numbers<[1], [0], [0], [1], [0, 0, 1, 1], [], []>} : vector<256x4xf32>, vector<4x16xf32>, vector<256x16xf32> -> vector<256x16xf32>
    %10 = arith.addf %5, %9 : vector<256x16xf32>
    %c0_13 = arith.constant 0 : index
    %c8_14 = arith.constant 8 : index
    %c0_15 = arith.constant 0 : index
    %11 = vector.load %arg8[%c0_13, %c8_14, %c0_15] : memref<18x32x4xf32, #tpu.memory_space<vmem>>, vector<16x16x4xf32>
    %12 = vector.shape_cast %11 : vector<16x16x4xf32> to vector<256x4xf32>
    %c4 = arith.constant 4 : index
    %c0_16 = arith.constant 0 : index
    %13 = vector.load %arg2[%c4, %c0_16] : memref<36x16xf32, #tpu.memory_space<vmem>>, vector<4x16xf32>
    %cst_17 = arith.constant dense<0.000000e+00> : vector<256x16xf32>
    %14 = tpu.matmul %12, %13, %cst_17 {dimension_numbers = #tpu.dot_dimension_numbers<[1], [0], [0], [1], [0, 0, 1, 1], [], []>} : vector<256x4xf32>, vector<4x16xf32>, vector<256x16xf32> -> vector<256x16xf32>
    %15 = arith.addf %10, %14 : vector<256x16xf32>
    %c0_18 = arith.constant 0 : index
    %c9 = arith.constant 9 : index
    %c0_19 = arith.constant 0 : index
    %16 = vector.load %arg8[%c0_18, %c9, %c0_19] : memref<18x32x4xf32, #tpu.memory_space<vmem>>, vector<16x16x4xf32>
    %17 = vector.shape_cast %16 : vector<16x16x4xf32> to vector<256x4xf32>
    %c8_20 = arith.constant 8 : index
    %c0_21 = arith.constant 0 : index
    %18 = vector.load %arg2[%c8_20, %c0_21] : memref<36x16xf32, #tpu.memory_space<vmem>>, vector<4x16xf32>
    %cst_22 = arith.constant dense<0.000000e+00> : vector<256x16xf32>
    %19 = tpu.matmul %17, %18, %cst_22 {dimension_numbers = #tpu.dot_dimension_numbers<[1], [0], [0], [1], [0, 0, 1, 1], [], []>} : vector<256x4xf32>, vector<4x16xf32>, vector<256x16xf32> -> vector<256x16xf32>
    %20 = arith.addf %15, %19 : vector<256x16xf32>
    %c1_23 = arith.constant 1 : index
    %c7_24 = arith.constant 7 : index
    %c0_25 = arith.constant 0 : index
    %21 = vector.load %arg8[%c1_23, %c7_24, %c0_25] : memref<18x32x4xf32, #tpu.memory_space<vmem>>, vector<16x16x4xf32>
    %22 = vector.shape_cast %21 : vector<16x16x4xf32> to vector<256x4xf32>
    %c12 = arith.constant 12 : index
    %c0_26 = arith.constant 0 : index
    %23 = vector.load %arg2[%c12, %c0_26] : memref<36x16xf32, #tpu.memory_space<vmem>>, vector<4x16xf32>
    %cst_27 = arith.constant dense<0.000000e+00> : vector<256x16xf32>
    %24 = tpu.matmul %22, %23, %cst_27 {dimension_numbers = #tpu.dot_dimension_numbers<[1], [0], [0], [1], [0, 0, 1, 1], [], []>} : vector<256x4xf32>, vector<4x16xf32>, vector<256x16xf32> -> vector<256x16xf32>
    %25 = arith.addf %20, %24 : vector<256x16xf32>
    %c1_28 = arith.constant 1 : index
    %c8_29 = arith.constant 8 : index
    %c0_30 = arith.constant 0 : index
    %26 = vector.load %arg8[%c1_28, %c8_29, %c0_30] : memref<18x32x4xf32, #tpu.memory_space<vmem>>, vector<16x16x4xf32>
    %27 = vector.shape_cast %26 : vector<16x16x4xf32> to vector<256x4xf32>
    %c16 = arith.constant 16 : index
    %c0_31 = arith.constant 0 : index
    %28 = vector.load %arg2[%c16, %c0_31] : memref<36x16xf32, #tpu.memory_space<vmem>>, vector<4x16xf32>
    %cst_32 = arith.constant dense<0.000000e+00> : vector<256x16xf32>
    %29 = tpu.matmul %27, %28, %cst_32 {dimension_numbers = #tpu.dot_dimension_numbers<[1], [0], [0], [1], [0, 0, 1, 1], [], []>} : vector<256x4xf32>, vector<4x16xf32>, vector<256x16xf32> -> vector<256x16xf32>
    %30 = arith.addf %25, %29 : vector<256x16xf32>
    %c1_33 = arith.constant 1 : index
    %c9_34 = arith.constant 9 : index
    %c0_35 = arith.constant 0 : index
    %31 = vector.load %arg8[%c1_33, %c9_34, %c0_35] : memref<18x32x4xf32, #tpu.memory_space<vmem>>, vector<16x16x4xf32>
    %32 = vector.shape_cast %31 : vector<16x16x4xf32> to vector<256x4xf32>
    %c20 = arith.constant 20 : index
    %c0_36 = arith.constant 0 : index
    %33 = vector.load %arg2[%c20, %c0_36] : memref<36x16xf32, #tpu.memory_space<vmem>>, vector<4x16xf32>
    %cst_37 = arith.constant dense<0.000000e+00> : vector<256x16xf32>
    %34 = tpu.matmul %32, %33, %cst_37 {dimension_numbers = #tpu.dot_dimension_numbers<[1], [0], [0], [1], [0, 0, 1, 1], [], []>} : vector<256x4xf32>, vector<4x16xf32>, vector<256x16xf32> -> vector<256x16xf32>
    %35 = arith.addf %30, %34 : vector<256x16xf32>
    %c2 = arith.constant 2 : index
    %c7_38 = arith.constant 7 : index
    %c0_39 = arith.constant 0 : index
    %36 = vector.load %arg8[%c2, %c7_38, %c0_39] : memref<18x32x4xf32, #tpu.memory_space<vmem>>, vector<16x16x4xf32>
    %37 = vector.shape_cast %36 : vector<16x16x4xf32> to vector<256x4xf32>
    %c24 = arith.constant 24 : index
    %c0_40 = arith.constant 0 : index
    %38 = vector.load %arg2[%c24, %c0_40] : memref<36x16xf32, #tpu.memory_space<vmem>>, vector<4x16xf32>
    %cst_41 = arith.constant dense<0.000000e+00> : vector<256x16xf32>
    %39 = tpu.matmul %37, %38, %cst_41 {dimension_numbers = #tpu.dot_dimension_numbers<[1], [0], [0], [1], [0, 0, 1, 1], [], []>} : vector<256x4xf32>, vector<4x16xf32>, vector<256x16xf32> -> vector<256x16xf32>
    %40 = arith.addf %35, %39 : vector<256x16xf32>
    %c2_42 = arith.constant 2 : index
    %c8_43 = arith.constant 8 : index
    %c0_44 = arith.constant 0 : index
    %41 = vector.load %arg8[%c2_42, %c8_43, %c0_44] : memref<18x32x4xf32, #tpu.memory_space<vmem>>, vector<16x16x4xf32>
    %42 = vector.shape_cast %41 : vector<16x16x4xf32> to vector<256x4xf32>
    %c28 = arith.constant 28 : index
    %c0_45 = arith.constant 0 : index
    %43 = vector.load %arg2[%c28, %c0_45] : memref<36x16xf32, #tpu.memory_space<vmem>>, vector<4x16xf32>
    %cst_46 = arith.constant dense<0.000000e+00> : vector<256x16xf32>
    %44 = tpu.matmul %42, %43, %cst_46 {dimension_numbers = #tpu.dot_dimension_numbers<[1], [0], [0], [1], [0, 0, 1, 1], [], []>} : vector<256x4xf32>, vector<4x16xf32>, vector<256x16xf32> -> vector<256x16xf32>
    %45 = arith.addf %40, %44 : vector<256x16xf32>
    %c2_47 = arith.constant 2 : index
    %c9_48 = arith.constant 9 : index
    %c0_49 = arith.constant 0 : index
    %46 = vector.load %arg8[%c2_47, %c9_48, %c0_49] : memref<18x32x4xf32, #tpu.memory_space<vmem>>, vector<16x16x4xf32>
    %47 = vector.shape_cast %46 : vector<16x16x4xf32> to vector<256x4xf32>
    %c32 = arith.constant 32 : index
    %c0_50 = arith.constant 0 : index
    %48 = vector.load %arg2[%c32, %c0_50] : memref<36x16xf32, #tpu.memory_space<vmem>>, vector<4x16xf32>
    %cst_51 = arith.constant dense<0.000000e+00> : vector<256x16xf32>
    %49 = tpu.matmul %47, %48, %cst_51 {dimension_numbers = #tpu.dot_dimension_numbers<[1], [0], [0], [1], [0, 0, 1, 1], [], []>} : vector<256x4xf32>, vector<4x16xf32>, vector<256x16xf32> -> vector<256x16xf32>
    %50 = arith.addf %45, %49 : vector<256x16xf32>
    %c0_52 = arith.constant 0 : index
    %c0_53 = arith.constant 0 : index
    %51 = vector.load %arg3[%c0_52, %c0_53] : memref<3x16xf32, #tpu.memory_space<vmem>>, vector<3x16xf32>
    %52 = vector.extract_strided_slice %51 {offsets = [0, 0], sizes = [1, 16], strides = [1, 1]} : vector<3x16xf32> to vector<1x16xf32>
    %53 = vector.broadcast %52 : vector<1x16xf32> to vector<256x16xf32>
    %54 = arith.addf %50, %53 : vector<256x16xf32>
    %cst_54 = arith.constant 0.000000e+00 : f32
    %55 = vector.broadcast %cst_54 : f32 to vector<256x16xf32>
    %56 = arith.maximumf %54, %55 : vector<256x16xf32>
    %57 = vector.extract_strided_slice %51 {offsets = [1, 0], sizes = [1, 16], strides = [1, 1]} : vector<3x16xf32> to vector<1x16xf32>
    %58 = vector.broadcast %57 : vector<1x16xf32> to vector<256x16xf32>
    %59 = arith.mulf %56, %58 : vector<256x16xf32>
    %60 = vector.extract_strided_slice %51 {offsets = [2, 0], sizes = [1, 16], strides = [1, 1]} : vector<3x16xf32> to vector<1x16xf32>
    %61 = vector.broadcast %60 : vector<1x16xf32> to vector<256x16xf32>
    %62 = arith.addf %59, %61 : vector<256x16xf32>
    %cst_55 = arith.constant 0.000000e+00 : f32
    %63 = vector.broadcast %cst_55 : f32 to vector<18x32x16xf32>
    %c0_56 = arith.constant 0 : index
    %c0_57 = arith.constant 0 : index
    %c0_58 = arith.constant 0 : index
    %64 = vector.load %arg9[%c0_56, %c0_57, %c0_58] : memref<18x32x16xf32, #tpu.memory_space<vmem>>, vector<18x32x16xf32>
    tpu.vector_store %arg9[%c0_56, %c0_57, %c0_58], %63 {strides = array<i32>} : memref<18x32x16xf32, #tpu.memory_space<vmem>>, vector<18x32x16xf32>,
    %65 = vector.shape_cast %62 : vector<256x16xf32> to vector<16x16x16xf32>
    %c1_59 = arith.constant 1 : index
    %c8_60 = arith.constant 8 : index
    %c0_61 = arith.constant 0 : index
    %66 = vector.load %arg9[%c1_59, %c8_60, %c0_61] : memref<18x32x16xf32, #tpu.memory_space<vmem>>, vector<16x16x16xf32>
    tpu.vector_store %arg9[%c1_59, %c8_60, %c0_61], %65 {strides = array<i32>} : memref<18x32x16xf32, #tpu.memory_space<vmem>>, vector<16x16x16xf32>,
    %cst_62 = arith.constant 0.000000e+00 : f32
    %67 = vector.broadcast %cst_62 : f32 to vector<256x16xf32>
    %c0_63 = arith.constant 0 : index
    %c7_64 = arith.constant 7 : index
    %c0_65 = arith.constant 0 : index
    %68 = vector.load %arg9[%c0_63, %c7_64, %c0_65] : memref<18x32x16xf32, #tpu.memory_space<vmem>>, vector<16x16x16xf32>
    %69 = vector.shape_cast %68 : vector<16x16x16xf32> to vector<256x16xf32>
    %c0_66 = arith.constant 0 : index
    %c0_67 = arith.constant 0 : index
    %70 = vector.load %arg4[%c0_66, %c0_67] : memref<144x16xf32, #tpu.memory_space<vmem>>, vector<16x16xf32>
    %cst_68 = arith.constant dense<0.000000e+00> : vector<256x16xf32>
    %71 = tpu.matmul %69, %70, %cst_68 {dimension_numbers = #tpu.dot_dimension_numbers<[1], [0], [0], [1], [0, 0, 1, 1], [], []>} : vector<256x16xf32>, vector<16x16xf32>, vector<256x16xf32> -> vector<256x16xf32>
    %72 = arith.addf %67, %71 : vector<256x16xf32>
    %c0_69 = arith.constant 0 : index
    %c8_70 = arith.constant 8 : index
    %c0_71 = arith.constant 0 : index
    %73 = vector.load %arg9[%c0_69, %c8_70, %c0_71] : memref<18x32x16xf32, #tpu.memory_space<vmem>>, vector<16x16x16xf32>
    %74 = vector.shape_cast %73 : vector<16x16x16xf32> to vector<256x16xf32>
    %c16_72 = arith.constant 16 : index
    %c0_73 = arith.constant 0 : index
    %75 = vector.load %arg4[%c16_72, %c0_73] : memref<144x16xf32, #tpu.memory_space<vmem>>, vector<16x16xf32>
    %cst_74 = arith.constant dense<0.000000e+00> : vector<256x16xf32>
    %76 = tpu.matmul %74, %75, %cst_74 {dimension_numbers = #tpu.dot_dimension_numbers<[1], [0], [0], [1], [0, 0, 1, 1], [], []>} : vector<256x16xf32>, vector<16x16xf32>, vector<256x16xf32> -> vector<256x16xf32>
    %77 = arith.addf %72, %76 : vector<256x16xf32>
    %c0_75 = arith.constant 0 : index
    %c9_76 = arith.constant 9 : index
    %c0_77 = arith.constant 0 : index
    %78 = vector.load %arg9[%c0_75, %c9_76, %c0_77] : memref<18x32x16xf32, #tpu.memory_space<vmem>>, vector<16x16x16xf32>
    %79 = vector.shape_cast %78 : vector<16x16x16xf32> to vector<256x16xf32>
    %c32_78 = arith.constant 32 : index
    %c0_79 = arith.constant 0 : index
    %80 = vector.load %arg4[%c32_78, %c0_79] : memref<144x16xf32, #tpu.memory_space<vmem>>, vector<16x16xf32>
    %cst_80 = arith.constant dense<0.000000e+00> : vector<256x16xf32>
    %81 = tpu.matmul %79, %80, %cst_80 {dimension_numbers = #tpu.dot_dimension_numbers<[1], [0], [0], [1], [0, 0, 1, 1], [], []>} : vector<256x16xf32>, vector<16x16xf32>, vector<256x16xf32> -> vector<256x16xf32>
    %82 = arith.addf %77, %81 : vector<256x16xf32>
    %c1_81 = arith.constant 1 : index
    %c7_82 = arith.constant 7 : index
    %c0_83 = arith.constant 0 : index
    %83 = vector.load %arg9[%c1_81, %c7_82, %c0_83] : memref<18x32x16xf32, #tpu.memory_space<vmem>>, vector<16x16x16xf32>
    %84 = vector.shape_cast %83 : vector<16x16x16xf32> to vector<256x16xf32>
    %c48 = arith.constant 48 : index
    %c0_84 = arith.constant 0 : index
    %85 = vector.load %arg4[%c48, %c0_84] : memref<144x16xf32, #tpu.memory_space<vmem>>, vector<16x16xf32>
    %cst_85 = arith.constant dense<0.000000e+00> : vector<256x16xf32>
    %86 = tpu.matmul %84, %85, %cst_85 {dimension_numbers = #tpu.dot_dimension_numbers<[1], [0], [0], [1], [0, 0, 1, 1], [], []>} : vector<256x16xf32>, vector<16x16xf32>, vector<256x16xf32> -> vector<256x16xf32>
    %87 = arith.addf %82, %86 : vector<256x16xf32>
    %c1_86 = arith.constant 1 : index
    %c8_87 = arith.constant 8 : index
    %c0_88 = arith.constant 0 : index
    %88 = vector.load %arg9[%c1_86, %c8_87, %c0_88] : memref<18x32x16xf32, #tpu.memory_space<vmem>>, vector<16x16x16xf32>
    %89 = vector.shape_cast %88 : vector<16x16x16xf32> to vector<256x16xf32>
    %c64 = arith.constant 64 : index
    %c0_89 = arith.constant 0 : index
    %90 = vector.load %arg4[%c64, %c0_89] : memref<144x16xf32, #tpu.memory_space<vmem>>, vector<16x16xf32>
    %cst_90 = arith.constant dense<0.000000e+00> : vector<256x16xf32>
    %91 = tpu.matmul %89, %90, %cst_90 {dimension_numbers = #tpu.dot_dimension_numbers<[1], [0], [0], [1], [0, 0, 1, 1], [], []>} : vector<256x16xf32>, vector<16x16xf32>, vector<256x16xf32> -> vector<256x16xf32>
    %92 = arith.addf %87, %91 : vector<256x16xf32>
    %c1_91 = arith.constant 1 : index
    %c9_92 = arith.constant 9 : index
    %c0_93 = arith.constant 0 : index
    %93 = vector.load %arg9[%c1_91, %c9_92, %c0_93] : memref<18x32x16xf32, #tpu.memory_space<vmem>>, vector<16x16x16xf32>
    %94 = vector.shape_cast %93 : vector<16x16x16xf32> to vector<256x16xf32>
    %c80 = arith.constant 80 : index
    %c0_94 = arith.constant 0 : index
    %95 = vector.load %arg4[%c80, %c0_94] : memref<144x16xf32, #tpu.memory_space<vmem>>, vector<16x16xf32>
    %cst_95 = arith.constant dense<0.000000e+00> : vector<256x16xf32>
    %96 = tpu.matmul %94, %95, %cst_95 {dimension_numbers = #tpu.dot_dimension_numbers<[1], [0], [0], [1], [0, 0, 1, 1], [], []>} : vector<256x16xf32>, vector<16x16xf32>, vector<256x16xf32> -> vector<256x16xf32>
    %97 = arith.addf %92, %96 : vector<256x16xf32>
    %c2_96 = arith.constant 2 : index
    %c7_97 = arith.constant 7 : index
    %c0_98 = arith.constant 0 : index
    %98 = vector.load %arg9[%c2_96, %c7_97, %c0_98] : memref<18x32x16xf32, #tpu.memory_space<vmem>>, vector<16x16x16xf32>
    %99 = vector.shape_cast %98 : vector<16x16x16xf32> to vector<256x16xf32>
    %c96 = arith.constant 96 : index
    %c0_99 = arith.constant 0 : index
    %100 = vector.load %arg4[%c96, %c0_99] : memref<144x16xf32, #tpu.memory_space<vmem>>, vector<16x16xf32>
    %cst_100 = arith.constant dense<0.000000e+00> : vector<256x16xf32>
    %101 = tpu.matmul %99, %100, %cst_100 {dimension_numbers = #tpu.dot_dimension_numbers<[1], [0], [0], [1], [0, 0, 1, 1], [], []>} : vector<256x16xf32>, vector<16x16xf32>, vector<256x16xf32> -> vector<256x16xf32>
    %102 = arith.addf %97, %101 : vector<256x16xf32>
    %c2_101 = arith.constant 2 : index
    %c8_102 = arith.constant 8 : index
    %c0_103 = arith.constant 0 : index
    %103 = vector.load %arg9[%c2_101, %c8_102, %c0_103] : memref<18x32x16xf32, #tpu.memory_space<vmem>>, vector<16x16x16xf32>
    %104 = vector.shape_cast %103 : vector<16x16x16xf32> to vector<256x16xf32>
    %c112 = arith.constant 112 : index
    %c0_104 = arith.constant 0 : index
    %105 = vector.load %arg4[%c112, %c0_104] : memref<144x16xf32, #tpu.memory_space<vmem>>, vector<16x16xf32>
    %cst_105 = arith.constant dense<0.000000e+00> : vector<256x16xf32>
    %106 = tpu.matmul %104, %105, %cst_105 {dimension_numbers = #tpu.dot_dimension_numbers<[1], [0], [0], [1], [0, 0, 1, 1], [], []>} : vector<256x16xf32>, vector<16x16xf32>, vector<256x16xf32> -> vector<256x16xf32>
    %107 = arith.addf %102, %106 : vector<256x16xf32>
    %c2_106 = arith.constant 2 : index
    %c9_107 = arith.constant 9 : index
    %c0_108 = arith.constant 0 : index
    %108 = vector.load %arg9[%c2_106, %c9_107, %c0_108] : memref<18x32x16xf32, #tpu.memory_space<vmem>>, vector<16x16x16xf32>
    %109 = vector.shape_cast %108 : vector<16x16x16xf32> to vector<256x16xf32>
    %c128 = arith.constant 128 : index
    %c0_109 = arith.constant 0 : index
    %110 = vector.load %arg4[%c128, %c0_109] : memref<144x16xf32, #tpu.memory_space<vmem>>, vector<16x16xf32>
    %cst_110 = arith.constant dense<0.000000e+00> : vector<256x16xf32>
    %111 = tpu.matmul %109, %110, %cst_110 {dimension_numbers = #tpu.dot_dimension_numbers<[1], [0], [0], [1], [0, 0, 1, 1], [], []>} : vector<256x16xf32>, vector<16x16xf32>, vector<256x16xf32> -> vector<256x16xf32>
    %112 = arith.addf %107, %111 : vector<256x16xf32>
    %c0_111 = arith.constant 0 : index
    %c0_112 = arith.constant 0 : index
    %113 = vector.load %arg5[%c0_111, %c0_112] : memref<3x16xf32, #tpu.memory_space<vmem>>, vector<3x16xf32>
    %114 = vector.extract_strided_slice %113 {offsets = [0, 0], sizes = [1, 16], strides = [1, 1]} : vector<3x16xf32> to vector<1x16xf32>
    %115 = vector.broadcast %114 : vector<1x16xf32> to vector<256x16xf32>
    %116 = arith.addf %112, %115 : vector<256x16xf32>
    %cst_113 = arith.constant 0.000000e+00 : f32
    %117 = vector.broadcast %cst_113 : f32 to vector<256x16xf32>
    %118 = arith.maximumf %116, %117 : vector<256x16xf32>
    %119 = vector.extract_strided_slice %113 {offsets = [1, 0], sizes = [1, 16], strides = [1, 1]} : vector<3x16xf32> to vector<1x16xf32>
    %120 = vector.broadcast %119 : vector<1x16xf32> to vector<256x16xf32>
    %121 = arith.mulf %118, %120 : vector<256x16xf32>
    %122 = vector.extract_strided_slice %113 {offsets = [2, 0], sizes = [1, 16], strides = [1, 1]} : vector<3x16xf32> to vector<1x16xf32>
    %123 = vector.broadcast %122 : vector<1x16xf32> to vector<256x16xf32>
    %124 = arith.addf %121, %123 : vector<256x16xf32>
    %125 = vector.shape_cast %124 : vector<256x16xf32> to vector<8x2x16x16xf32>
    %126 = vector.extract_strided_slice %125 {offsets = [0, 0, 0, 0], sizes = [8, 1, 16, 16], strides = [1, 1, 1, 1]} : vector<8x2x16x16xf32> to vector<8x1x16x16xf32>
    %127 = vector.shape_cast %126 : vector<8x1x16x16xf32> to vector<8x16x16xf32>
    %128 = vector.extract_strided_slice %125 {offsets = [0, 1, 0, 0], sizes = [8, 1, 16, 16], strides = [1, 1, 1, 1]} : vector<8x2x16x16xf32> to vector<8x1x16x16xf32>
    %129 = vector.shape_cast %128 : vector<8x1x16x16xf32> to vector<8x16x16xf32>
    %130 = arith.maximumf %127, %129 : vector<8x16x16xf32>
    %131 = vector.shape_cast %130 : vector<8x16x16xf32> to vector<128x16xf32>
    %c0_114 = arith.constant 0 : index
    %c0_115 = arith.constant 0 : index
    %132 = vector.load %arg6[%c0_114, %c0_115] : memref<128x128xf32, #tpu.memory_space<vmem>>, vector<128x128xf32>
    %cst_116 = arith.constant dense<0.000000e+00> : vector<128x16xf32>
    %133 = tpu.matmul %132, %131, %cst_116 {dimension_numbers = #tpu.dot_dimension_numbers<[1], [0], [0], [1], [0, 0, 1, 1], [], []>} : vector<128x128xf32>, vector<128x16xf32>, vector<128x16xf32> -> vector<128x16xf32>
    %134 = vector.shape_cast %133 : vector<128x16xf32> to vector<2x64x16xf32>
    %135 = vector.extract_strided_slice %134 {offsets = [0, 0, 0], sizes = [1, 64, 16], strides = [1, 1, 1]} : vector<2x64x16xf32> to vector<1x64x16xf32>
    %136 = vector.shape_cast %135 : vector<1x64x16xf32> to vector<64x16xf32>
    %137 = vector.extract_strided_slice %134 {offsets = [1, 0, 0], sizes = [1, 64, 16], strides = [1, 1, 1]} : vector<2x64x16xf32> to vector<1x64x16xf32>
    %138 = vector.shape_cast %137 : vector<1x64x16xf32> to vector<64x16xf32>
    %139 = arith.maximumf %136, %138 : vector<64x16xf32>
    %140 = vector.shape_cast %139 : vector<64x16xf32> to vector<8x8x16xf32>
    %c0_117 = arith.constant 0 : index
    %c0_118 = arith.constant 0 : index
    %c0_119 = arith.constant 0 : index
    %c0_120 = arith.constant 0 : index
    %141 = vector.load %arg7[%c0_117, %c0_118, %c0_119, %c0_120] : memref<1x8x8x16xf32, #tpu.memory_space<vmem>>, vector<1x8x8x16xf32>
    %142 = vector.shape_cast %141 : vector<1x8x8x16xf32> to vector<8x8x16xf32>
    %143 = vector.shape_cast %140 : vector<8x8x16xf32> to vector<1x8x8x16xf32>
    tpu.vector_store %arg7[%c0_117, %c0_118, %c0_119, %c0_120], %143 {strides = array<i32>} : memref<1x8x8x16xf32, #tpu.memory_space<vmem>>, vector<1x8x8x16xf32>,
    return
  }
  func.func @transform_0(%arg0: i32) -> (i32, i32, i32, i32) {
    %c0_i32 = arith.constant 0 : i32
    %c0_i32_0 = arith.constant 0 : i32
    %c0_i32_1 = arith.constant 0 : i32
    %c0_i32_2 = arith.constant 0 : i32
    return %arg0, %c0_i32, %c0_i32_0, %c0_i32_1 : i32, i32, i32, i32
  }
  func.func @transform_1(%arg0: i32) -> (i32, i32) {
    %c0_i32 = arith.constant 0 : i32
    %c0_i32_0 = arith.constant 0 : i32
    %c0_i32_1 = arith.constant 0 : i32
    return %c0_i32, %c0_i32_0 : i32, i32
  }
  func.func @transform_2(%arg0: i32) -> (i32, i32) {
    %c0_i32 = arith.constant 0 : i32
    %c0_i32_0 = arith.constant 0 : i32
    %c0_i32_1 = arith.constant 0 : i32
    return %c0_i32, %c0_i32_0 : i32, i32
  }
  func.func @transform_3(%arg0: i32) -> (i32, i32) {
    %c0_i32 = arith.constant 0 : i32
    %c0_i32_0 = arith.constant 0 : i32
    %c0_i32_1 = arith.constant 0 : i32
    return %c0_i32, %c0_i32_0 : i32, i32
  }
  func.func @transform_4(%arg0: i32) -> (i32, i32) {
    %c0_i32 = arith.constant 0 : i32
    %c0_i32_0 = arith.constant 0 : i32
    %c0_i32_1 = arith.constant 0 : i32
    return %c0_i32, %c0_i32_0 : i32, i32
  }
  func.func @transform_5(%arg0: i32) -> (i32, i32) {
    %c0_i32 = arith.constant 0 : i32
    %c0_i32_0 = arith.constant 0 : i32
    %c0_i32_1 = arith.constant 0 : i32
    return %c0_i32, %c0_i32_0 : i32, i32
  }
  func.func @transform_6(%arg0: i32) -> (i32, i32, i32, i32) {
    %c0_i32 = arith.constant 0 : i32
    %c0_i32_0 = arith.constant 0 : i32
    %c0_i32_1 = arith.constant 0 : i32
    %c0_i32_2 = arith.constant 0 : i32
    return %arg0, %c0_i32, %c0_i32_0, %c0_i32_1 : i32, i32, i32, i32
  }
}

</mosaic_0001>

<bundles_post_ra>
// kernel: convblock_forward.1
= control target key start
LH: loop header
LB: loop body
LE: loop exit
PB: predicated region body
PF: predicated region fallthrough
CT: control target
= control target key end

     0   :  { %11 = vsyncpa [#allocation5], 0  ;;  %s9715_s0 = inlined_call_operand.vmem [shape: f32[2,16,16,4], index: 0, kind: input, shape index: {}]   ;;  %s9716_s1 = inlined_call_operand.vmem [shape: f32[36,16], index: 1, kind: input, shape index: {}]   ;;  %s9717_s2 = inlined_call_operand.vmem [shape: f32[3,16], index: 2, kind: input, shape index: {}]   ;;  %s9718_s3 = inlined_call_operand.vmem [shape: f32[144,16], index: 3, kind: input, shape index: {}]   ;;  %s9719_s4 = inlined_call_operand.vmem [shape: f32[3,16], index: 4, kind: input, shape index: {}]   ;;  %s9720_s5 = inlined_call_operand.vmem [shape: f32[128,128], index: 5, kind: input, shape index: {}]   ;;  %s9721_s6 = inlined_call_operand.hbm [shape: f32[2,8,8,16], index: 6, kind: output, shape index: {}]  }
   0x1   :  { %13 = vsyncpa [#allocation5 + $0x1], 0  ;;  %s6538_s21 = smov 0   ;;  %s6540_s22 = smov 0  }
   0x2   :  { %s6542_s23 = smov 0   ;;  %s6544_s24 = smov 0  }
   0x3 LB: > { %s6559_s25 = sadd.s32 4294967295, %s6498_s24   ;;  %s5792_s26 = sadd.s32 4294967294, %s6498_s24   ;;  %s6498_s24 = sphi %s6544_s24, %s9970_s24   ;;  %s6494_s23 = sphi %s6542_s23, %s9969_s23   ;;  %s6490_s22 = sphi %s6540_s22, %s9968_s22   ;;  %s6486_s21 = sphi %s6538_s21, %s9967_s21  }
   0x4   : > { %s6563_s27 = sadd.s32 1, %s6498_s24   ;;  %s157_s28 = sadd.s32 1, %s6494_s23 }
   0x5   : > { %s154_s29 = ssub.s32 %s6498_s24, %s6563_s27  ;;  %p167_p0 = scmp.ne.s32.totalorder %s6494_s23, %s6490_s22 }
   0x6   : > { %p155_p1 = scmp.eq.s32.totalorder %s154_s29, 0  ;;  %p168_p2 = scmp.eq.s32.totalorder %s6559_s25, 1 }
   0x7   : > { %p173_p3 = scmp.ne.s32.totalorder %s6490_s22, %s6486_s21  ;;  %p174_p4 = scmp.eq.s32.totalorder %s5792_s26, 1 }
   0x8   : > { %s6574_s30 = scalar_select %p155_p1, %s6494_s23, %s157_s28  }
   0x9   : > { %p6576_p5 = por %p168_p2, %p167_p0  ;;  %p6580_p6 = por %p174_p4, %p173_p3 }
   0xa   : > { %p5795_p7 = scmp.ge.s32.totalorder %s6498_s24, 1  ;;  %p215_p8 = scmp.lt.s32.totalorder %s6498_s24, 3 }
   0xc   : > { %p216_p9 = pnand %p5795_p7, %p215_p8 }
   0xe   : > { %219 = sbr.rel (%p216_p9) target bundleno = 1852 (0x73c), region = 44 }
  0x13   : > { %v453_v0 = vld [vmem:[%s9716_s1 + $0x4] sm:$0xf]  ;;  %vm550_vm0 = vcmask 1043456   ;;  %vm250_vm1 = vcmask 31744   ;;  %v9722_v1 = vmov 0.0   ;;  %p245_p10 = scmp.lt.s32.totalorder %s6559_s25, 1 }
  0x14   : > { %5799 = vmatpush.msk.msra.mxu0 %vm550_vm0, %v453_v0  ;;  %252 = vst.msk [vmem:[#allocation2 + $0x8] sm:$0xff] %vm250_vm1, %v9722_v1  ;;  %6391 = vmatpush.msk.msra.mxu2 %vm550_vm0, %v453_v0  ;;  %v420_v4 = vld [vmem:[%s9716_s1] sm:$0xf]  ;;  %v911_v12 = vld [vmem:[%s9716_s1 + $0x8] sm:$0xf]  ;;  %vm2951_vm2 = vcmask 130048  }
  0x15   : > { %251 = vst.msk [vmem:[#allocation2] sm:$0xff] %vm250_vm1, %v9722_v1  ;;  %6392 = vmatpush.msk.msra.mxu3 %vm550_vm0, %v453_v0  ;;  %5832 = vmatpush.msk.msra.mxu1 %vm550_vm0, %v420_v4  ;;  %s246_s13 = scalar_select %p245_p10, %s6559_s25, 1 }
  0x16   : > { %253 = vst.msk [vmem:[#allocation2 + $0x10] sm:$0xff] %vm250_vm1, %v9722_v1  ;;  %5865 = vmatpush.msk.msrb.mxu2 %vm550_vm0, %v911_v12  ;;  %s6456_s12 = scalar_lea.hbm %s9721_s6, 128 }
  0x17   : > { %254 = vst.msk [vmem:[#allocation2 + $0x18] sm:$0xff] %vm250_vm1, %v9722_v1  ;;  %6393 = vmatpush.msk.msrb.mxu3 %vm550_vm0, %v420_v4  ;;  %s6389_s14 = sshll.u32 %s246_s13, 8 }
  0x18   : > { %255 = vst.msk [vmem:[#allocation2 + $0x20] sm:$0xff] %vm250_vm1, %v9722_v1  ;;  %s6740_s17 = scalar_lea.vmem %s9715_s0, %s6389_s14  ;;  %s242_s14 = sand.u32 1, %s6490_s22  }
  0x19   : > { %256 = vst.msk [vmem:[#allocation2 + $0x28] sm:$0xff] %vm250_vm1, %v9722_v1  ;;  %v341_v7 = vld [vmem:[%s6740_s17 + $0x90] sm:$0xff]  ;;  %v342_v9 = vld [vmem:[%s6740_s17 + $0x98] sm:$0xff]  ;;  %v323_v11 = vld [vmem:[%s6740_s17] sm:$0xff]  ;;  %s5796_s15 = sshll.u32 %s242_s14, 6  ;;  %s5715_s29 = scalar_lea.sflag [#allocation5], %s242_s14 }
  0x1a   : > { %257 = vst.msk [vmem:[#allocation2 + $0x30] sm:$0xff] %vm250_vm1, %v9722_v1  ;;  %v345_v8 = vld [vmem:[%s6740_s17 + $0xb0] sm:$0xff]  ;;  %v346_v10 = vld [vmem:[%s6740_s17 + $0xb8] sm:$0xff]  ;;  %v343_v13 = vld [vmem:[%s6740_s17 + $0xa0] sm:$0xff]  ;;  %s244_s16 = scalar_lea.vmem [#allocation4], %s5796_s15 }
  0x1b   : > { %v421_v2 = vld [vmem:[#allocation2 + $0x8] sm:$0xff]  ;;  %258 = vst.msk [vmem:[#allocation2 + $0x38] sm:$0xff] %vm250_vm1, %v9722_v1  ;;  %v347_v14 = vld [vmem:[%s6740_s17 + $0xc0] sm:$0xff]  ;;  %v325_v19 = vld [vmem:[%s6740_s17 + $0x10] sm:$0xff]  ;;  %s5727_s26 = sshll.u32 %s244_s16, 4  ;;  %s5728_s26 = int_to_ptr.vmem [resolvable:$true] %s5727_s26 }
  0x1c   : > { %5800 = vmatmul.msk.f32.vlgmr.msra.gmra.mxu0 %vm250_vm1, %v421_v2  ;;  %259 = vst.msk [vmem:[#allocation2 + $0x40] sm:$0xff] %vm250_vm1, %v9722_v1  ;;  %v388_v5 = vld [vmem:[#allocation2 + $0x7] sm:$0xff]  ;;  %v349_v21 = vld [vmem:[%s6740_s17 + $0xd0] sm:$0xff]  ;;  %v326_v22 = vld [vmem:[%s6740_s17 + $0x18] sm:$0xff] }
  0x1d   : > { %260 = vst.msk [vmem:[#allocation2 + $0x48] sm:$0xff] %vm250_vm1, %v9722_v1  ;;  %v422_v3 = vld [vmem:[#allocation2 + $0x10] sm:$0xff]  ;;  %5833 = vmatmul.msk.f32.vlgmr.msra.gmra.mxu1 %vm250_vm1, %v388_v5  ;;  %v324_v15 = vld [vmem:[%s6740_s17 + $0x8] sm:$0xff]  ;;  %v350_v23 = vld [vmem:[%s6740_s17 + $0xd8] sm:$0xff] }
  0x1e   : > { %261 = vst.msk [vmem:[#allocation2 + $0x50] sm:$0xff] %vm250_vm1, %v9722_v1  ;;  %v389_v6 = vld [vmem:[#allocation2 + $0xf] sm:$0xff]  ;;  %v327_v26 = vld [vmem:[%s6740_s17 + $0x20] sm:$0xff]  ;;  %v330_v43 = vld [vmem:[%s6740_s17 + $0x38] sm:$0xff] }
  0x1f   : > { %262 = vst.msk [vmem:[#allocation2 + $0x58] sm:$0xff] %vm250_vm1, %v9722_v1  ;;  %v344_v16 = vld [vmem:[%s6740_s17 + $0xa8] sm:$0xff]  ;;  %v351_v29 = vld [vmem:[%s6740_s17 + $0xe0] sm:$0xff]  ;;  %v329_v38 = vld [vmem:[%s6740_s17 + $0x30] sm:$0xff] }
  0x20   : > { %263 = vst.msk [vmem:[#allocation2 + $0x60] sm:$0xff] %vm250_vm1, %v9722_v1  ;;  %v348_v17 = vld [vmem:[%s6740_s17 + $0xc8] sm:$0xff]  ;;  %v331_v48 = vld [vmem:[%s6740_s17 + $0x40] sm:$0xff]  ;;  %v880_v49 = vld [vmem:[#allocation2 + $0x11] sm:$0xff] }
  0x21   : > { %264 = vst.msk [vmem:[#allocation2 + $0x68] sm:$0xff] %vm250_vm1, %v9722_v1  ;;  %v328_v32 = vld [vmem:[%s6740_s17 + $0x28] sm:$0xff]  ;;  %v333_v58 = vld [vmem:[%s6740_s17 + $0x50] sm:$0xff]  ;;  %v334_v63 = vld [vmem:[%s6740_s17 + $0x58] sm:$0xff] }
  0x22   : > { %265 = vst.msk [vmem:[#allocation2 + $0x70] sm:$0xff] %vm250_vm1, %v9722_v1  ;;  %v352_v37 = vld [vmem:[%s6740_s17 + $0xe8] sm:$0xff]  ;;  %v335_v5 = vld [vmem:[%s6740_s17 + $0x60] sm:$0xff] }
  0x23   : > { %266 = vst.msk [vmem:[#allocation2 + $0x78] sm:$0xff] %vm250_vm1, %v9722_v1  ;;  %v879_v44 = vld [vmem:[#allocation2 + $0x9] sm:$0xff] }
  0x24   : > { %267 = vst.msk [vmem:[#allocation2 + $0x80] sm:$0xff] %vm250_vm1, %v9722_v1  ;;  %5801 = vmatmul.msk.f32.gmra.mxu0 %vm250_vm1, %v422_v3  ;;  %v332_v53 = vld [vmem:[%s6740_s17 + $0x48] sm:$0xff] }
  0x25   : > { %268 = vst.msk [vmem:[#allocation2 + $0x88] sm:$0xff] %vm250_vm1, %v9722_v1  ;;  %5834 = vmatmul.msk.f32.gmra.mxu1 %vm250_vm1, %v389_v6 }
  0x26   : > { %269 = vst.msk [vmem:[#allocation2 + $0x90] sm:$0xff] %vm250_vm1, %v9722_v1 }
  0x27   : > { %270 = vst.msk [vmem:[#allocation2 + $0x98] sm:$0xff] %vm250_vm1, %v9722_v1 }
  0x28   : > { %271 = vst.msk [vmem:[#allocation2 + $0xa0] sm:$0xff] %vm250_vm1, %v9722_v1 }
  0x29   : > { %272 = vst.msk [vmem:[#allocation2 + $0xa8] sm:$0xff] %vm250_vm1, %v9722_v1 }
  0x2a   : > { %273 = vst.msk [vmem:[#allocation2 + $0xb0] sm:$0xff] %vm250_vm1, %v9722_v1 }
  0x2b   : > { %274 = vst.msk [vmem:[#allocation2 + $0xb8] sm:$0xff] %vm250_vm1, %v9722_v1 }
  0x2c   : > { %275 = vst.msk [vmem:[#allocation2 + $0xc0] sm:$0xff] %vm250_vm1, %v9722_v1 }
  0x2d   : > { %276 = vst.msk [vmem:[#allocation2 + $0xc8] sm:$0xff] %vm250_vm1, %v9722_v1 }
  0x2e   : > { %277 = vst.msk [vmem:[#allocation2 + $0xd0] sm:$0xff] %vm250_vm1, %v9722_v1 }
  0x2f   : > { %278 = vst.msk [vmem:[#allocation2 + $0xd8] sm:$0xff] %vm250_vm1, %v9722_v1 }
  0x30   : > { %279 = vst.msk [vmem:[#allocation2 + $0xe0] sm:$0xff] %vm250_vm1, %v9722_v1 }
  0x31   : > { %280 = vst.msk [vmem:[#allocation2 + $0xe8] sm:$0xff] %vm250_vm1, %v9722_v1 }
  0x32   : > { %281 = vst.msk [vmem:[#allocation2 + $0xf0] sm:$0xff] %vm250_vm1, %v9722_v1 }
  0x33   : > { %282 = vst.msk [vmem:[#allocation2 + $0xf8] sm:$0xff] %vm250_vm1, %v9722_v1 }
  0x34   : > { %283 = vst.msk [vmem:[#allocation2 + $0x100] sm:$0xff] %vm250_vm1, %v9722_v1 }
  0x35   : > { %284 = vst.msk [vmem:[#allocation2 + $0x108] sm:$0xff] %vm250_vm1, %v9722_v1 }
  0x36   : > { %285 = vst.msk [vmem:[#allocation2 + $0x110] sm:$0xff] %vm250_vm1, %v9722_v1 }
  0x37   : > { %286 = vst.msk [vmem:[#allocation2 + $0x118] sm:$0xff] %vm250_vm1, %v9722_v1 }
  0x38   : > { %287 = vst.msk [vmem:[#allocation2 + $0x120] sm:$0xff] %vm250_vm1, %v9722_v1 }
  0x39   : > { %288 = vst.msk [vmem:[#allocation2 + $0x128] sm:$0xff] %vm250_vm1, %v9722_v1 }
  0x3a   : > { %289 = vst.msk [vmem:[#allocation2 + $0x130] sm:$0xff] %vm250_vm1, %v9722_v1 }
  0x3b   : > { %290 = vst.msk [vmem:[#allocation2 + $0x138] sm:$0xff] %vm250_vm1, %v9722_v1 }
  0x3c   : > { %291 = vst.msk [vmem:[#allocation2 + $0x140] sm:$0xff] %vm250_vm1, %v9722_v1 }
  0x3d   : > { %292 = vst.msk [vmem:[#allocation2 + $0x148] sm:$0xff] %vm250_vm1, %v9722_v1 }
  0x3e   : > { %293 = vst.msk [vmem:[#allocation2 + $0x150] sm:$0xff] %vm250_vm1, %v9722_v1 }
  0x3f   : > { %294 = vst.msk [vmem:[#allocation2 + $0x158] sm:$0xff] %vm250_vm1, %v9722_v1 }
  0x40   : > { %295 = vst.msk [vmem:[#allocation2 + $0x160] sm:$0xff] %vm250_vm1, %v9722_v1 }
  0x41   : > { %296 = vst.msk [vmem:[#allocation2 + $0x168] sm:$0xff] %vm250_vm1, %v9722_v1 }
  0x42   : > { %297 = vst.msk [vmem:[#allocation2 + $0x170] sm:$0xff] %vm250_vm1, %v9722_v1 }
  0x43   : > { %298 = vst.msk [vmem:[#allocation2 + $0x178] sm:$0xff] %vm250_vm1, %v9722_v1 }
  0x44   : > { %299 = vst.msk [vmem:[#allocation2 + $0x180] sm:$0xff] %vm250_vm1, %v9722_v1 }
  0x45   : > { %300 = vst.msk [vmem:[#allocation2 + $0x188] sm:$0xff] %vm250_vm1, %v9722_v1 }
  0x46   : > { %301 = vst.msk [vmem:[#allocation2 + $0x190] sm:$0xff] %vm250_vm1, %v9722_v1 }
  0x47   : > { %302 = vst.msk [vmem:[#allocation2 + $0x198] sm:$0xff] %vm250_vm1, %v9722_v1 }
  0x48   : > { %303 = vst.msk [vmem:[#allocation2 + $0x1a0] sm:$0xff] %vm250_vm1, %v9722_v1 }
  0x49   : > { %304 = vst.msk [vmem:[#allocation2 + $0x1a8] sm:$0xff] %vm250_vm1, %v9722_v1 }
  0x4a   : > { %305 = vst.msk [vmem:[#allocation2 + $0x1b0] sm:$0xff] %vm250_vm1, %v9722_v1 }
  0x4b   : > { %306 = vst.msk [vmem:[#allocation2 + $0x1b8] sm:$0xff] %vm250_vm1, %v9722_v1 }
  0x4c   : > { %307 = vst.msk [vmem:[#allocation2 + $0x1c0] sm:$0xff] %vm250_vm1, %v9722_v1 }
  0x4d   : > { %308 = vst.msk [vmem:[#allocation2 + $0x1c8] sm:$0xff] %vm250_vm1, %v9722_v1 }
  0x4e   : > { %309 = vst.msk [vmem:[#allocation2 + $0x1d0] sm:$0xff] %vm250_vm1, %v9722_v1 }
  0x4f   : > { %310 = vst.msk [vmem:[#allocation2 + $0x1d8] sm:$0xff] %vm250_vm1, %v9722_v1 }
  0x50   : > { %311 = vst.msk [vmem:[#allocation2 + $0x1e0] sm:$0xff] %vm250_vm1, %v9722_v1 }
  0x51   : > { %312 = vst.msk [vmem:[#allocation2 + $0x1e8] sm:$0xff] %vm250_vm1, %v9722_v1 }
  0x52   : > { %313 = vst.msk [vmem:[#allocation2 + $0x1f0] sm:$0xff] %vm250_vm1, %v9722_v1 }
  0x53   : > { %314 = vst.msk [vmem:[#allocation2 + $0x1f8] sm:$0xff] %vm250_vm1, %v9722_v1 }
  0x54   : > { %315 = vst.msk [vmem:[#allocation2 + $0x200] sm:$0xff] %vm250_vm1, %v9722_v1 }
  0x55   : > { %316 = vst.msk [vmem:[#allocation2 + $0x208] sm:$0xff] %vm250_vm1, %v9722_v1 }
  0x56   : > { %317 = vst.msk [vmem:[#allocation2 + $0x210] sm:$0xff] %vm250_vm1, %v9722_v1 }
  0x57   : > { %318 = vst.msk [vmem:[#allocation2 + $0x218] sm:$0xff] %vm250_vm1, %v9722_v1 }
  0x58   : > { %319 = vst.msk [vmem:[#allocation2 + $0x220] sm:$0xff] %vm250_vm1, %v9722_v1 }
  0x59   : > { %320 = vst.msk [vmem:[#allocation2 + $0x228] sm:$0xff] %vm250_vm1, %v9722_v1 }
  0x5a   : > { %321 = vst.msk [vmem:[#allocation2 + $0x230] sm:$0xff] %vm250_vm1, %v9722_v1 }
  0x5b   : > { %322 = vst.msk [vmem:[#allocation2 + $0x238] sm:$0xff] %vm250_vm1, %v9722_v1 }
  0x5c   : > { %374 = vst.msk [vmem:[#allocation2 + $0x148] sm:$0xff] %vm250_vm1, %v341_v7 }
  0x5d   : > { %378 = vst.msk [vmem:[#allocation2 + $0x188] sm:$0xff] %vm250_vm1, %v345_v8 }
  0x5e   : > { %375 = vst.msk [vmem:[#allocation2 + $0x150] sm:$0xff] %vm250_vm1, %v342_v9 }
  0x5f   : > { %379 = vst.msk [vmem:[#allocation2 + $0x190] sm:$0xff] %vm250_vm1, %v346_v10  ;;  %v336_v10 = vld [vmem:[%s6740_s17 + $0x68] sm:$0xff] }
  0x60   : > { %356 = vst.msk [vmem:[#allocation2 + $0x28] sm:$0xff] %vm250_vm1, %v323_v11 }
  0x61   : > { %376 = vst.msk [vmem:[#allocation2 + $0x168] sm:$0xff] %vm250_vm1, %v343_v13 }
  0x62   : > { %380 = vst.msk [vmem:[#allocation2 + $0x1a8] sm:$0xff] %vm250_vm1, %v347_v14 }
  0x63   : > { %v6773_v18 = vld [vmem:[#allocation2 + $0x148] sm:$0xff]  ;;  %357 = vst.msk [vmem:[#allocation2 + $0x30] sm:$0xff] %vm250_vm1, %v324_v15  ;;  %v337_v15 = vld [vmem:[%s6740_s17 + $0x70] sm:$0xff] }
  0x64   : > { %5820 = vmatmul.msk.f32.vlgmr.msra.gmra.mxu2 %vm250_vm1, %v6773_v18  ;;  %v445_v20 = vld [vmem:[#allocation2 + $0x188] sm:$0xff]  ;;  %377 = vst.msk [vmem:[#allocation2 + $0x170] sm:$0xff] %vm250_vm1, %v344_v16 }
  0x65   : > { %5824 = vmatmul.msk.f32.vlgmr.msra.gmra.mxu3 %vm250_vm1, %v445_v20  ;;  %381 = vst.msk [vmem:[#allocation2 + $0x1b0] sm:$0xff] %vm250_vm1, %v348_v17  ;;  %v6797_v27 = vld [vmem:[#allocation2 + $0x150] sm:$0xff]  ;;  %v6898_v2 = vld [vmem:[#allocation2 + $0x147] sm:$0xff] }
  0x66   : > { %358 = vst.msk [vmem:[#allocation2 + $0x48] sm:$0xff] %vm250_vm1, %v325_v19  ;;  %v446_v28 = vld [vmem:[#allocation2 + $0x190] sm:$0xff] }
  0x67   : > { %v6786_v24 = vld [vmem:[#allocation2 + $0x28] sm:$0xff]  ;;  %382 = vst.msk [vmem:[#allocation2 + $0x1c8] sm:$0xff] %vm250_vm1, %v349_v21  ;;  %v338_v21 = vld [vmem:[%s6740_s17 + $0x78] sm:$0xff] }
  0x68   : > { %v6788_v25 = vld [vmem:[#allocation2 + $0x27] sm:$0xff]  ;;  %5802 = vmatmul.msk.f32.gmra.mxu0 %vm250_vm1, %v6786_v24  ;;  %359 = vst.msk [vmem:[#allocation2 + $0x50] sm:$0xff] %vm250_vm1, %v326_v22  ;;  %v6916_v7 = vld [vmem:[#allocation2 + $0x14f] sm:$0xff] }
  0x69   : > { %5835 = vmatmul.msk.f32.gmra.mxu1 %vm250_vm1, %v6788_v25  ;;  %383 = vst.msk [vmem:[#allocation2 + $0x1d0] sm:$0xff] %vm250_vm1, %v350_v23  ;;  %v443_v33 = vld [vmem:[#allocation2 + $0x168] sm:$0xff] }
  0x6a   : > { %360 = vst.msk [vmem:[#allocation2 + $0x68] sm:$0xff] %vm250_vm1, %v327_v26  ;;  %v6805_v30 = vld [vmem:[#allocation2 + $0x30] sm:$0xff]  ;;  %v447_v34 = vld [vmem:[#allocation2 + $0x1a8] sm:$0xff] }
  0x6b   : > { %v6807_v31 = vld [vmem:[#allocation2 + $0x2f] sm:$0xff]  ;;  %384 = vst.msk [vmem:[#allocation2 + $0x1e8] sm:$0xff] %vm250_vm1, %v351_v29  ;;  %v6934_v12 = vld [vmem:[#allocation2 + $0x167] sm:$0xff] }
  0x6c   : > { %5821 = vmatmul.msk.f32.gmra.mxu2 %vm250_vm1, %v6797_v27  ;;  %361 = vst.msk [vmem:[#allocation2 + $0x70] sm:$0xff] %vm250_vm1, %v328_v32  ;;  %v444_v39 = vld [vmem:[#allocation2 + $0x170] sm:$0xff]  ;;  %v6970_v23 = vld [vmem:[#allocation2 + $0x187] sm:$0xff] }
  0x6d   : > { %5825 = vmatmul.msk.f32.gmra.mxu3 %vm250_vm1, %v446_v28  ;;  %v6818_v35 = vld [vmem:[#allocation2 + $0x48] sm:$0xff]  ;;  %385 = vst.msk [vmem:[#allocation2 + $0x1f0] sm:$0xff] %vm250_vm1, %v352_v37  ;;  %v448_v40 = vld [vmem:[#allocation2 + $0x1b0] sm:$0xff]  ;;  %v339_v29 = vld [vmem:[%s6740_s17 + $0x80] sm:$0xff] }
  0x6e   : > { %v6820_v36 = vld [vmem:[#allocation2 + $0x47] sm:$0xff]  ;;  %362 = vst.msk [vmem:[#allocation2 + $0x88] sm:$0xff] %vm250_vm1, %v329_v38  ;;  %v6881_v59 = vld [vmem:[#allocation2 + $0x31] sm:$0xff] }
  0x6f   : > { %v6832_v41 = vld [vmem:[#allocation2 + $0x50] sm:$0xff]  ;;  %363 = vst.msk [vmem:[#allocation2 + $0x90] sm:$0xff] %vm250_vm1, %v330_v43  ;;  %v449_v45 = vld [vmem:[#allocation2 + $0x1c8] sm:$0xff] }
  0x70   : > { %5803 = vmatmul.msk.f32.gmra.mxu0 %vm250_vm1, %v6805_v30  ;;  %v6834_v42 = vld [vmem:[#allocation2 + $0x4f] sm:$0xff]  ;;  %364 = vst.msk [vmem:[#allocation2 + $0xa8] sm:$0xff] %vm250_vm1, %v331_v48 }
  0x71   : > { %5836 = vmatmul.msk.f32.gmra.mxu1 %vm250_vm1, %v6807_v31  ;;  %v6844_v46 = vld [vmem:[#allocation2 + $0x68] sm:$0xff]  ;;  %v450_v50 = vld [vmem:[#allocation2 + $0x1d0] sm:$0xff]  ;;  %365 = vst.msk [vmem:[#allocation2 + $0xb0] sm:$0xff] %vm250_vm1, %v332_v53 }
  0x72   : > { %v6846_v47 = vld [vmem:[#allocation2 + $0x67] sm:$0xff]  ;;  %366 = vst.msk [vmem:[#allocation2 + $0xc8] sm:$0xff] %vm250_vm1, %v333_v58  ;;  %v6914_v6 = vld [vmem:[#allocation2 + $0x51] sm:$0xff] }
  0x73   : > { %v6856_v51 = vld [vmem:[#allocation2 + $0x70] sm:$0xff]  ;;  %v451_v55 = vld [vmem:[#allocation2 + $0x1e8] sm:$0xff]  ;;  %367 = vst.msk [vmem:[#allocation2 + $0xd0] sm:$0xff] %vm250_vm1, %v334_v63 }
  0x74   : > { %5822 = vmatmul.msk.f32.gmra.mxu2 %vm250_vm1, %v443_v33  ;;  %v6858_v52 = vld [vmem:[#allocation2 + $0x6f] sm:$0xff]  ;;  %9752 = vst [vmem:[#allocation7_spill] sm:$0xff] %v6898_v2 }
  0x75   : > { %5826 = vmatmul.msk.f32.gmra.mxu3 %vm250_vm1, %v447_v34  ;;  %v6866_v54 = vld [vmem:[#allocation2 + $0x29] sm:$0xff]  ;;  %368 = vst.msk [vmem:[#allocation2 + $0xe8] sm:$0xff] %vm250_vm1, %v335_v5  ;;  %v6950_v16 = vld [vmem:[#allocation2 + $0x71] sm:$0xff] }
  0x76   : > { %v6871_v56 = vld [vmem:[#allocation2 + $0x88] sm:$0xff]  ;;  %v452_v60 = vld [vmem:[#allocation2 + $0x1f0] sm:$0xff]  ;;  %9753 = vst [vmem:[#allocation8_spill] sm:$0xff] %v6916_v7 }
  0x77   : > { %v6873_v57 = vld [vmem:[#allocation2 + $0x87] sm:$0xff]  ;;  %v6886_v61 = vld [vmem:[#allocation2 + $0x90] sm:$0xff]  ;;  %369 = vst.msk [vmem:[#allocation2 + $0xf0] sm:$0xff] %vm250_vm1, %v336_v10 }
  0x78   : > { %5804 = vmatmul.msk.f32.gmra.mxu0 %vm250_vm1, %v6818_v35  ;;  %v6888_v62 = vld [vmem:[#allocation2 + $0x8f] sm:$0xff]  ;;  %v6906_v4 = vld [vmem:[#allocation2 + $0xa7] sm:$0xff]  ;;  %9754 = vst [vmem:[#allocation9_spill] sm:$0xff] %v6934_v12 }
  0x79   : > { %5837 = vmatmul.msk.f32.gmra.mxu1 %vm250_vm1, %v6820_v36  ;;  %v6896_v0 = vld [vmem:[#allocation2 + $0x49] sm:$0xff]  ;;  %370 = vst.msk [vmem:[#allocation2 + $0x108] sm:$0xff] %vm250_vm1, %v337_v15  ;;  %v6986_v32 = vld [vmem:[#allocation2 + $0x91] sm:$0xff] }
  0x7a   : > { %v6904_v3 = vld [vmem:[#allocation2 + $0xa8] sm:$0xff]  ;;  %v6922_v8 = vld [vmem:[#allocation2 + $0xb0] sm:$0xff]  ;;  %371 = vst.msk [vmem:[#allocation2 + $0x110] sm:$0xff] %vm250_vm1, %v338_v21 }
  0x7b   : > { %v6924_v9 = vld [vmem:[#allocation2 + $0xaf] sm:$0xff]  ;;  %v6942_v14 = vld [vmem:[#allocation2 + $0xc7] sm:$0xff]  ;;  %9756 = vst [vmem:[#allocation11_spill] sm:$0xff] %v6970_v23 }
  0x7c   : > { %5823 = vmatmul.msk.f32.gmra.mxu2 %vm250_vm1, %v444_v39  ;;  %v6932_v11 = vld [vmem:[#allocation2 + $0x69] sm:$0xff]  ;;  %372 = vst.msk [vmem:[#allocation2 + $0x128] sm:$0xff] %vm250_vm1, %v339_v29 }
  0x7d   : > { %5827 = vmatmul.msk.f32.gmra.mxu3 %vm250_vm1, %v448_v40  ;;  %v6940_v13 = vld [vmem:[#allocation2 + $0xc8] sm:$0xff]  ;;  %v6958_v19 = vld [vmem:[#allocation2 + $0xd0] sm:$0xff] }
  0x7e   : > { %v6952_v17 = vld [vmem:[#allocation2 + $0x16f] sm:$0xff]  ;;  %v6978_v28 = vld [vmem:[#allocation2 + $0xe7] sm:$0xff] }
  0x7f   : > { %9755 = vst [vmem:[#allocation10_spill] sm:$0xff] %v6952_v17  ;;  %v6960_v20 = vld [vmem:[#allocation2 + $0xcf] sm:$0xff]  ;;  %v7054_v15 = vld [vmem:[#allocation2 + $0x1c7] sm:$0xff] }
  0x80   : > { %5805 = vmatmul.msk.f32.gmra.mxu0 %vm250_vm1, %v6832_v41  ;;  %v6968_v22 = vld [vmem:[#allocation2 + $0x89] sm:$0xff]  ;;  %9761 = vst [vmem:[#allocation16_spill] sm:$0xff] %v7054_v15 }
  0x81   : > { %5838 = vmatmul.msk.f32.gmra.mxu1 %vm250_vm1, %v6834_v42  ;;  %v6976_v26 = vld [vmem:[#allocation2 + $0xe8] sm:$0xff]  ;;  %v6994_v34 = vld [vmem:[#allocation2 + $0xf0] sm:$0xff] }
  0x82   : > { %v6988_v33 = vld [vmem:[#allocation2 + $0x18f] sm:$0xff]  ;;  %v7018_v48 = vld [vmem:[#allocation2 + $0x107] sm:$0xff] }
  0x83   : > { %9757 = vst [vmem:[#allocation12_spill] sm:$0xff] %v6988_v33  ;;  %v6996_v37 = vld [vmem:[#allocation2 + $0xef] sm:$0xff] }
  0x84   : > { %5866 = vmatmul.msk.f32.vlgmr.msrb.gmra.mxu2 %vm250_vm1, %v879_v44  ;;  %v340_v38 = vld [vmem:[%s6740_s17 + $0x88] sm:$0xff]  ;;  %v7036_v58 = vld [vmem:[#allocation2 + $0x110] sm:$0xff] }
  0x85   : > { %5828 = vmatmul.msk.f32.gmra.mxu3 %vm250_vm1, %v449_v45  ;;  %373 = vst.msk [vmem:[#allocation2 + $0x130] sm:$0xff] %vm250_vm1, %v340_v38  ;;  %v7004_v39 = vld [vmem:[#allocation2 + $0xa9] sm:$0xff] }
  0x86   : > { %v7010_v44 = vld [vmem:[#allocation2 + $0x1a7] sm:$0xff]  ;;  %v1465_v63 = vld [vmem:[%s9716_s1 + $0x10] sm:$0xf] }
  0x87   : > { %9758 = vst [vmem:[#allocation13_spill] sm:$0xff] %v7010_v44  ;;  %v7016_v45 = vld [vmem:[#allocation2 + $0x108] sm:$0xff]  ;;  %5931 = vmatpush.msk.msrb.mxu0 %vm550_vm0, %v1465_v63 }
  0x88   : > { %5806 = vmatmul.msk.f32.gmra.mxu0 %vm250_vm1, %v6844_v46  ;;  %v1188_v5 = vld [vmem:[%s9716_s1 + $0xc] sm:$0xf] }
  0x89   : > { %5839 = vmatmul.msk.f32.gmra.mxu1 %vm250_vm1, %v6846_v47  ;;  %v7051_v10 = vld [vmem:[#allocation2 + $0xc9] sm:$0xff]  ;;  %5898 = vmatpush.msk.msra.mxu3 %vm550_vm0, %v1188_v5  ;;  %v7076_v5 = vld [vmem:[#allocation2 + $0xd1] sm:$0xff] }
  0x8a   : > { %v7062_v29 = vld [vmem:[#allocation2 + $0x128] sm:$0xff] }
  0x8b   : > { %v7066_v63 = vld [vmem:[#allocation2 + $0x127] sm:$0xff] }
  0x8c   : > { %5867 = vmatmul.msk.f32.gmra.mxu2 %vm250_vm1, %v880_v49  ;;  %v7024_v49 = vld [vmem:[#allocation2 + $0xb1] sm:$0xff] }
  0x8d   : > { %5829 = vmatmul.msk.f32.gmra.mxu3 %vm250_vm1, %v450_v50  ;;  %v7026_v50 = vld [vmem:[#allocation2 + $0x1af] sm:$0xff] }
  0x8e   : > { %9759 = vst [vmem:[#allocation14_spill] sm:$0xff] %v7026_v50 }
  0x90   : > { %5807 = vmatmul.msk.f32.gmra.mxu0 %vm250_vm1, %v6856_v51 }
  0x91   : > { %5840 = vmatmul.msk.f32.gmra.mxu1 %vm250_vm1, %v6858_v52 }
  0x94   : > { %5868 = vmatmul.msk.f32.gmra.mxu2 %vm250_vm1, %v6866_v54 }
  0x95   : > { %5830 = vmatmul.msk.f32.gmra.mxu3 %vm250_vm1, %v451_v55 }
  0x98   : > { %5808 = vmatmul.msk.f32.gmra.mxu0 %vm250_vm1, %v6871_v56 }
  0x99   : > { %5841 = vmatmul.msk.f32.gmra.mxu1 %vm250_vm1, %v6873_v57  ;;  %v7006_v40 = vpop.f32.mrf.mxu0 }
  0x9a   : > { %v7008_v43 = vpop.f32.mrf.mxu1 }
  0x9c   : > { %5869 = vmatmul.msk.f32.gmra.mxu2 %vm250_vm1, %v6881_v59 }
  0x9d   : > { %5831 = vmatmul.msk.f32.gmra.mxu3 %vm250_vm1, %v452_v60  ;;  %v7038_v60 = vld [vmem:[#allocation2 + $0x10f] sm:$0xff] }
  0x9e   : > { %9760 = vst [vmem:[#allocation15_spill] sm:$0xff] %v7038_v60 }
  0xa0   : > { %5809 = vmatmul.msk.f32.gmra.mxu0 %vm250_vm1, %v6886_v61 }
  0xa1   : > { %5842 = vmatmul.msk.f32.gmra.mxu1 %vm250_vm1, %v6888_v62  ;;  %v7028_v53 = vpop.f32.mrf.mxu0 }
  0xa2   : > { %v7030_v55 = vpop.f32.mrf.mxu1 }
  0xa4   : > { %5870 = vmatmul.msk.f32.gmra.mxu2 %vm250_vm1, %v6896_v0 }
  0xa5   : > { %5853 = vmatmul.msk.f32.vlgmr.msrb.gmra.mxu3 %vm250_vm1, %v6898_v2 }
  0xa8   : > { %5810 = vmatmul.msk.f32.gmra.mxu0 %vm250_vm1, %v6904_v3 }
  0xa9   : > { %5843 = vmatmul.msk.f32.gmra.mxu1 %vm250_vm1, %v6906_v4 }
  0xac   : > { %5871 = vmatmul.msk.f32.gmra.mxu2 %vm250_vm1, %v6914_v6 }
  0xad   : > { %5854 = vmatmul.msk.f32.gmra.mxu3 %vm250_vm1, %v6916_v7 }
  0xb0   : > { %5811 = vmatmul.msk.f32.gmra.mxu0 %vm250_vm1, %v6922_v8 }
  0xb1   : > { %5844 = vmatmul.msk.f32.gmra.mxu1 %vm250_vm1, %v6924_v9 }
  0xb4   : > { %5872 = vmatmul.msk.f32.gmra.mxu2 %vm250_vm1, %v6932_v11 }
  0xb5   : > { %5855 = vmatmul.msk.f32.gmra.mxu3 %vm250_vm1, %v6934_v12 }
  0xb8   : > { %5812 = vmatmul.msk.f32.gmra.mxu0 %vm250_vm1, %v6940_v13 }
  0xb9   : > { %5845 = vmatmul.msk.f32.gmra.mxu1 %vm250_vm1, %v6942_v14 }
  0xbc   : > { %5873 = vmatmul.msk.f32.gmra.mxu2 %vm250_vm1, %v6950_v16 }
  0xbd   : > { %5856 = vmatmul.msk.f32.gmra.mxu3 %vm250_vm1, %v6952_v17  ;;  %v1742_v17 = vld [vmem:[%s9716_s1 + $0x14] sm:$0xf] }
  0xbe   : > { %5964 = vmatpush.msk.msrb.mxu1 %vm550_vm0, %v1742_v17 }
  0xc0   : > { %5813 = vmatmul.msk.f32.gmra.mxu0 %vm250_vm1, %v6958_v19 }
  0xc1   : > { %5846 = vmatmul.msk.f32.gmra.mxu1 %vm250_vm1, %v6960_v20 }
  0xc4   : > { %5874 = vmatmul.msk.f32.gmra.mxu2 %vm250_vm1, %v6968_v22 }
  0xc5   : > { %5857 = vmatmul.msk.f32.gmra.mxu3 %vm250_vm1, %v6970_v23  ;;  %v7090_v23 = vld [vmem:[#allocation2 + $0x12f] sm:$0xff] }
  0xc8   : > { %5814 = vmatmul.msk.f32.gmra.mxu0 %vm250_vm1, %v6976_v26 }
  0xc9   : > { %5847 = vmatmul.msk.f32.gmra.mxu1 %vm250_vm1, %v6978_v28 }
  0xcc   : > { %5875 = vmatmul.msk.f32.gmra.mxu2 %vm250_vm1, %v6986_v32 }
  0xcd   : > { %5858 = vmatmul.msk.f32.gmra.mxu3 %vm250_vm1, %v6988_v33  ;;  %v7086_v33 = vld [vmem:[#allocation2 + $0x130] sm:$0xff] }
  0xd0   : > { %5815 = vmatmul.msk.f32.gmra.mxu0 %vm250_vm1, %v6994_v34 }
  0xd1   : > { %5848 = vmatmul.msk.f32.gmra.mxu1 %vm250_vm1, %v6996_v37 }
  0xd4   : > { %5876 = vmatmul.msk.f32.gmra.mxu2 %vm250_vm1, %v7004_v39 }
  0xd5   : > { %5859 = vmatmul.msk.f32.gmra.mxu3 %vm250_vm1, %v7010_v44 }
  0xd8   : > { %5816 = vmatmul.msk.f32.gmra.mxu0 %vm250_vm1, %v7016_v45 }
  0xd9   : > { %5849 = vmatmul.msk.f32.gmra.mxu1 %vm250_vm1, %v7018_v48 }
  0xdc   : > { %5877 = vmatmul.msk.f32.gmra.mxu2 %vm250_vm1, %v7024_v49 }
  0xdd   : > { %5860 = vmatmul.msk.f32.gmra.mxu3 %vm250_vm1, %v7026_v50 }
  0xe0   : > { %5817 = vmatmul.msk.f32.gmra.mxu0 %vm250_vm1, %v7036_v58 }
  0xe1   : > { %5850 = vmatmul.msk.f32.gmra.mxu1 %vm250_vm1, %v7038_v60 }
  0xe4   : > { %5878 = vmatmul.msk.f32.gmra.mxu2 %vm250_vm1, %v7051_v10 }
  0xe5   : > { %5861 = vmatmul.msk.f32.gmra.mxu3 %vm250_vm1, %v7054_v15  ;;  %v7060_v21 = vpop.f32.mrf.mxu0  ;;  %v7078_v15 = vld [vmem:[#allocation2 + $0x1cf] sm:$0xff] }
  0xe6   : > { %9762 = vst [vmem:[#allocation17_spill] sm:$0xff] %v7060_v21  ;;  %v7064_v38 = vpop.f32.mrf.mxu1  ;;  %v7126_v21 = vld [vmem:[#allocation2 + $0x1ef] sm:$0xff] }
  0xe7   : > { %9763 = vst [vmem:[#allocation18_spill] sm:$0xff] %v7064_v38  ;;  %v7068_v1 = vpop.f32.mrf.mxu2  ;;  %v7124_v38 = vld [vmem:[#allocation2 + $0xf1] sm:$0xff] }
  0xe8   : > { %v7070_v50 = vpop.f32.mrf.mxu3  ;;  %5818 = vmatmul.msk.f32.gmra.mxu0 %vm250_vm1, %v7062_v29  ;;  %9765 = vst [vmem:[#allocation20_spill] sm:$0xff] %v7078_v15 }
  0xe9   : > { %9764 = vst [vmem:[#allocation19_spill] sm:$0xff] %v7070_v50  ;;  %5851 = vmatmul.msk.f32.gmra.mxu1 %vm250_vm1, %v7066_v63 }
  0xea   : > { %9772 = vst [vmem:[#allocation27_spill] sm:$0xff] %v7126_v21 }
  0xec   : > { %5879 = vmatmul.msk.f32.gmra.mxu2 %vm250_vm1, %v7076_v5 }
  0xed   : > { %5862 = vmatmul.msk.f32.gmra.mxu3 %vm250_vm1, %v7078_v15  ;;  %v7084_v44 = vpop.f32.mrf.mxu0  ;;  %v7104_v15 = vld [vmem:[#allocation2 + $0xe9] sm:$0xff] }
  0xee   : > { %9766 = vst [vmem:[#allocation21_spill] sm:$0xff] %v7084_v44  ;;  %v7088_v50 = vpop.f32.mrf.mxu1 }
  0xef   : > { %9767 = vst [vmem:[#allocation22_spill] sm:$0xff] %v7088_v50  ;;  %v7096_v12 = vpop.f32.mrf.mxu2  ;;  %v7106_v50 = vld [vmem:[#allocation2 + $0x1e7] sm:$0xff] }
  0xf0   : > { %v7098_v7 = vpop.f32.mrf.mxu3  ;;  %5819 = vmatmul.msk.f32.gmra.mxu0 %vm250_vm1, %v7086_v33  ;;  %9769 = vst [vmem:[#allocation24_spill] sm:$0xff] %v7106_v50 }
  0xf1   : > { %9768 = vst [vmem:[#allocation23_spill] sm:$0xff] %v7098_v7  ;;  %5852 = vmatmul.msk.f32.gmra.mxu1 %vm250_vm1, %v7090_v23 }
  0xf4   : > { %5880 = vmatmul.msk.f32.gmra.mxu2 %vm250_vm1, %v7104_v15 }
  0xf5   : > { %5863 = vmatmul.msk.f32.gmra.mxu3 %vm250_vm1, %v7106_v50  ;;  %v7112_v17 = vpop.f32.mrf.mxu0 }
  0xf6   : > { %v7114_v44 = vpop.f32.mrf.mxu1 }
  0xf7   : > { %9770 = vst [vmem:[#allocation25_spill] sm:$0xff] %v7114_v44  ;;  %v7116_v7 = vpop.f32.mrf.mxu2 }
  0xf8   : > { %v7118_v2 = vpop.f32.mrf.mxu3  ;;  %5932 = vmatmul.msk.f32.vlgmr.msrb.gmra.mxu0 %vm250_vm1, %v6786_v24 }
  0xf9   : > { %9771 = vst [vmem:[#allocation26_spill] sm:$0xff] %v7118_v2  ;;  %5965 = vmatmul.msk.f32.vlgmr.msrb.gmra.mxu1 %vm250_vm1, %v6866_v54  ;;  %v7144_v54 = vld [vmem:[#allocation2 + $0x109] sm:$0xff] }
  0xfc   : > { %5881 = vmatmul.msk.f32.gmra.mxu2 %vm250_vm1, %v7124_v38 }
  0xfd   : > { %5864 = vmatmul.msk.f32.gmra.mxu3 %vm250_vm1, %v7126_v21  ;;  %v7132_v50 = vpop.f32.mrf.mxu0 }
  0xfe   : > { %9773 = vst [vmem:[#allocation28_spill] sm:$0xff] %v7132_v50  ;;  %v7134_v44 = vpop.f32.mrf.mxu1 }
  0xff   : > { %9774 = vst [vmem:[#allocation29_spill] sm:$0xff] %v7134_v44  ;;  %v7136_v2 = vpop.f32.mrf.mxu2 }
 0x100   : > { %v7138_v24 = vpop.f32.mrf.mxu3  ;;  %5933 = vmatmul.msk.f32.gmra.mxu0 %vm250_vm1, %v6805_v30  ;;  %v7162_v30 = vld [vmem:[#allocation2 + $0x111] sm:$0xff] }
 0x101   : > { %9775 = vst [vmem:[#allocation30_spill] sm:$0xff] %v7138_v24  ;;  %5966 = vmatmul.msk.f32.gmra.mxu1 %vm250_vm1, %v6881_v59 }
 0x104   : > { %5882 = vmatmul.msk.f32.gmra.mxu2 %vm250_vm1, %v7144_v54 }
 0x105   : > { %5899 = vmatmul.msk.f32.vlgmr.msra.gmra.mxu3 %vm250_vm1, %v6788_v25  ;;  %v7150_v21 = vpop.f32.mrf.mxu0 }
 0x106   : > { %v7152_v44 = vpop.f32.mrf.mxu1 }
 0x107   : > { %9776 = vst [vmem:[#allocation31_spill] sm:$0xff] %v7152_v44  ;;  %v7154_v50 = vpop.f32.mrf.mxu2 }
 0x108   : > { %v7156_v24 = vpop.f32.mrf.mxu3  ;;  %5934 = vmatmul.msk.f32.gmra.mxu0 %vm250_vm1, %v6818_v35  ;;  %v7180_v35 = vld [vmem:[#allocation2 + $0x129] sm:$0xff] }
 0x109   : > { %9777 = vst [vmem:[#allocation32_spill] sm:$0xff] %v7156_v24  ;;  %5967 = vmatmul.msk.f32.gmra.mxu1 %vm250_vm1, %v6896_v0 }
 0x10c   : > { %5883 = vmatmul.msk.f32.gmra.mxu2 %vm250_vm1, %v7162_v30 }
 0x10d   : > { %5900 = vmatmul.msk.f32.gmra.mxu3 %vm250_vm1, %v6807_v31  ;;  %v7168_v25 = vpop.f32.mrf.mxu0 }
 0x10e   : > { %9778 = vst [vmem:[#allocation33_spill] sm:$0xff] %v7168_v25  ;;  %v7170_v59 = vpop.f32.mrf.mxu1 }
 0x10f   : > { %9779 = vst [vmem:[#allocation34_spill] sm:$0xff] %v7170_v59  ;;  %v7172_v44 = vpop.f32.mrf.mxu2 }
 0x110   : > { %v7174_v24 = vpop.f32.mrf.mxu3  ;;  %5935 = vmatmul.msk.f32.gmra.mxu0 %vm250_vm1, %v6832_v41  ;;  %v7198_v41 = vld [vmem:[#allocation2 + $0x131] sm:$0xff] }
 0x111   : > { %9780 = vst [vmem:[#allocation35_spill] sm:$0xff] %v7174_v24  ;;  %5968 = vmatmul.msk.f32.gmra.mxu1 %vm250_vm1, %v6914_v6 }
 0x114   : > { %5884 = vmatmul.msk.f32.gmra.mxu2 %vm250_vm1, %v7180_v35 }
 0x115   : > { %5901 = vmatmul.msk.f32.gmra.mxu3 %vm250_vm1, %v6820_v36  ;;  %v7186_v31 = vpop.f32.mrf.mxu0 }
 0x116   : > { %9781 = vst [vmem:[#allocation36_spill] sm:$0xff] %v7186_v31  ;;  %v7188_v0 = vpop.f32.mrf.mxu1 }
 0x117   : > { %9782 = vst [vmem:[#allocation37_spill] sm:$0xff] %v7188_v0  ;;  %v7190_v59 = vpop.f32.mrf.mxu2 }
 0x118   : > { %v7192_v24 = vpop.f32.mrf.mxu3  ;;  %5936 = vmatmul.msk.f32.gmra.mxu0 %vm250_vm1, %v6844_v46  ;;  %v7216_v46 = vld [vmem:[#allocation2 + $0x149] sm:$0xff] }
 0x119   : > { %9783 = vst [vmem:[#allocation38_spill] sm:$0xff] %v7192_v24  ;;  %5969 = vmatmul.msk.f32.gmra.mxu1 %vm250_vm1, %v6932_v11 }
 0x11c   : > { %5885 = vmatmul.msk.f32.gmra.mxu2 %vm250_vm1, %v7198_v41 }
 0x11d   : > { %5902 = vmatmul.msk.f32.gmra.mxu3 %vm250_vm1, %v6834_v42  ;;  %v7204_v6 = vpop.f32.mrf.mxu0 }
 0x11e   : > { %9784 = vst [vmem:[#allocation39_spill] sm:$0xff] %v7204_v6  ;;  %v7206_v0 = vpop.f32.mrf.mxu1 }
 0x11f   : > { %9785 = vst [vmem:[#allocation40_spill] sm:$0xff] %v7206_v0  ;;  %v7208_v31 = vpop.f32.mrf.mxu2 }
 0x120   : > { %v7210_v24 = vpop.f32.mrf.mxu3  ;;  %5937 = vmatmul.msk.f32.gmra.mxu0 %vm250_vm1, %v6856_v51 }
 0x121   : > { %9786 = vst [vmem:[#allocation41_spill] sm:$0xff] %v7210_v24  ;;  %5970 = vmatmul.msk.f32.gmra.mxu1 %vm250_vm1, %v6950_v16  ;;  %v7235_v16 = vld [vmem:[#allocation2 + $0x151] sm:$0xff] }
 0x124   : > { %5886 = vmatmul.msk.f32.gmra.mxu2 %vm250_vm1, %v7216_v46 }
 0x125   : > { %5903 = vmatmul.msk.f32.gmra.mxu3 %vm250_vm1, %v6846_v47  ;;  %v7222_v11 = vpop.f32.mrf.mxu0 }
 0x126   : > { %9787 = vst [vmem:[#allocation42_spill] sm:$0xff] %v7222_v11  ;;  %v7224_v0 = vpop.f32.mrf.mxu1 }
 0x127   : > { %9788 = vst [vmem:[#allocation43_spill] sm:$0xff] %v7224_v0  ;;  %v7226_v6 = vpop.f32.mrf.mxu2 }
 0x128   : > { %v843_v24 = vpop.f32.mrf.mxu3  ;;  %5938 = vmatmul.msk.f32.gmra.mxu0 %vm250_vm1, %v6871_v56 }
 0x129   : > { %5971 = vmatmul.msk.f32.gmra.mxu1 %vm250_vm1, %v6968_v22  ;;  %v7233_v51 = vadd.f32 %v843_v24, %v7068_v1  ;;  %v7254_v22 = vld [vmem:[#allocation2 + $0x169] sm:$0xff] }
 0x12c   : > { %5887 = vmatmul.msk.f32.gmra.mxu2 %vm250_vm1, %v7235_v16 }
 0x12d   : > { %5904 = vmatmul.msk.f32.gmra.mxu3 %vm250_vm1, %v6858_v52  ;;  %v7241_v0 = vpop.f32.mrf.mxu0 }
 0x12e   : > { %9789 = vst [vmem:[#allocation44_spill] sm:$0xff] %v7241_v0  ;;  %v7243_v11 = vpop.f32.mrf.mxu1 }
 0x12f   : > { %9790 = vst [vmem:[#allocation45_spill] sm:$0xff] %v7243_v11  ;;  %v7245_v25 = vpop.f32.mrf.mxu2 }
 0x130   : > { %v846_v56 = vpop.f32.mrf.mxu3  ;;  %5939 = vmatmul.msk.f32.gmra.mxu0 %vm250_vm1, %v6886_v61 }
 0x131   : > { %5972 = vmatmul.msk.f32.gmra.mxu1 %vm250_vm1, %v6986_v32  ;;  %v7252_v1 = vadd.f32 %v846_v56, %v7096_v12  ;;  %v7273_v32 = vld [vmem:[#allocation2 + $0x171] sm:$0xff] }
 0x134   : > { %5888 = vmatmul.msk.f32.gmra.mxu2 %vm250_vm1, %v7254_v22 }
 0x135   : > { %5905 = vmatmul.msk.f32.gmra.mxu3 %vm250_vm1, %v6873_v57  ;;  %v7260_v24 = vpop.f32.mrf.mxu0 }
 0x136   : > { %9791 = vst [vmem:[#allocation46_spill] sm:$0xff] %v7260_v24  ;;  %v7262_v11 = vpop.f32.mrf.mxu1 }
 0x137   : > { %9792 = vst [vmem:[#allocation47_spill] sm:$0xff] %v7262_v11  ;;  %v7264_v0 = vpop.f32.mrf.mxu2 }
 0x138   : > { %v849_v61 = vpop.f32.mrf.mxu3  ;;  %5940 = vmatmul.msk.f32.gmra.mxu0 %vm250_vm1, %v6904_v3 }
 0x139   : > { %5973 = vmatmul.msk.f32.gmra.mxu1 %vm250_vm1, %v7004_v39  ;;  %v7271_v12 = vadd.f32 %v849_v61, %v7116_v7  ;;  %v7292_v39 = vld [vmem:[#allocation2 + $0x189] sm:$0xff] }
 0x13c   : > { %5889 = vmatmul.msk.f32.gmra.mxu2 %vm250_vm1, %v7273_v32 }
 0x13d   : > { %5906 = vmatmul.msk.f32.gmra.mxu3 %vm250_vm1, %v6888_v62  ;;  %v7279_v56 = vpop.f32.mrf.mxu0 }
 0x13e   : > { %9793 = vst [vmem:[#allocation48_spill] sm:$0xff] %v7279_v56  ;;  %v7281_v11 = vpop.f32.mrf.mxu1 }
 0x13f   : > { %9794 = vst [vmem:[#allocation49_spill] sm:$0xff] %v7281_v11  ;;  %v7283_v24 = vpop.f32.mrf.mxu2 }
 0x140   : > { %v852_v3 = vpop.f32.mrf.mxu3  ;;  %5941 = vmatmul.msk.f32.gmra.mxu0 %vm250_vm1, %v6922_v8 }
 0x141   : > { %5974 = vmatmul.msk.f32.gmra.mxu1 %vm250_vm1, %v7024_v49  ;;  %v7290_v7 = vadd.f32 %v852_v3, %v7136_v2  ;;  %v7310_v2 = vld [vmem:[#allocation2 + $0x191] sm:$0xff] }
 0x144   : > { %5890 = vmatmul.msk.f32.gmra.mxu2 %vm250_vm1, %v7292_v39 }
 0x145   : > { %5907 = vmatmul.msk.f32.gmra.mxu3 %vm250_vm1, %v6906_v4  ;;  %v7298_v61 = vpop.f32.mrf.mxu0 }
 0x146   : > { %9795 = vst [vmem:[#allocation50_spill] sm:$0xff] %v7298_v61  ;;  %v7300_v11 = vpop.f32.mrf.mxu1 }
 0x147   : > { %9796 = vst [vmem:[#allocation51_spill] sm:$0xff] %v7300_v11  ;;  %v7302_v56 = vpop.f32.mrf.mxu2 }
 0x148   : > { %v7304_v8 = vpop.f32.mrf.mxu3  ;;  %5942 = vmatmul.msk.f32.gmra.mxu0 %vm250_vm1, %v6940_v13  ;;  %v7328_v13 = vld [vmem:[#allocation2 + $0x1a9] sm:$0xff] }
 0x149   : > { %5975 = vmatmul.msk.f32.gmra.mxu1 %vm250_vm1, %v7051_v10 }
 0x14c   : > { %5891 = vmatmul.msk.f32.gmra.mxu2 %vm250_vm1, %v7310_v2 }
 0x14d   : > { %5908 = vmatmul.msk.f32.gmra.mxu3 %vm250_vm1, %v6924_v9  ;;  %v7316_v49 = vpop.f32.mrf.mxu0 }
 0x14e   : > { %9797 = vst [vmem:[#allocation52_spill] sm:$0xff] %v7316_v49  ;;  %v7318_v3 = vpop.f32.mrf.mxu1 }
 0x14f   : > { %9798 = vst [vmem:[#allocation53_spill] sm:$0xff] %v7318_v3  ;;  %v7320_v11 = vpop.f32.mrf.mxu2 }
 0x150   : > { %9799 = vst [vmem:[#allocation54_spill] sm:$0xff] %v7320_v11  ;;  %v7322_v61 = vpop.f32.mrf.mxu3  ;;  %5943 = vmatmul.msk.f32.gmra.mxu0 %vm250_vm1, %v6958_v19  ;;  %v7346_v19 = vld [vmem:[#allocation2 + $0x1b1] sm:$0xff] }
 0x151   : > { %5976 = vmatmul.msk.f32.gmra.mxu1 %vm250_vm1, %v7076_v5 }
 0x154   : > { %5892 = vmatmul.msk.f32.gmra.mxu2 %vm250_vm1, %v7328_v13 }
 0x155   : > { %5909 = vmatmul.msk.f32.gmra.mxu3 %vm250_vm1, %v6942_v14  ;;  %v7334_v10 = vpop.f32.mrf.mxu0 }
 0x156   : > { %9800 = vst [vmem:[#allocation55_spill] sm:$0xff] %v7334_v10  ;;  %v7336_v3 = vpop.f32.mrf.mxu1 }
 0x157   : > { %9801 = vst [vmem:[#allocation56_spill] sm:$0xff] %v7336_v3  ;;  %v7338_v49 = vpop.f32.mrf.mxu2 }
 0x158   : > { %9802 = vst [vmem:[#allocation57_spill] sm:$0xff] %v7338_v49  ;;  %v7340_v11 = vpop.f32.mrf.mxu3  ;;  %5944 = vmatmul.msk.f32.gmra.mxu0 %vm250_vm1, %v6976_v26  ;;  %v2020_v49 = vld [vmem:[%s9716_s1 + $0x18] sm:$0xf] }
 0x159   : > { %5977 = vmatmul.msk.f32.gmra.mxu1 %vm250_vm1, %v7104_v15  ;;  %v7364_v15 = vld [vmem:[#allocation2 + $0x1c9] sm:$0xff]  ;;  %5997 = vmatpush.msk.msra.mxu2 %vm550_vm0, %v2020_v49 }
 0x15c   : > { %5893 = vmatmul.msk.f32.gmra.mxu2 %vm250_vm1, %v7346_v19 }
 0x15d   : > { %5910 = vmatmul.msk.f32.gmra.mxu3 %vm250_vm1, %v6960_v20  ;;  %v7352_v5 = vpop.f32.mrf.mxu0 }
 0x15e   : > { %9803 = vst [vmem:[#allocation58_spill] sm:$0xff] %v7352_v5  ;;  %v7360_v26 = vpop.f32.mrf.mxu1 }
 0x15f   : > { %v7354_v3 = vpop.f32.mrf.mxu2  ;;  %9804 = vst [vmem:[#allocation59_spill] sm:$0xff] %v7360_v26 }
 0x160   : > { %v7356_v10 = vpop.f32.mrf.mxu3  ;;  %5945 = vmatmul.msk.f32.gmra.mxu0 %vm250_vm1, %v6994_v34 }
 0x161   : > { %5978 = vmatmul.msk.f32.gmra.mxu1 %vm250_vm1, %v7124_v38  ;;  %v7384_v38 = vld [vmem:[#allocation2 + $0x1d1] sm:$0xff] }
 0x164   : > { %5894 = vmatmul.msk.f32.gmra.mxu2 %vm250_vm1, %v7364_v15 }
 0x165   : > { %5911 = vmatmul.msk.f32.gmra.mxu3 %vm250_vm1, %v6978_v28  ;;  %v7374_v34 = vpop.f32.mrf.mxu0 }
 0x166   : > { %9805 = vst [vmem:[#allocation60_spill] sm:$0xff] %v7374_v34  ;;  %v7386_v49 = vpop.f32.mrf.mxu1 }
 0x167   : > { %v7376_v26 = vpop.f32.mrf.mxu2  ;;  %9808 = vst [vmem:[#allocation63_spill] sm:$0xff] %v7386_v49 }
 0x168   : > { %9806 = vst [vmem:[#allocation61_spill] sm:$0xff] %v7376_v26  ;;  %v7378_v5 = vpop.f32.mrf.mxu3  ;;  %5946 = vmatmul.msk.f32.gmra.mxu0 %vm250_vm1, %v7016_v45  ;;  %v7402_v45 = vld [vmem:[#allocation2 + $0x1e9] sm:$0xff] }
 0x169   : > { %9807 = vst [vmem:[#allocation62_spill] sm:$0xff] %v7378_v5  ;;  %5979 = vmatmul.msk.f32.gmra.mxu1 %vm250_vm1, %v7144_v54 }
 0x16c   : > { %5895 = vmatmul.msk.f32.gmra.mxu2 %vm250_vm1, %v7384_v38 }
 0x16d   : > { %5912 = vmatmul.msk.f32.gmra.mxu3 %vm250_vm1, %v6996_v37  ;;  %v7392_v34 = vpop.f32.mrf.mxu0 }
 0x16e   : > { %9809 = vst [vmem:[#allocation64_spill] sm:$0xff] %v7392_v34  ;;  %v7406_v54 = vpop.f32.mrf.mxu1 }
 0x16f   : > { %v7394_v26 = vpop.f32.mrf.mxu2  ;;  %9812 = vst [vmem:[#allocation67_spill] sm:$0xff] %v7406_v54 }
 0x170   : > { %9810 = vst [vmem:[#allocation65_spill] sm:$0xff] %v7394_v26  ;;  %v7396_v5 = vpop.f32.mrf.mxu3  ;;  %5947 = vmatmul.msk.f32.gmra.mxu0 %vm250_vm1, %v7036_v58  ;;  %v7418_v58 = vld [vmem:[#allocation2 + $0x1f1] sm:$0xff] }
 0x171   : > { %9811 = vst [vmem:[#allocation66_spill] sm:$0xff] %v7396_v5  ;;  %5980 = vmatmul.msk.f32.gmra.mxu1 %vm250_vm1, %v7162_v30 }
 0x174   : > { %5896 = vmatmul.msk.f32.gmra.mxu2 %vm250_vm1, %v7402_v45 }
 0x175   : > { %5913 = vmatmul.msk.f32.gmra.mxu3 %vm250_vm1, %v7018_v48  ;;  %v1582_v34 = vpop.f32.mrf.mxu0 }
 0x176   : > { %v1859_v30 = vpop.f32.mrf.mxu1 }
 0x177   : > { %v7410_v49 = vpop.f32.mrf.mxu2 }
 0x178   : > { %9813 = vst [vmem:[#allocation68_spill] sm:$0xff] %v7410_v49  ;;  %v7412_v26 = vpop.f32.mrf.mxu3  ;;  %5948 = vmatmul.msk.f32.gmra.mxu0 %vm250_vm1, %v7062_v29  ;;  %v784_v29 = vadd.f32 %v7008_v43, %v7006_v40  ;;  %v787_v40 = vadd.f32 %v7030_v55, %v7028_v53  ;;  %v9817_v55 = vld [vmem:[#allocation17_spill] sm:$0xff] }
 0x179   : > { %9814 = vst [vmem:[#allocation69_spill] sm:$0xff] %v7412_v26  ;;  %5981 = vmatmul.msk.f32.gmra.mxu1 %vm250_vm1, %v7180_v35 }
 0x17c   : > { %5897 = vmatmul.msk.f32.gmra.mxu2 %vm250_vm1, %v7418_v58 }
 0x17d   : > { %5914 = vmatmul.msk.f32.gmra.mxu3 %vm250_vm1, %v7038_v60  ;;  %v1585_v54 = vpop.f32.mrf.mxu0 }
 0x17e   : > { %v1862_v26 = vpop.f32.mrf.mxu1 }
 0x17f   : > { %v7424_v5 = vpop.f32.mrf.mxu2 }
 0x180   : > { %9815 = vst [vmem:[#allocation70_spill] sm:$0xff] %v7424_v5  ;;  %v7426_v49 = vpop.f32.mrf.mxu3  ;;  %5949 = vmatmul.msk.f32.gmra.mxu0 %vm250_vm1, %v7086_v33  ;;  %v1124_v5 = vadd.f32 %v7154_v50, %v784_v29 }
 0x181   : > { %9816 = vst [vmem:[#allocation71_spill] sm:$0xff] %v7426_v49  ;;  %5982 = vmatmul.msk.f32.gmra.mxu1 %vm250_vm1, %v7198_v41  ;;  %v1125_v41 = vadd.f32 %v7172_v44, %v787_v40  ;;  %v9819_v44 = vld [vmem:[#allocation7_spill] sm:$0xff] }
 0x184   : > { %5998 = vmatmul.msk.f32.vlgmr.msra.gmra.mxu2 %vm250_vm1, %v6820_v36 }
 0x185   : > { %5915 = vmatmul.msk.f32.gmra.mxu3 %vm250_vm1, %v7066_v63  ;;  %v1588_v35 = vpop.f32.mrf.mxu0 }
 0x187   : > { %v7439_v49 = vpop.f32.mrf.mxu2 }
 0x188   : > { %v1305_v60 = vpop.f32.mrf.mxu3  ;;  %5950 = vmatmul.msk.f32.gmra.mxu0 %vm250_vm1, %v6773_v18 }
 0x189   : > { %5983 = vmatmul.msk.f32.gmra.mxu1 %vm250_vm1, %v7216_v46  ;;  %v1401_v36 = vadd.f32 %v1305_v60, %v1124_v5  ;;  %v1865_v60 = vpop.f32.mrf.mxu1  ;;  %v9818_v46 = vld [vmem:[#allocation18_spill] sm:$0xff] }
 0x18a   : > { %v790_v5 = vadd.f32 %v9818_v46, %v9817_v55  ;;  %v1454_v55 = vld [vmem:[#allocation2 + $0x170] sm:$0xff] }
 0x18b   : > { %v1678_v33 = vadd.f32 %v1582_v34, %v1401_v36  ;;  %v1453_v36 = vld [vmem:[#allocation2 + $0x168] sm:$0xff] }
 0x18c   : > { %5999 = vmatmul.msk.f32.gmra.mxu2 %vm250_vm1, %v6834_v42 }
 0x18d   : > { %v7449_v43 = vadd.f32 %v1859_v30, %v1678_v33  ;;  %5916 = vmatmul.msk.f32.gmra.mxu3 %vm250_vm1, %v7090_v23  ;;  %v1591_v50 = vpop.f32.mrf.mxu0 }
 0x18f   : > { %v7454_v18 = vpop.f32.mrf.mxu2 }
 0x190   : > { %v1308_v29 = vpop.f32.mrf.mxu3  ;;  %5951 = vmatmul.msk.f32.gmra.mxu0 %vm250_vm1, %v6797_v27  ;;  %v1126_v27 = vadd.f32 %v7190_v59, %v790_v5  ;;  %v9822_v59 = vld [vmem:[#allocation8_spill] sm:$0xff] }
 0x191   : > { %5984 = vmatmul.msk.f32.gmra.mxu1 %vm250_vm1, %v7235_v16  ;;  %v1402_v42 = vadd.f32 %v1308_v29, %v1125_v41  ;;  %v9821_v41 = vld [vmem:[#allocation22_spill] sm:$0xff] }
 0x193   : > { %v1679_v53 = vadd.f32 %v1585_v54, %v1402_v42  ;;  %v1868_v54 = vpop.f32.mrf.mxu1 }
 0x194   : > { %6000 = vmatmul.msk.f32.gmra.mxu2 %vm250_vm1, %v6846_v47 }
 0x195   : > { %v7464_v34 = vadd.f32 %v1862_v26, %v1679_v53  ;;  %5917 = vmatmul.msk.f32.gmra.mxu3 %vm250_vm1, %v9819_v44  ;;  %v1594_v30 = vpop.f32.mrf.mxu0  ;;  %v9820_v26 = vld [vmem:[#allocation21_spill] sm:$0xff] }
 0x196   : > { %v793_v29 = vadd.f32 %v9821_v41, %v9820_v26  ;;  %v9823_v44 = vld [vmem:[#allocation25_spill] sm:$0xff] }
 0x197   : > { %v7469_v33 = vpop.f32.mrf.mxu2  ;;  %v9826_v41 = vld [vmem:[#allocation29_spill] sm:$0xff] }
 0x198   : > { %v1311_v16 = vpop.f32.mrf.mxu3  ;;  %5952 = vmatmul.msk.f32.gmra.mxu0 %vm250_vm1, %v1453_v36  ;;  %v1127_v46 = vadd.f32 %v7208_v31, %v793_v29  ;;  %v796_v36 = vadd.f32 %v9823_v44, %v7112_v17  ;;  %v9824_v31 = vld [vmem:[#allocation9_spill] sm:$0xff] }
 0x199   : > { %5985 = vmatmul.msk.f32.gmra.mxu1 %vm250_vm1, %v7254_v22  ;;  %v1403_v47 = vadd.f32 %v1311_v16, %v1126_v27 }
 0x19b   : > { %v1680_v40 = vadd.f32 %v1588_v35, %v1403_v47  ;;  %v1455_v47 = vld [vmem:[#allocation2 + $0x188] sm:$0xff] }
 0x19c   : > { %6001 = vmatmul.msk.f32.gmra.mxu2 %vm250_vm1, %v6858_v52 }
 0x19d   : > { %v7478_v42 = vadd.f32 %v1865_v60, %v1680_v40  ;;  %5918 = vmatmul.msk.f32.gmra.mxu3 %vm250_vm1, %v9822_v59  ;;  %v1597_v53 = vpop.f32.mrf.mxu0  ;;  %v1871_v60 = vpop.f32.mrf.mxu1  ;;  %v1128_v40 = vadd.f32 %v7226_v6, %v796_v36  ;;  %v9827_v6 = vld [vmem:[#allocation10_spill] sm:$0xff] }
 0x19f   : > { %v7483_v5 = vpop.f32.mrf.mxu2 }
 0x1a0   : > { %v1314_v22 = vpop.f32.mrf.mxu3  ;;  %5953 = vmatmul.msk.f32.gmra.mxu0 %vm250_vm1, %v1454_v55  ;;  %v1456_v55 = vld [vmem:[#allocation2 + $0x190] sm:$0xff] }
 0x1a1   : > { %5986 = vmatmul.msk.f32.gmra.mxu1 %vm250_vm1, %v7273_v32  ;;  %v1404_v52 = vadd.f32 %v1314_v22, %v1127_v46 }
 0x1a3   : > { %v1681_v35 = vadd.f32 %v1591_v50, %v1404_v52 }
 0x1a4   : > { %6002 = vmatmul.msk.f32.gmra.mxu2 %vm250_vm1, %v6873_v57 }
 0x1a5   : > { %v7492_v27 = vadd.f32 %v1868_v54, %v1681_v35  ;;  %5919 = vmatmul.msk.f32.gmra.mxu3 %vm250_vm1, %v9824_v31  ;;  %v1600_v16 = vpop.f32.mrf.mxu0  ;;  %v9825_v54 = vld [vmem:[#allocation28_spill] sm:$0xff]  ;;  %v1874_v46 = vpop.f32.mrf.mxu1 }
 0x1a6   : > { %v799_v29 = vadd.f32 %v9826_v41, %v9825_v54  ;;  %v1457_v31 = vld [vmem:[#allocation2 + $0x1a8] sm:$0xff]  ;;  %v1458_v41 = vld [vmem:[#allocation2 + $0x1b0] sm:$0xff] }
 0x1a7   : > { %v1088_v26 = vpop.f32.mrf.mxu2  ;;  %v9832_v54 = vld [vmem:[#allocation12_spill] sm:$0xff] }
 0x1a8   : > { %v7498_v32 = vadd.f32 %v1088_v26, %v7233_v51  ;;  %v1317_v50 = vpop.f32.mrf.mxu3  ;;  %5954 = vmatmul.msk.f32.gmra.mxu0 %vm250_vm1, %v1455_v47  ;;  %v1129_v22 = vadd.f32 %v7245_v25, %v799_v29  ;;  %v9829_v25 = vld [vmem:[#allocation11_spill] sm:$0xff] }
 0x1a9   : > { %5987 = vmatmul.msk.f32.gmra.mxu1 %vm250_vm1, %v7292_v39  ;;  %v1405_v57 = vadd.f32 %v1317_v50, %v1128_v40  ;;  %v9830_v50 = vld [vmem:[#allocation33_spill] sm:$0xff] }
 0x1ab   : > { %v1682_v17 = vadd.f32 %v1594_v30, %v1405_v57  ;;  %v9831_v57 = vld [vmem:[#allocation34_spill] sm:$0xff] }
 0x1ac   : > { %6003 = vmatmul.msk.f32.gmra.mxu2 %vm250_vm1, %v6888_v62 }
 0x1ad   : > { %v7507_v59 = vadd.f32 %v1871_v60, %v1682_v17  ;;  %5920 = vmatmul.msk.f32.gmra.mxu3 %vm250_vm1, %v9827_v6  ;;  %v1603_v51 = vpop.f32.mrf.mxu0  ;;  %v9828_v60 = vld [vmem:[#allocation31_spill] sm:$0xff]  ;;  %v1877_v26 = vpop.f32.mrf.mxu1  ;;  %v805_v17 = vadd.f32 %v9831_v57, %v9830_v50  ;;  %v1460_v50 = vld [vmem:[#allocation2 + $0x1d0] sm:$0xff] }
 0x1ae   : > { %v802_v44 = vadd.f32 %v9828_v60, %v7150_v21  ;;  %v9836_v60 = vld [vmem:[#allocation19_spill] sm:$0xff] }
 0x1af   : > { %v1091_v52 = vpop.f32.mrf.mxu2  ;;  %v1131_v29 = vadd.f32 %v7283_v24, %v805_v17  ;;  %v2574_v57 = vld [vmem:[%s9716_s1 + $0x20] sm:$0xf] }
 0x1b0   : > { %v7513_v39 = vadd.f32 %v1091_v52, %v7252_v1  ;;  %v1320_v30 = vpop.f32.mrf.mxu3  ;;  %5955 = vmatmul.msk.f32.gmra.mxu0 %vm250_vm1, %v1456_v55  ;;  %v1130_v47 = vadd.f32 %v7264_v0, %v802_v44  ;;  %v9834_v52 = vld [vmem:[#allocation37_spill] sm:$0xff]  ;;  %v9840_v17 = vld [vmem:[#allocation23_spill] sm:$0xff] }
 0x1b1   : > { %5988 = vmatmul.msk.f32.gmra.mxu1 %vm250_vm1, %v7310_v2  ;;  %v1406_v62 = vadd.f32 %v1320_v30, %v1129_v22  ;;  %v9833_v22 = vld [vmem:[#allocation36_spill] sm:$0xff]  ;;  %6063 = vmatpush.msk.msra.mxu0 %vm550_vm0, %v2574_v57 }
 0x1b2   : > { %v808_v24 = vadd.f32 %v9834_v52, %v9833_v22  ;;  %v9844_v22 = vld [vmem:[#allocation16_spill] sm:$0xff] }
 0x1b3   : > { %v1683_v35 = vadd.f32 %v1597_v53, %v1406_v62 }
 0x1b4   : > { %6004 = vmatmul.msk.f32.gmra.mxu2 %vm250_vm1, %v6906_v4  ;;  %v1132_v44 = vadd.f32 %v7302_v56, %v808_v24  ;;  %v9838_v56 = vld [vmem:[#allocation40_spill] sm:$0xff] }
 0x1b5   : > { %v7522_v36 = vadd.f32 %v1874_v46, %v1683_v35  ;;  %5921 = vmatmul.msk.f32.gmra.mxu3 %vm250_vm1, %v9829_v25  ;;  %v1606_v1 = vpop.f32.mrf.mxu0  ;;  %v1880_v55 = vpop.f32.mrf.mxu1  ;;  %v1459_v35 = vld [vmem:[#allocation2 + $0x1c8] sm:$0xff] }
 0x1b6   : > { %v1461_v24 = vld [vmem:[#allocation2 + $0x1e8] sm:$0xff] }
 0x1b7   : > { %v1094_v40 = vpop.f32.mrf.mxu2 }
 0x1b8   : > { %v7528_v2 = vadd.f32 %v1094_v40, %v7271_v12  ;;  %v1323_v53 = vpop.f32.mrf.mxu3  ;;  %5956 = vmatmul.msk.f32.gmra.mxu0 %vm250_vm1, %v1457_v31 }
 0x1b9   : > { %5989 = vmatmul.msk.f32.gmra.mxu1 %vm250_vm1, %v7328_v13  ;;  %v1407_v4 = vadd.f32 %v1323_v53, %v1130_v47 }
 0x1bb   : > { %v1684_v21 = vadd.f32 %v1600_v16, %v1407_v4  ;;  %v9839_v4 = vld [vmem:[#allocation14_spill] sm:$0xff] }
 0x1bc   : > { %6005 = vmatmul.msk.f32.gmra.mxu2 %vm250_vm1, %v6924_v9 }
 0x1bd   : > { %v7537_v0 = vadd.f32 %v1877_v26, %v1684_v21  ;;  %5922 = vmatmul.msk.f32.gmra.mxu3 %vm250_vm1, %v9832_v54  ;;  %v1609_v12 = vpop.f32.mrf.mxu0  ;;  %v9841_v54 = vld [vmem:[#allocation54_spill] sm:$0xff] }
 0x1bf   : > { %v1097_v6 = vpop.f32.mrf.mxu2 }
 0x1c0   : > { %v7543_v13 = vadd.f32 %v1097_v6, %v7290_v7  ;;  %v1326_v16 = vpop.f32.mrf.mxu3  ;;  %5957 = vmatmul.msk.f32.gmra.mxu0 %vm250_vm1, %v1458_v41  ;;  %v9835_v7 = vld [vmem:[#allocation13_spill] sm:$0xff] }
 0x1c1   : > { %5990 = vmatmul.msk.f32.gmra.mxu1 %vm250_vm1, %v7346_v19  ;;  %v1408_v9 = vadd.f32 %v1326_v16, %v1131_v29  ;;  %v2297_v19 = vld [vmem:[%s9716_s1 + $0x1c] sm:$0xf] }
 0x1c2   : > { %6030 = vmatpush.msk.msrb.mxu3 %vm550_vm0, %v2297_v19  ;;  %v9846_v19 = vld [vmem:[#allocation57_spill] sm:$0xff] }
 0x1c3   : > { %v1685_v46 = vadd.f32 %v1603_v51, %v1408_v9  ;;  %v856_v51 = vadd.f32 %v7304_v8, %v9836_v60  ;;  %v9837_v8 = vld [vmem:[#allocation39_spill] sm:$0xff] }
 0x1c4   : > { %6006 = vmatmul.msk.f32.gmra.mxu2 %vm250_vm1, %v6942_v14  ;;  %v353_v14 = vld [vmem:[%s6740_s17 + $0xf0] sm:$0xff]  ;;  %v811_v26 = vadd.f32 %v9838_v56, %v9837_v8  ;;  %v9850_v56 = vld [vmem:[#allocation30_spill] sm:$0xff] }
 0x1c5   : > { %v7552_v30 = vadd.f32 %v1880_v55, %v1685_v46  ;;  %5923 = vmatmul.msk.f32.gmra.mxu3 %vm250_vm1, %v9835_v7  ;;  %v1612_v62 = vpop.f32.mrf.mxu0  ;;  %386 = vst.msk [vmem:[#allocation2 + $0x208] sm:$0xff] %vm250_vm1, %v353_v14  ;;  %v9843_v55 = vld [vmem:[#allocation43_spill] sm:$0xff]  ;;  %v9845_v7 = vld [vmem:[#allocation26_spill] sm:$0xff]  ;;  %v1462_v8 = vld [vmem:[#allocation2 + $0x1f0] sm:$0xff] }
 0x1c7   : > { %v1100_v25 = vpop.f32.mrf.mxu2 }
 0x1c8   : > { %v7565_v31 = vadd.f32 %v1100_v25, %v856_v51  ;;  %v1329_v47 = vpop.f32.mrf.mxu3  ;;  %5958 = vmatmul.msk.f32.gmra.mxu0 %vm250_vm1, %v1459_v35  ;;  %v862_v35 = vadd.f32 %v7340_v11, %v9845_v7  ;;  %v9848_v25 = vld [vmem:[#allocation45_spill] sm:$0xff]  ;;  %v9858_v7 = vld [vmem:[#allocation48_spill] sm:$0xff] }
 0x1c9   : > { %5991 = vmatmul.msk.f32.gmra.mxu1 %vm250_vm1, %v7364_v15  ;;  %v1409_v40 = vadd.f32 %v1329_v47, %v1132_v44  ;;  %v859_v15 = vadd.f32 %v7322_v61, %v9840_v17  ;;  %v9842_v61 = vld [vmem:[#allocation42_spill] sm:$0xff]  ;;  %v9847_v44 = vld [vmem:[#allocation44_spill] sm:$0xff] }
 0x1ca   : > { %v814_v46 = vadd.f32 %v9843_v55, %v9842_v61  ;;  %v817_v11 = vadd.f32 %v9848_v25, %v9847_v44  ;;  %v9849_v47 = vld [vmem:[#allocation20_spill] sm:$0xff]  ;;  %v9851_v17 = vld [vmem:[#allocation46_spill] sm:$0xff]  ;;  %v9856_v61 = vld [vmem:[#allocation61_spill] sm:$0xff] }
 0x1cb   : > { %v7570_v53 = vadd.f32 %v1606_v1, %v1409_v40  ;;  %v354_v1 = vld [vmem:[%s6740_s17 + $0xf8] sm:$0xff]  ;;  %v9861_v44 = vld [vmem:[#allocation35_spill] sm:$0xff]  ;;  %s6390_s17 = sshll.u32 %s6559_s25, 6 }
 0x1cc   : > { %6007 = vmatmul.msk.f32.gmra.mxu2 %vm250_vm1, %v6960_v20  ;;  %v1133_v20 = vadd.f32 %v9841_v54, %v811_v26  ;;  %387 = vst.msk [vmem:[#allocation2 + $0x210] sm:$0xff] %vm250_vm1, %v354_v1  ;;  %v1134_v60 = vadd.f32 %v9846_v19, %v814_v46  ;;  %v865_v26 = vadd.f32 %v7356_v10, %v9850_v56  ;;  %v9853_v1 = vld [vmem:[#allocation24_spill] sm:$0xff]  ;;  %v9862_v25 = vld [vmem:[#allocation66_spill] sm:$0xff]  ;;  %s5726_s20 = scalar_lea.hbm %s9721_s6, %s6390_s17 }
 0x1cd   : > { %5924 = vmatmul.msk.f32.gmra.mxu3 %vm250_vm1, %v9839_v4  ;;  %v1615_v21 = vpop.f32.mrf.mxu0  ;;  %v1135_v4 = vadd.f32 %v7354_v3, %v817_v11  ;;  %v1463_v54 = vld [vmem:[#allocation2 + $0x208] sm:$0xff]  ;;  %v871_v11 = vadd.f32 %v9862_v25, %v9861_v44  ;;  %v9873_v44 = vld [vmem:[#allocation70_spill] sm:$0xff]  ;;  %s5729_s28 = sshll.u32 %s5726_s20, 4  ;;  %s5730_s28 = int_to_ptr.hbm [resolvable:$true] %s5729_s28 }
 0x1ce   : > { %s6450_s25 = sshra.s32 %s5730_s28, 4  ;;  %s6451_s25 = int_to_ptr.hbm [resolvable:$true] %s6450_s25 }
 0x1cf   : > { %v1103_v41 = vpop.f32.mrf.mxu2  ;;  %s6452_s9 = scalar_lea.hbm %s6451_s25, 64  ;;  %p6457_p0 = scmp.lt.s32.totalorder %s6451_s25, %s9721_s6 }
 0x1d0   : > { %v7587_v29 = vadd.f32 %v1103_v41, %v859_v15  ;;  %v1332_v6 = vpop.f32.mrf.mxu3  ;;  %5959 = vmatmul.msk.f32.gmra.mxu0 %vm250_vm1, %v1460_v50  ;;  %v9852_v15 = vld [vmem:[#allocation47_spill] sm:$0xff]  ;;  %v9854_v41 = vld [vmem:[#allocation32_spill] sm:$0xff]  ;;  %p6453_p11 = scmp.ne.s32.totalorder %s6451_s25, %s6452_s9  ;;  %p6458_p1 = scmp.lt.s32.totalorder %s6456_s12, %s6452_s9 }
 0x1d1   : > { %5992 = vmatmul.msk.f32.gmra.mxu1 %vm250_vm1, %v7384_v38  ;;  %v1410_v16 = vadd.f32 %v1332_v6, %v1133_v20  ;;  %v820_v10 = vadd.f32 %v9852_v15, %v9851_v17  ;;  %v9855_v6 = vld [vmem:[#allocation62_spill] sm:$0xff]  ;;  %v9865_v17 = vld [vmem:[#allocation51_spill] sm:$0xff] }
 0x1d2   : > { %p6454_p12 = pnand %p6453_p11, %p6576_p5  ;;  %p6459_p2 = por %p6458_p1, %p6457_p0 }
 0x1d3   : > { %v7592_v9 = vadd.f32 %v1609_v12, %v1410_v16  ;;  %v1740_v20 = vld [vmem:[#allocation2 + $0x209] sm:$0xff]  ;;  %v868_v16 = vadd.f32 %v9855_v6, %v9854_v41 }
 0x1d4   : > { %6008 = vmatmul.msk.f32.gmra.mxu2 %vm250_vm1, %v6978_v28  ;;  %v9868_v6 = vld [vmem:[#allocation68_spill] sm:$0xff]  ;;  %p6455_p13 = pneg %p6454_p12 }
 0x1d5   : > { %5925 = vmatmul.msk.f32.gmra.mxu3 %vm250_vm1, %v9844_v22  ;;  %v1618_v52 = vpop.f32.mrf.mxu0 }
 0x1d6   : > { %p6460_p3 = pnand %p6459_p2, %p6455_p13 }
 0x1d7   : > { %v1106_v38 = vpop.f32.mrf.mxu2 }
 0x1d8   : > { %v7603_v51 = vadd.f32 %v1106_v38, %v862_v35  ;;  %v1335_v12 = vpop.f32.mrf.mxu3  ;;  %5960 = vmatmul.msk.f32.gmra.mxu0 %vm250_vm1, %v1461_v24  ;;  %v9857_v24 = vld [vmem:[#allocation15_spill] sm:$0xff]  ;;  %v9859_v35 = vld [vmem:[#allocation49_spill] sm:$0xff] }
 0x1d9   : > { %5993 = vmatmul.msk.f32.gmra.mxu1 %vm250_vm1, %v7402_v45  ;;  %v1411_v28 = vadd.f32 %v1335_v12, %v1134_v60  ;;  %v823_v19 = vadd.f32 %v9859_v35, %v9858_v7  ;;  %v9860_v60 = vld [vmem:[#allocation27_spill] sm:$0xff]  ;;  %v1464_v12 = vld [vmem:[#allocation2 + $0x210] sm:$0xff] }
 0x1db   : > { %v7608_v14 = vadd.f32 %v1612_v62, %v1411_v28  ;;  %v1741_v28 = vld [vmem:[#allocation2 + $0x211] sm:$0xff] }
 0x1dc   : > { %6009 = vmatmul.msk.f32.gmra.mxu2 %vm250_vm1, %v6996_v37 }
 0x1dd   : > { %5926 = vmatmul.msk.f32.gmra.mxu3 %vm250_vm1, %v9849_v47  ;;  %v1621_v40 = vpop.f32.mrf.mxu0  ;;  %v9863_v47 = vld [vmem:[#allocation65_spill] sm:$0xff] }
 0x1df   : > { %v1109_v45 = vpop.f32.mrf.mxu2 }
 0x1e0   : > { %v7619_v50 = vadd.f32 %v1109_v45, %v865_v26  ;;  %v1338_v62 = vpop.f32.mrf.mxu3  ;;  %5961 = vmatmul.msk.f32.gmra.mxu0 %vm250_vm1, %v1462_v8  ;;  %v1137_v8 = vadd.f32 %v9863_v47, %v823_v19  ;;  %v7654_v45 = vld [vmem:[#allocation2 + $0x207] sm:$0xff]  ;;  %v2543_v19 = vld [vmem:[#allocation2 + $0x51] sm:$0xff] }
 0x1e1   : > { %5994 = vmatmul.msk.f32.gmra.mxu1 %vm250_vm1, %v7418_v58  ;;  %v1412_v37 = vadd.f32 %v1338_v62, %v1135_v4  ;;  %v1136_v58 = vadd.f32 %v9856_v61, %v820_v10 }
 0x1e3   : > { %v7624_v57 = vadd.f32 %v1615_v21, %v1412_v37  ;;  %v9864_v37 = vld [vmem:[#allocation50_spill] sm:$0xff] }
 0x1e4   : > { %6010 = vmatmul.msk.f32.gmra.mxu2 %vm250_vm1, %v7018_v48  ;;  %v826_v15 = vadd.f32 %v9865_v17, %v9864_v37  ;;  %v9875_v37 = vld [vmem:[#allocation56_spill] sm:$0xff] }
 0x1e5   : > { %5927 = vmatmul.msk.f32.gmra.mxu3 %vm250_vm1, %v9853_v1  ;;  %v1624_v3 = vpop.f32.mrf.mxu0  ;;  %v2542_v1 = vld [vmem:[#allocation2 + $0x49] sm:$0xff] }
 0x1e7   : > { %v1112_v55 = vpop.f32.mrf.mxu2 }
 0x1e8   : > { %v7635_v21 = vadd.f32 %v1112_v55, %v868_v16  ;;  %v1341_v46 = vpop.f32.mrf.mxu3  ;;  %5962 = vmatmul.msk.f32.gmra.mxu0 %vm250_vm1, %v1463_v54  ;;  %v9866_v54 = vld [vmem:[#allocation38_spill] sm:$0xff]  ;;  %v1138_v16 = vadd.f32 %v9868_v6, %v826_v15  ;;  %v7670_v55 = vld [vmem:[#allocation2 + $0x20f] sm:$0xff] }
 0x1e9   : > { %5995 = vmatmul.msk.f32.gmra.mxu1 %vm250_vm1, %v1740_v20  ;;  %v1413_v48 = vadd.f32 %v1341_v46, %v1136_v58  ;;  %v9867_v20 = vld [vmem:[#allocation69_spill] sm:$0xff] }
 0x1ea   : > { %v874_v41 = vadd.f32 %v9867_v20, %v9866_v54 }
 0x1eb   : > { %v7639_v22 = vadd.f32 %v1618_v52, %v1413_v48  ;;  %v9869_v48 = vld [vmem:[#allocation52_spill] sm:$0xff] }
 0x1ec   : > { %6011 = vmatmul.msk.f32.gmra.mxu2 %vm250_vm1, %v9857_v24  ;;  %v9870_v24 = vld [vmem:[#allocation53_spill] sm:$0xff] }
 0x1ed   : > { %5928 = vmatmul.msk.f32.gmra.mxu3 %vm250_vm1, %v9860_v60  ;;  %v1627_v38 = vpop.f32.mrf.mxu0  ;;  %v829_v7 = vadd.f32 %v9870_v24, %v9869_v48  ;;  %v9871_v60 = vld [vmem:[#allocation41_spill] sm:$0xff]  ;;  %v9877_v48 = vld [vmem:[#allocation59_spill] sm:$0xff] }
 0x1ef   : > { %v1115_v56 = vpop.f32.mrf.mxu2  ;;  %v1139_v25 = vadd.f32 %v9873_v44, %v829_v7  ;;  %v2545_v7 = vld [vmem:[#allocation2 + $0x71] sm:$0xff]  ;;  %v2267_v44 = vld [vmem:[#allocation2 + $0x68] sm:$0xff] }
 0x1f0   : > { %v7650_v52 = vadd.f32 %v1115_v56, %v871_v11  ;;  %v1344_v26 = vpop.f32.mrf.mxu3  ;;  %5963 = vmatmul.msk.f32.gmra.mxu0 %vm250_vm1, %v1464_v12  ;;  %v9872_v12 = vld [vmem:[#allocation71_spill] sm:$0xff]  ;;  %v2265_v56 = vld [vmem:[#allocation2 + $0x48] sm:$0xff] }
 0x1f1   : > { %5996 = vmatmul.msk.f32.gmra.mxu1 %vm250_vm1, %v1741_v28  ;;  %v1414_v4 = vadd.f32 %v1344_v26, %v1137_v8  ;;  %v877_v28 = vadd.f32 %v9872_v12, %v9871_v60  ;;  %v2004_v8 = vld [vmem:[#allocation2 + $0x147] sm:$0xff] }
 0x1f3   : > { %v7656_v62 = vadd.f32 %v1621_v40, %v1414_v4  ;;  %v9874_v4 = vld [vmem:[#allocation55_spill] sm:$0xff] }
 0x1f4   : > { %6012 = vmatmul.msk.f32.gmra.mxu2 %vm250_vm1, %v7066_v63  ;;  %v832_v17 = vadd.f32 %v9875_v37, %v9874_v4 }
 0x1f5   : > { %5929 = vmatmul.msk.f32.gmra.mxu3 %vm250_vm1, %v7654_v45  ;;  %v1630_v10 = vpop.f32.mrf.mxu0 }
 0x1f6   : > { %v1140_v54 = vadd.f32 %v7439_v49, %v832_v17  ;;  %v2007_v17 = vld [vmem:[#allocation2 + $0x16f] sm:$0xff] }
 0x1f7   : > { %v1118_v61 = vpop.f32.mrf.mxu2 }
 0x1f8   : > { %v7667_v58 = vadd.f32 %v1118_v61, %v874_v41  ;;  %v1347_v40 = vpop.f32.mrf.mxu3  ;;  %6064 = vmatmul.msk.f32.vlgmr.msra.gmra.mxu0 %vm250_vm1, %v2542_v1  ;;  %v2544_v1 = vld [vmem:[#allocation2 + $0x69] sm:$0xff] }
 0x1f9   : > { %v1415_v63 = vadd.f32 %v1347_v40, %v1138_v16  ;;  %v2005_v16 = vld [vmem:[#allocation2 + $0x14f] sm:$0xff] }
 0x1fa   : > { %v2266_v61 = vld [vmem:[#allocation2 + $0x50] sm:$0xff] }
 0x1fb   : > { %v7672_v46 = vadd.f32 %v1624_v3, %v1415_v63  ;;  %v9876_v63 = vld [vmem:[#allocation58_spill] sm:$0xff] }
 0x1fc   : > { %6013 = vmatmul.msk.f32.gmra.mxu2 %vm250_vm1, %v7090_v23  ;;  %v835_v24 = vadd.f32 %v9877_v48, %v9876_v63 }
 0x1fd   : > { %5930 = vmatmul.msk.f32.gmra.mxu3 %vm250_vm1, %v7670_v55  ;;  %v1633_v35 = vpop.f32.mrf.mxu0 }
 0x1ff   : > { %v1121_v11 = vpop.f32.mrf.mxu2 }
 0x200   : > { %v7683_v47 = vadd.f32 %v1121_v11, %v877_v28  ;;  %v1350_v3 = vpop.f32.mrf.mxu3  ;;  %6065 = vmatmul.msk.f32.gmra.mxu0 %vm250_vm1, %v2543_v19  ;;  %v1141_v19 = vadd.f32 %v7454_v18, %v835_v24  ;;  %v2006_v28 = vld [vmem:[#allocation2 + $0x167] sm:$0xff] }
 0x201   : > { %v1416_v23 = vadd.f32 %v1350_v3, %v1139_v25  ;;  %v9878_v11 = vld [vmem:[#allocation60_spill] sm:$0xff]  ;;  %v9879_v3 = vld [vmem:[#allocation63_spill] sm:$0xff] }
 0x202   : > { %v2008_v24 = vld [vmem:[#allocation2 + $0x187] sm:$0xff] }
 0x203   : > { %v7686_v26 = vadd.f32 %v1627_v38, %v1416_v23  ;;  %v838_v23 = vadd.f32 %v9879_v3, %v9878_v11  ;;  %v2009_v11 = vld [vmem:[#allocation2 + $0x18f] sm:$0xff] }
 0x204   : > { %6014 = vmatmul.msk.f32.gmra.mxu2 %vm250_vm1, %v2004_v8  ;;  %v2546_v8 = vld [vmem:[#allocation2 + $0x89] sm:$0xff] }
 0x205   : > { %6031 = vmatmul.msk.f32.vlgmr.msrb.gmra.mxu3 %vm250_vm1, %v2265_v56  ;;  %v1636_v15 = vpop.f32.mrf.mxu0  ;;  %v1142_v56 = vadd.f32 %v7469_v33, %v838_v23  ;;  %v2270_v3 = vld [vmem:[#allocation2 + $0x90] sm:$0xff] }
 0x207   : > { %v2137_v20 = vpop.f32.mrf.mxu2 }
 0x208   : > { %v1353_v41 = vpop.f32.mrf.mxu3  ;;  %v7694_v6 = vadd.f32 %v2137_v20, %v7449_v43  ;;  %6066 = vmatmul.msk.f32.gmra.mxu0 %vm250_vm1, %v2544_v1  ;;  %v2268_v1 = vld [vmem:[#allocation2 + $0x70] sm:$0xff]  ;;  %v9880_v20 = vld [vmem:[#allocation64_spill] sm:$0xff] }
 0x209   : > { %v1417_v38 = vadd.f32 %v1353_v41, %v1140_v54  ;;  %v9881_v41 = vld [vmem:[#allocation67_spill] sm:$0xff] }
 0x20b   : > { %v7697_v40 = vadd.f32 %v1630_v10, %v1417_v38  ;;  %v841_v38 = vadd.f32 %v9881_v41, %v9880_v20  ;;  %v2550_v20 = vld [vmem:[#allocation2 + $0xc9] sm:$0xff] }
 0x20c   : > { %6015 = vmatmul.msk.f32.gmra.mxu2 %vm250_vm1, %v2005_v16  ;;  %v2547_v16 = vld [vmem:[#allocation2 + $0x91] sm:$0xff] }
 0x20d   : > { %6032 = vmatmul.msk.f32.gmra.mxu3 %vm250_vm1, %v2266_v61  ;;  %v1639_v49 = vpop.f32.mrf.mxu0  ;;  %v1143_v61 = vadd.f32 %v7483_v5, %v841_v38 }
 0x20f   : > { %v2140_v43 = vpop.f32.mrf.mxu2 }
 0x210   : > { %v1356_v60 = vpop.f32.mrf.mxu3  ;;  %v7705_v12 = vadd.f32 %v2140_v43, %v7464_v34  ;;  %6067 = vmatmul.msk.f32.gmra.mxu0 %vm250_vm1, %v2545_v7  ;;  %v2269_v7 = vld [vmem:[#allocation2 + $0x88] sm:$0xff] }
 0x211   : > { %v1418_v10 = vadd.f32 %v1356_v60, %v1141_v19  ;;  %v2548_v60 = vld [vmem:[#allocation2 + $0xa9] sm:$0xff] }
 0x213   : > { %v7708_v25 = vadd.f32 %v1633_v35, %v1418_v10 }
 0x214   : > { %6016 = vmatmul.msk.f32.gmra.mxu2 %vm250_vm1, %v2006_v28 }
 0x215   : > { %6033 = vmatmul.msk.f32.gmra.mxu3 %vm250_vm1, %v2267_v44  ;;  %v1642_v18 = vpop.f32.mrf.mxu0 }
 0x217   : > { %v2143_v34 = vpop.f32.mrf.mxu2 }
 0x218   : > { %v1359_v4 = vpop.f32.mrf.mxu3  ;;  %v7716_v37 = vadd.f32 %v2143_v34, %v7478_v42  ;;  %6068 = vmatmul.msk.f32.gmra.mxu0 %vm250_vm1, %v2546_v8  ;;  %v2549_v8 = vld [vmem:[#allocation2 + $0xb1] sm:$0xff] }
 0x219   : > { %v1419_v35 = vadd.f32 %v1359_v4, %v1142_v56 }
 0x21b   : > { %v7719_v54 = vadd.f32 %v1636_v15, %v1419_v35  ;;  %v2271_v35 = vld [vmem:[#allocation2 + $0xa8] sm:$0xff] }
 0x21c   : > { %6017 = vmatmul.msk.f32.gmra.mxu2 %vm250_vm1, %v2007_v17 }
 0x21d   : > { %6034 = vmatmul.msk.f32.gmra.mxu3 %vm250_vm1, %v2268_v1  ;;  %v1645_v33 = vpop.f32.mrf.mxu0 }
 0x21f   : > { %v2146_v42 = vpop.f32.mrf.mxu2 }
 0x220   : > { %v1362_v63 = vpop.f32.mrf.mxu3  ;;  %v7727_v48 = vadd.f32 %v2146_v42, %v7492_v27  ;;  %6069 = vmatmul.msk.f32.gmra.mxu0 %vm250_vm1, %v2547_v16  ;;  %v1883_v27 = vpop.f32.mrf.mxu1  ;;  %v2011_v16 = vld [vmem:[#allocation2 + $0x1af] sm:$0xff] }
 0x221   : > { %v1420_v15 = vadd.f32 %v1362_v63, %v1143_v61  ;;  %v2272_v61 = vld [vmem:[#allocation2 + $0xb0] sm:$0xff] }
 0x223   : > { %v7730_v19 = vadd.f32 %v1639_v49, %v1420_v15  ;;  %v2551_v15 = vld [vmem:[#allocation2 + $0xd1] sm:$0xff] }
 0x224   : > { %6018 = vmatmul.msk.f32.gmra.mxu2 %vm250_vm1, %v2008_v24 }
 0x225   : > { %6035 = vmatmul.msk.f32.gmra.mxu3 %vm250_vm1, %v2269_v7  ;;  %v1648_v43 = vpop.f32.mrf.mxu0 }
 0x227   : > { %v2149_v10 = vpop.f32.mrf.mxu2 }
 0x228   : > { %v1365_v5 = vpop.f32.mrf.mxu3  ;;  %v7735_v28 = vadd.f32 %v2149_v10, %v7507_v59  ;;  %6070 = vmatmul.msk.f32.gmra.mxu0 %vm250_vm1, %v2548_v60  ;;  %v1886_v17 = vpop.f32.mrf.mxu1  ;;  %v2012_v60 = vld [vmem:[#allocation2 + $0x1c7] sm:$0xff] }
 0x229   : > { %v1421_v44 = vadd.f32 %v1365_v5, %v7498_v32  ;;  %v2010_v32 = vld [vmem:[#allocation2 + $0x1a7] sm:$0xff] }
 0x22b   : > { %v7739_v49 = vadd.f32 %v1642_v18, %v1421_v44  ;;  %v2552_v44 = vld [vmem:[#allocation2 + $0xe9] sm:$0xff] }
 0x22c   : > { %6019 = vmatmul.msk.f32.gmra.mxu2 %vm250_vm1, %v2009_v11  ;;  %v1963_v11 = vadd.f32 %v1883_v27, %v7570_v53  ;;  %v2553_v53 = vld [vmem:[#allocation2 + $0xf1] sm:$0xff] }
 0x22d   : > { %6036 = vmatmul.msk.f32.gmra.mxu3 %vm250_vm1, %v2270_v3  ;;  %v1651_v23 = vpop.f32.mrf.mxu0  ;;  %v3124_v27 = vld [vmem:[%s9718_s3 + $0x18] sm:$0xff] }
 0x22e   : > { %3235 = vmatpush.msra.mxu1 %v3124_v27 }
 0x22f   : > { %v2152_v56 = vpop.f32.mrf.mxu2 }
 0x230   : > { %v1368_v34 = vpop.f32.mrf.mxu3  ;;  %v7744_v59 = vadd.f32 %v2152_v56, %v7522_v36  ;;  %6071 = vmatmul.msk.f32.gmra.mxu0 %vm250_vm1, %v2549_v8 }
 0x231   : > { %v1422_v4 = vadd.f32 %v1368_v34, %v7513_v39  ;;  %v2274_v34 = vld [vmem:[#allocation2 + $0xd0] sm:$0xff] }
 0x233   : > { %v7748_v18 = vadd.f32 %v1645_v33, %v1422_v4  ;;  %v7760_v33 = vpop.f32.mrf.mxu1 }
 0x234   : > { %6020 = vmatmul.msk.f32.gmra.mxu2 %vm250_vm1, %v2010_v32 }
 0x235   : > { %6037 = vmatmul.msk.f32.gmra.mxu3 %vm250_vm1, %v2271_v35  ;;  %v1654_v1 = vpop.f32.mrf.mxu0  ;;  %v1964_v35 = vadd.f32 %v1886_v17, %v7592_v9  ;;  %v2554_v17 = vld [vmem:[#allocation2 + $0x109] sm:$0xff] }
 0x237   : > { %v2155_v41 = vpop.f32.mrf.mxu2 }
 0x238   : > { %v1371_v38 = vpop.f32.mrf.mxu3  ;;  %v7753_v36 = vadd.f32 %v2155_v41, %v7537_v0  ;;  %6072 = vmatmul.msk.f32.gmra.mxu0 %vm250_vm1, %v2550_v20 }
 0x239   : > { %v1423_v39 = vadd.f32 %v1371_v38, %v7528_v2 }
 0x23b   : > { %v7757_v42 = vadd.f32 %v1648_v43, %v1423_v39  ;;  %v2273_v43 = vld [vmem:[#allocation2 + $0xc8] sm:$0xff]  ;;  %v7773_v3 = vpop.f32.mrf.mxu1 }
 0x23c   : > { %6021 = vmatmul.msk.f32.gmra.mxu2 %vm250_vm1, %v2011_v16  ;;  %v2014_v39 = vld [vmem:[#allocation2 + $0x1e7] sm:$0xff] }
 0x23d   : > { %6038 = vmatmul.msk.f32.gmra.mxu3 %vm250_vm1, %v2272_v61  ;;  %v1657_v63 = vpop.f32.mrf.mxu0  ;;  %v2275_v16 = vld [vmem:[#allocation2 + $0xe8] sm:$0xff] }
 0x23f   : > { %v2158_v24 = vpop.f32.mrf.mxu2 }
 0x240   : > { %v1374_v7 = vpop.f32.mrf.mxu3  ;;  %v7764_v0 = vadd.f32 %v2158_v24, %v7552_v30  ;;  %6073 = vmatmul.msk.f32.gmra.mxu0 %vm250_vm1, %v2551_v15 }
 0x241   : > { %v1424_v2 = vadd.f32 %v1374_v7, %v7543_v13 }
 0x243   : > { %v7768_v10 = vadd.f32 %v1651_v23, %v1424_v2  ;;  %v2013_v23 = vld [vmem:[#allocation2 + $0x1cf] sm:$0xff] }
 0x244   : > { %6022 = vmatmul.msk.f32.gmra.mxu2 %vm250_vm1, %v2012_v60  ;;  %v2015_v2 = vld [vmem:[#allocation2 + $0x1ef] sm:$0xff] }
 0x245   : > { %9882 = vst [vmem:[#allocation17_spill] sm:$0xff] %v7768_v10  ;;  %6039 = vmatmul.msk.f32.gmra.mxu3 %vm250_vm1, %v2273_v43  ;;  %v1660_v5 = vpop.f32.mrf.mxu0  ;;  %v2276_v60 = vld [vmem:[#allocation2 + $0xf0] sm:$0xff] }
 0x247   : > { %v2161_v30 = vpop.f32.mrf.mxu2 }
 0x248   : > { %v1377_v8 = vpop.f32.mrf.mxu3  ;;  %v7775_v56 = vadd.f32 %v2161_v30, %v1963_v11  ;;  %6074 = vmatmul.msk.f32.gmra.mxu0 %vm250_vm1, %v2552_v44  ;;  %v2555_v44 = vld [vmem:[#allocation2 + $0x111] sm:$0xff]  ;;  %v9886_v30 = vmov 0.0  }
 0x249   : > { %v1425_v13 = vadd.f32 %v1377_v8, %v7565_v31  ;;  %2952 = vst.msk [vmem:[#allocation3] sm:$0xff] %vm2951_vm2, %v9886_v30 }
 0x24a   : > { %2953 = vst.msk [vmem:[#allocation3 + $0x8] sm:$0xff] %vm2951_vm2, %v9886_v30 }
 0x24b   : > { %v7779_v4 = vadd.f32 %v1654_v1, %v1425_v13  ;;  %v7790_v1 = vpop.f32.mrf.mxu1  ;;  %2954 = vst.msk [vmem:[#allocation3 + $0x10] sm:$0xff] %vm2951_vm2, %v9886_v30 }
 0x24c   : > { %6023 = vmatmul.msk.f32.gmra.mxu2 %vm250_vm1, %v2013_v23  ;;  %2955 = vst.msk [vmem:[#allocation3 + $0x18] sm:$0xff] %vm2951_vm2, %v9886_v30  ;;  %v3090_v23 = vld [vmem:[%s9718_s3 + $0x8] sm:$0xff] }
 0x24d   : > { %9883 = vst [vmem:[#allocation18_spill] sm:$0xff] %v7779_v4  ;;  %6040 = vmatmul.msk.f32.gmra.mxu3 %vm250_vm1, %v2274_v34  ;;  %v1663_v32 = vpop.f32.mrf.mxu0  ;;  %3444 = vmatpush.msrb.mxu2 %v3090_v23  ;;  %v2567_v4 = vld [vmem:[#allocation2 + $0x1d1] sm:$0xff] }
 0x24e   : > { %2956 = vst.msk [vmem:[#allocation3 + $0x20] sm:$0xff] %vm2951_vm2, %v9886_v30 }
 0x24f   : > { %v2164_v20 = vpop.f32.mrf.mxu2  ;;  %2957 = vst.msk [vmem:[#allocation3 + $0x28] sm:$0xff] %vm2951_vm2, %v9886_v30 }
 0x250   : > { %v1380_v41 = vpop.f32.mrf.mxu3  ;;  %v7787_v31 = vadd.f32 %v2164_v20, %v1964_v35  ;;  %6075 = vmatmul.msk.f32.gmra.mxu0 %vm250_vm1, %v2553_v53  ;;  %v3089_v53 = vld [vmem:[%s9718_s3] sm:$0xff]  ;;  %2958 = vst.msk [vmem:[#allocation3 + $0x30] sm:$0xff] %vm2951_vm2, %v9886_v30  ;;  %v2278_v20 = vld [vmem:[#allocation2 + $0x110] sm:$0xff] }
 0x251   : > { %v1426_v38 = vadd.f32 %v1380_v41, %v7587_v29  ;;  %2959 = vst.msk [vmem:[#allocation3 + $0x38] sm:$0xff] %vm2951_vm2, %v9886_v30  ;;  %3445 = vmatpush.msrb.mxu2 %v3089_v53  ;;  %v3091_v53 = vld [vmem:[#allocation3 + $0x8] sm:$0xff] }
 0x252   : > { %2960 = vst.msk [vmem:[#allocation3 + $0x40] sm:$0xff] %vm2951_vm2, %v9886_v30 }
 0x253   : > { %v7793_v61 = vadd.f32 %v1657_v63, %v1426_v38  ;;  %v7801_v29 = vpop.f32.mrf.mxu1  ;;  %2961 = vst.msk [vmem:[#allocation3 + $0x48] sm:$0xff] %vm2951_vm2, %v9886_v30  ;;  %v2557_v38 = vld [vmem:[#allocation2 + $0x131] sm:$0xff] }
 0x254   : > { %6024 = vmatmul.msk.f32.gmra.mxu2 %vm250_vm1, %v2014_v39  ;;  %2962 = vst.msk [vmem:[#allocation3 + $0x50] sm:$0xff] %vm2951_vm2, %v9886_v30 }
 0x255   : > { %9884 = vst [vmem:[#allocation7_spill] sm:$0xff] %v7793_v61  ;;  %6041 = vmatmul.msk.f32.gmra.mxu3 %vm250_vm1, %v2275_v16  ;;  %v1666_v9 = vpop.f32.mrf.mxu0 }
 0x256   : > { %2963 = vst.msk [vmem:[#allocation3 + $0x58] sm:$0xff] %vm2951_vm2, %v9886_v30 }
 0x257   : > { %v7797_v15 = vpop.f32.mrf.mxu2  ;;  %2964 = vst.msk [vmem:[#allocation3 + $0x60] sm:$0xff] %vm2951_vm2, %v9886_v30 }
 0x258   : > { %v1383_v24 = vpop.f32.mrf.mxu3  ;;  %6076 = vmatmul.msk.f32.gmra.mxu0 %vm250_vm1, %v2554_v17  ;;  %2965 = vst.msk [vmem:[#allocation3 + $0x68] sm:$0xff] %vm2951_vm2, %v9886_v30  ;;  %v2018_v17 = vld [vmem:[#allocation2 + $0x227] sm:$0xff] }
 0x259   : > { %v1427_v7 = vadd.f32 %v1383_v24, %v7603_v51  ;;  %2966 = vst.msk [vmem:[#allocation3 + $0x70] sm:$0xff] %vm2951_vm2, %v9886_v30  ;;  %v2279_v24 = vld [vmem:[#allocation2 + $0x128] sm:$0xff] }
 0x25a   : > { %2967 = vst.msk [vmem:[#allocation3 + $0x78] sm:$0xff] %vm2951_vm2, %v9886_v30 }
 0x25b   : > { %v7803_v43 = vadd.f32 %v1660_v5, %v1427_v7  ;;  %v2277_v5 = vld [vmem:[#allocation2 + $0x108] sm:$0xff]  ;;  %2968 = vst.msk [vmem:[#allocation3 + $0x80] sm:$0xff] %vm2951_vm2, %v9886_v30 }
 0x25c   : > { %6025 = vmatmul.msk.f32.gmra.mxu2 %vm250_vm1, %v2015_v2  ;;  %2969 = vst.msk [vmem:[#allocation3 + $0x88] sm:$0xff] %vm2951_vm2, %v9886_v30  ;;  %v2558_v2 = vld [vmem:[#allocation2 + $0x149] sm:$0xff] }
 0x25d   : > { %9885 = vst [vmem:[#allocation21_spill] sm:$0xff] %v7803_v43  ;;  %6042 = vmatmul.msk.f32.gmra.mxu3 %vm250_vm1, %v2276_v60  ;;  %v1669_v63 = vpop.f32.mrf.mxu0 }
 0x25e   : > { %2970 = vst.msk [vmem:[#allocation3 + $0x90] sm:$0xff] %vm2951_vm2, %v9886_v30 }
 0x25f   : > { %v7807_v11 = vpop.f32.mrf.mxu2  ;;  %2971 = vst.msk [vmem:[#allocation3 + $0x98] sm:$0xff] %vm2951_vm2, %v9886_v30 }
 0x260   : > { %v1386_v8 = vpop.f32.mrf.mxu3  ;;  %6077 = vmatmul.msk.f32.gmra.mxu0 %vm250_vm1, %v2555_v44  ;;  %2972 = vst.msk [vmem:[#allocation3 + $0xa0] sm:$0xff] %vm2951_vm2, %v9886_v30 }
 0x261   : > { %v1428_v51 = vadd.f32 %v1386_v8, %v7619_v50  ;;  %v7830_v50 = vpop.f32.mrf.mxu1  ;;  %2973 = vst.msk [vmem:[#allocation3 + $0xa8] sm:$0xff] %vm2951_vm2, %v9886_v30 }
 0x262   : > { %2974 = vst.msk [vmem:[#allocation3 + $0xb0] sm:$0xff] %vm2951_vm2, %v9886_v30 }
 0x263   : > { %v7819_v13 = vadd.f32 %v1663_v32, %v1428_v51  ;;  %v2556_v32 = vld [vmem:[#allocation2 + $0x129] sm:$0xff]  ;;  %2975 = vst.msk [vmem:[#allocation3 + $0xb8] sm:$0xff] %vm2951_vm2, %v9886_v30 }
 0x264   : > { %6026 = vmatmul.msk.f32.gmra.mxu2 %vm250_vm1, %v7654_v45  ;;  %2976 = vst.msk [vmem:[#allocation3 + $0xc0] sm:$0xff] %vm2951_vm2, %v9886_v30  ;;  %v2019_v51 = vld [vmem:[#allocation2 + $0x22f] sm:$0xff] }
 0x265   : > { %9887 = vst [vmem:[#allocation22_spill] sm:$0xff] %v7819_v13  ;;  %6043 = vmatmul.msk.f32.gmra.mxu3 %vm250_vm1, %v2277_v5  ;;  %v1672_v34 = vpop.f32.mrf.mxu0  ;;  %v2280_v5 = vld [vmem:[#allocation2 + $0x130] sm:$0xff] }
 0x266   : > { %2977 = vst.msk [vmem:[#allocation3 + $0xc8] sm:$0xff] %vm2951_vm2, %v9886_v30 }
 0x267   : > { %v7840_v45 = vpop.f32.mrf.mxu2  ;;  %2978 = vst.msk [vmem:[#allocation3 + $0xd0] sm:$0xff] %vm2951_vm2, %v9886_v30 }
 0x268   : > { %v1389_v27 = vpop.f32.mrf.mxu3  ;;  %6078 = vmatmul.msk.f32.gmra.mxu0 %vm250_vm1, %v2556_v32  ;;  %2979 = vst.msk [vmem:[#allocation3 + $0xd8] sm:$0xff] %vm2951_vm2, %v9886_v30  ;;  %v2559_v32 = vld [vmem:[#allocation2 + $0x151] sm:$0xff] }
 0x269   : > { %v1429_v35 = vadd.f32 %v1389_v27, %v7635_v21  ;;  %v7865_v39 = vpop.f32.mrf.mxu1  ;;  %2980 = vst.msk [vmem:[#allocation3 + $0xe0] sm:$0xff] %vm2951_vm2, %v9886_v30 }
 0x26a   : > { %2981 = vst.msk [vmem:[#allocation3 + $0xe8] sm:$0xff] %vm2951_vm2, %v9886_v30 }
 0x26b   : > { %v7852_v41 = vadd.f32 %v1666_v9, %v1429_v35  ;;  %2982 = vst.msk [vmem:[#allocation3 + $0xf0] sm:$0xff] %vm2951_vm2, %v9886_v30 }
 0x26c   : > { %6027 = vmatmul.msk.f32.gmra.mxu2 %vm250_vm1, %v7670_v55  ;;  %2983 = vst.msk [vmem:[#allocation3 + $0xf8] sm:$0xff] %vm2951_vm2, %v9886_v30 }
 0x26d   : > { %9888 = vst [vmem:[#allocation8_spill] sm:$0xff] %v7852_v41  ;;  %6044 = vmatmul.msk.f32.gmra.mxu3 %vm250_vm1, %v2278_v20  ;;  %v1675_v21 = vpop.f32.mrf.mxu0  ;;  %v2564_v41 = vld [vmem:[#allocation2 + $0x1a9] sm:$0xff] }
 0x26e   : > { %2984 = vst.msk [vmem:[#allocation3 + $0x100] sm:$0xff] %vm2951_vm2, %v9886_v30 }
 0x26f   : > { %v7867_v16 = vpop.f32.mrf.mxu2  ;;  %2985 = vst.msk [vmem:[#allocation3 + $0x108] sm:$0xff] %vm2951_vm2, %v9886_v30 }
 0x270   : > { %v1392_v55 = vpop.f32.mrf.mxu3  ;;  %6079 = vmatmul.msk.f32.gmra.mxu0 %vm250_vm1, %v2557_v38  ;;  %v3057_v38 = vld [vmem:[#allocation3 + $0x7] sm:$0xff]  ;;  %2986 = vst.msk [vmem:[#allocation3 + $0x110] sm:$0xff] %vm2951_vm2, %v9886_v30 }
 0x271   : > { %v1430_v9 = vadd.f32 %v1392_v55, %v7650_v52  ;;  %v7900_v44 = vpop.f32.mrf.mxu1  ;;  %v2281_v55 = vld [vmem:[#allocation2 + $0x148] sm:$0xff]  ;;  %2987 = vst.msk [vmem:[#allocation3 + $0x118] sm:$0xff] %vm2951_vm2, %v9886_v30 }
 0x272   : > { %2988 = vst.msk [vmem:[#allocation3 + $0x120] sm:$0xff] %vm2951_vm2, %v9886_v30 }
 0x273   : > { %v7879_v7 = vadd.f32 %v1669_v63, %v1430_v9  ;;  %2989 = vst.msk [vmem:[#allocation3 + $0x128] sm:$0xff] %vm2951_vm2, %v9886_v30 }
 0x274   : > { %6028 = vmatmul.msk.f32.gmra.mxu2 %vm250_vm1, %v2018_v17  ;;  %2990 = vst.msk [vmem:[#allocation3 + $0x130] sm:$0xff] %vm2951_vm2, %v9886_v30 }
 0x275   : > { %9889 = vst [vmem:[#allocation25_spill] sm:$0xff] %v7879_v7  ;;  %6045 = vmatmul.msk.f32.gmra.mxu3 %vm250_vm1, %v2279_v24  ;;  %v7887_v52 = vpop.f32.mrf.mxu0  ;;  %v2560_v24 = vld [vmem:[#allocation2 + $0x169] sm:$0xff] }
 0x276   : > { %2991 = vst.msk [vmem:[#allocation3 + $0x138] sm:$0xff] %vm2951_vm2, %v9886_v30 }
 0x277   : > { %v7893_v60 = vpop.f32.mrf.mxu2  ;;  %2992 = vst.msk [vmem:[#allocation3 + $0x140] sm:$0xff] %vm2951_vm2, %v9886_v30 }
 0x278   : > { %v1395_v63 = vpop.f32.mrf.mxu3  ;;  %6080 = vmatmul.msk.f32.gmra.mxu0 %vm250_vm1, %v2558_v2  ;;  %2993 = vst.msk [vmem:[#allocation3 + $0x148] sm:$0xff] %vm2951_vm2, %v9886_v30 }
 0x279   : > { %v1431_v8 = vadd.f32 %v1395_v63, %v7667_v58  ;;  %v7937_v9 = vpop.f32.mrf.mxu1  ;;  %2994 = vst.msk [vmem:[#allocation3 + $0x150] sm:$0xff] %vm2951_vm2, %v9886_v30 }
 0x27a   : > { %2995 = vst.msk [vmem:[#allocation3 + $0x158] sm:$0xff] %vm2951_vm2, %v9886_v30 }
 0x27b   : > { %v7907_v23 = vadd.f32 %v1672_v34, %v1431_v8  ;;  %v3123_v34 = vld [vmem:[%s9718_s3 + $0x10] sm:$0xff]  ;;  %2996 = vst.msk [vmem:[#allocation3 + $0x160] sm:$0xff] %vm2951_vm2, %v9886_v30 }
 0x27c   : > { %6029 = vmatmul.msk.f32.gmra.mxu2 %vm250_vm1, %v2019_v51  ;;  %3236 = vmatpush.msra.mxu1 %v3123_v34  ;;  %v3058_v8 = vld [vmem:[#allocation3 + $0xf] sm:$0xff]  ;;  %2997 = vst.msk [vmem:[#allocation3 + $0x168] sm:$0xff] %vm2951_vm2, %v9886_v30 }
 0x27d   : > { %9890 = vst [vmem:[#allocation9_spill] sm:$0xff] %v7907_v23  ;;  %6046 = vmatmul.msk.f32.gmra.mxu3 %vm250_vm1, %v2280_v5  ;;  %v7915_v58 = vpop.f32.mrf.mxu0  ;;  %6096 = vmatmul.msk.f32.vlgmr.msra.gmra.mxu1 %vm2951_vm2, %v3091_v53  ;;  %v2282_v51 = vld [vmem:[#allocation2 + $0x150] sm:$0xff] }
 0x27e   : > { %2998 = vst.msk [vmem:[#allocation3 + $0x170] sm:$0xff] %vm2951_vm2, %v9886_v30  ;;  %v2561_v34 = vld [vmem:[#allocation2 + $0x171] sm:$0xff] }
 0x27f   : > { %v7924_v27 = vpop.f32.mrf.mxu2  ;;  %2999 = vst.msk [vmem:[#allocation3 + $0x178] sm:$0xff] %vm2951_vm2, %v9886_v30 }
 0x280   : > { %v1398_v35 = vpop.f32.mrf.mxu3  ;;  %6081 = vmatmul.msk.f32.gmra.mxu0 %vm250_vm1, %v2559_v32  ;;  %3000 = vst.msk [vmem:[#allocation3 + $0x180] sm:$0xff] %vm2951_vm2, %v9886_v30 }
 0x281   : > { %v1432_v20 = vadd.f32 %v1398_v35, %v7683_v47  ;;  %v7968_v5 = vpop.f32.mrf.mxu1  ;;  %3001 = vst.msk [vmem:[#allocation3 + $0x188] sm:$0xff] %vm2951_vm2, %v9886_v30 }
 0x282   : > { %3002 = vst.msk [vmem:[#allocation3 + $0x190] sm:$0xff] %vm2951_vm2, %v9886_v30 }
 0x283   : > { %v7939_v17 = vadd.f32 %v1675_v21, %v1432_v20  ;;  %v3092_v21 = vld [vmem:[#allocation3 + $0x10] sm:$0xff]  ;;  %v2819_v20 = vld [vmem:[%s9717_s2] sm:$0x7]  ;;  %3003 = vst.msk [vmem:[#allocation3 + $0x198] sm:$0xff] %vm2951_vm2, %v9886_v30 }
 0x284   : > { %6128 = vmatmul.msk.f32.vlgmr.msrb.gmra.mxu2 %vm2951_vm2, %v3057_v38  ;;  %3004 = vst.msk [vmem:[#allocation3 + $0x1a0] sm:$0xff] %vm2951_vm2, %v9886_v30 }
 0x285   : > { %9891 = vst [vmem:[#allocation28_spill] sm:$0xff] %v7939_v17  ;;  %6047 = vmatmul.msk.f32.gmra.mxu3 %vm250_vm1, %v2281_v55  ;;  %v2697_v47 = vpop.f32.mrf.mxu0  ;;  %6097 = vmatmul.msk.f32.gmra.mxu1 %vm2951_vm2, %v3092_v21  ;;  %v7996_v21 = vperm.slane %v2819_v20, 0 }
 0x286   : > { %3005 = vst.msk [vmem:[#allocation3 + $0x1a8] sm:$0xff] %vm2951_vm2, %v9886_v30 }
 0x287   : > { %v7953_v2 = vpop.f32.mrf.mxu2  ;;  %3006 = vst.msk [vmem:[#allocation3 + $0x1b0] sm:$0xff] %vm2951_vm2, %v9886_v30 }
 0x288   : > { %v2414_v63 = vpop.f32.mrf.mxu3  ;;  %6082 = vmatmul.msk.f32.gmra.mxu0 %vm250_vm1, %v2560_v24  ;;  %3007 = vst.msk [vmem:[#allocation3 + $0x1b8] sm:$0xff] %vm2951_vm2, %v9886_v30 }
 0x289   : > { %v2510_v53 = vadd.f32 %v2414_v63, %v7694_v6  ;;  %v2283_v6 = vld [vmem:[#allocation2 + $0x168] sm:$0xff]  ;;  %3008 = vst.msk [vmem:[#allocation3 + $0x1c0] sm:$0xff] %vm2951_vm2, %v9886_v30 }
 0x28a   : > { %3009 = vst.msk [vmem:[#allocation3 + $0x1c8] sm:$0xff] %vm2951_vm2, %v9886_v30 }
 0x28b   : > { %v2787_v24 = vadd.f32 %v7887_v52, %v2510_v53  ;;  %3010 = vst.msk [vmem:[#allocation3 + $0x1d0] sm:$0xff] %vm2951_vm2, %v9886_v30 }
 0x28c   : > { %6129 = vmatmul.msk.f32.gmra.mxu2 %vm2951_vm2, %v3058_v8  ;;  %v2562_v8 = vld [vmem:[#allocation2 + $0x189] sm:$0xff]  ;;  %3011 = vst.msk [vmem:[#allocation3 + $0x1d8] sm:$0xff] %vm2951_vm2, %v9886_v30 }
 0x28d   : > { %6048 = vmatmul.msk.f32.gmra.mxu3 %vm250_vm1, %v2282_v51  ;;  %v7973_v32 = vpop.f32.mrf.mxu0  ;;  %v8008_v51 = vpop.f32.mrf.mxu1  ;;  %v2821_v52 = vadd.f32 %v7996_v21, %v2787_v24  ;;  %3012 = vst.msk [vmem:[#allocation3 + $0x1e0] sm:$0xff] %vm2951_vm2, %v9886_v30  ;;  %v8026_v24 = vperm.slane %v2819_v20, 1 }
 0x28e   : > { %3013 = vst.msk [vmem:[#allocation3 + $0x1e8] sm:$0xff] %vm2951_vm2, %v9886_v30 }
 0x28f   : > { %v7980_v35 = vpop.f32.mrf.mxu2  ;;  %3014 = vst.msk [vmem:[#allocation3 + $0x1f0] sm:$0xff] %vm2951_vm2, %v9886_v30 }
 0x290   : > { %v2417_v38 = vpop.f32.mrf.mxu3  ;;  %6083 = vmatmul.msk.f32.gmra.mxu0 %vm250_vm1, %v2561_v34  ;;  %3015 = vst.msk [vmem:[#allocation3 + $0x1f8] sm:$0xff] %vm2951_vm2, %v9886_v30 }
 0x291   : > { %v2511_v55 = vadd.f32 %v2417_v38, %v7705_v12  ;;  %3016 = vst.msk [vmem:[#allocation3 + $0x200] sm:$0xff] %vm2951_vm2, %v9886_v30 }
 0x292   : > { %3017 = vst.msk [vmem:[#allocation3 + $0x208] sm:$0xff] %vm2951_vm2, %v9886_v30 }
 0x293   : > { %v2788_v63 = vadd.f32 %v7915_v58, %v2511_v55  ;;  %v2284_v55 = vld [vmem:[#allocation2 + $0x170] sm:$0xff]  ;;  %3018 = vst.msk [vmem:[#allocation3 + $0x210] sm:$0xff] %vm2951_vm2, %v9886_v30 }
 0x294   : > { %3019 = vst.msk [vmem:[#allocation3 + $0x218] sm:$0xff] %vm2951_vm2, %v9886_v30 }
 0x295   : > { %6049 = vmatmul.msk.f32.gmra.mxu3 %vm250_vm1, %v2283_v6  ;;  %v8004_v12 = vpop.f32.mrf.mxu0  ;;  %v2822_v58 = vadd.f32 %v7996_v21, %v2788_v63  ;;  %v2853_v6 = vmax.f32 %v2821_v52, 0.0  ;;  %v8039_v52 = vperm.slane %v2819_v20, 2  ;;  %v8047_v23 = vpop.f32.mrf.mxu1  ;;  %3020 = vst.msk [vmem:[#allocation3 + $0x220] sm:$0xff] %vm2951_vm2, %v9886_v30 }
 0x296   : > { %3021 = vst.msk [vmem:[#allocation3 + $0x228] sm:$0xff] %vm2951_vm2, %v9886_v30 }
 0x297   : > { %v8013_v34 = vpop.f32.mrf.mxu2  ;;  %v2854_v63 = vmax.f32 %v2822_v58, 0.0  ;;  %3022 = vst.msk [vmem:[#allocation3 + $0x230] sm:$0xff] %vm2951_vm2, %v9886_v30 }
 0x298   : > { %v2420_v53 = vpop.f32.mrf.mxu3  ;;  %6084 = vmatmul.msk.f32.gmra.mxu0 %vm250_vm1, %v2562_v8  ;;  %3023 = vst.msk [vmem:[#allocation3 + $0x238] sm:$0xff] %vm2951_vm2, %v9886_v30 }
 0x299   : > { %v2512_v38 = vadd.f32 %v2420_v53, %v7716_v37  ;;  %v2563_v53 = vld [vmem:[#allocation2 + $0x191] sm:$0xff] }
 0x29b   : > { %v2789_v17 = vadd.f32 %v2697_v47, %v2512_v38  ;;  %v2886_v47 = vmul.f32 %v8026_v24, %v2853_v6 }
 0x29d   : > { %v2823_v37 = vadd.f32 %v7996_v21, %v2789_v17  ;;  %6050 = vmatmul.msk.f32.gmra.mxu3 %vm250_vm1, %v2284_v55  ;;  %v2706_v8 = vpop.f32.mrf.mxu0  ;;  %v2887_v17 = vmul.f32 %v8026_v24, %v2854_v63  ;;  %v2919_v63 = vadd.f32 %v8039_v52, %v2886_v47 }
 0x29f   : > { %v2855_v58 = vmax.f32 %v2823_v37, 0.0  ;;  %v8044_v38 = vpop.f32.mrf.mxu2  ;;  %v2285_v37 = vld [vmem:[#allocation2 + $0x188] sm:$0xff]  ;;  %v2920_v7 = vadd.f32 %v8039_v52, %v2887_v17  ;;  %3025 = vst.msk [vmem:[#allocation3 + $0x28] sm:$0xff] %vm2951_vm2, %v2919_v63 }
 0x2a0   : > { %v2423_v55 = vpop.f32.mrf.mxu3  ;;  %6085 = vmatmul.msk.f32.gmra.mxu0 %vm250_vm1, %v2563_v53 }
 0x2a1   : > { %v2888_v6 = vmul.f32 %v8026_v24, %v2855_v58  ;;  %v2513_v20 = vadd.f32 %v2423_v55, %v7727_v48  ;;  %3026 = vst.msk [vmem:[#allocation3 + $0x30] sm:$0xff] %vm2951_vm2, %v2920_v7 }
 0x2a3   : > { %v2790_v53 = vadd.f32 %v7973_v32, %v2513_v20  ;;  %v2921_v48 = vadd.f32 %v8039_v52, %v2888_v6 }
 0x2a5   : > { %v2824_v58 = vadd.f32 %v7996_v21, %v2790_v53  ;;  %6051 = vmatmul.msk.f32.gmra.mxu3 %vm250_vm1, %v2285_v37  ;;  %v2709_v55 = vpop.f32.mrf.mxu0  ;;  %3027 = vst.msk [vmem:[#allocation3 + $0x48] sm:$0xff] %vm2951_vm2, %v2921_v48  ;;  %v2286_v37 = vld [vmem:[#allocation2 + $0x190] sm:$0xff]  ;;  %v8077_v53 = vpop.f32.mrf.mxu1 }
 0x2a6   : > { %v2565_v48 = vld [vmem:[#allocation2 + $0x1b1] sm:$0xff] }
 0x2a7   : > { %v2856_v32 = vmax.f32 %v2824_v58, 0.0  ;;  %v8075_v20 = vpop.f32.mrf.mxu2  ;;  %v3093_v58 = vld [vmem:[#allocation3 + $0x28] sm:$0xff] }
 0x2a8   : > { %v2426_v47 = vpop.f32.mrf.mxu3  ;;  %6086 = vmatmul.msk.f32.gmra.mxu0 %vm250_vm1, %v2564_v41  ;;  %6098 = vmatmul.msk.f32.gmra.mxu1 %vm2951_vm2, %v3093_v58  ;;  %v8093_v13 = vld [vmem:[#allocation3 + $0x2f] sm:$0xff] }
 0x2a9   : > { %v2889_v17 = vmul.f32 %v8026_v24, %v2856_v32  ;;  %v2514_v6 = vadd.f32 %v2426_v47, %v7735_v28  ;;  %v8084_v32 = vld [vmem:[#allocation3 + $0x27] sm:$0xff] }
 0x2aa   : > { %6130 = vmatmul.msk.f32.gmra.mxu2 %vm2951_vm2, %v8084_v32 }
 0x2ab   : > { %v2922_v30 = vadd.f32 %v8039_v52, %v2889_v17  ;;  %v2791_v63 = vadd.f32 %v8004_v12, %v2514_v6  ;;  %v2287_v6 = vld [vmem:[#allocation2 + $0x1a8] sm:$0xff] }
 0x2ac   : > { %v8109_v61 = vld [vmem:[#allocation3 + $0x47] sm:$0xff] }
 0x2ad   : > { %3028 = vst.msk [vmem:[#allocation3 + $0x50] sm:$0xff] %vm2951_vm2, %v2922_v30  ;;  %v2825_v7 = vadd.f32 %v7996_v21, %v2791_v63  ;;  %6052 = vmatmul.msk.f32.gmra.mxu3 %vm250_vm1, %v2286_v37  ;;  %v2712_v41 = vpop.f32.mrf.mxu0  ;;  %v3094_v63 = vld [vmem:[#allocation3 + $0x30] sm:$0xff]  ;;  %v8097_v58 = vpop.f32.mrf.mxu1 }
 0x2af   : > { %v2857_v28 = vmax.f32 %v2825_v7, 0.0  ;;  %v8095_v43 = vpop.f32.mrf.mxu2 }
 0x2b0   : > { %v2429_v47 = vpop.f32.mrf.mxu3  ;;  %6087 = vmatmul.msk.f32.gmra.mxu0 %vm250_vm1, %v2565_v48  ;;  %6099 = vmatmul.msk.f32.gmra.mxu1 %vm2951_vm2, %v3094_v63 }
 0x2b1   : > { %v2890_v12 = vmul.f32 %v8026_v24, %v2857_v28  ;;  %v2515_v17 = vadd.f32 %v2429_v47, %v7744_v59  ;;  %v2566_v28 = vld [vmem:[#allocation2 + $0x1c9] sm:$0xff] }
 0x2b2   : > { %6131 = vmatmul.msk.f32.gmra.mxu2 %vm2951_vm2, %v8093_v13 }
 0x2b3   : > { %v2923_v37 = vadd.f32 %v8039_v52, %v2890_v12  ;;  %v2792_v30 = vadd.f32 %v2706_v8, %v2515_v17  ;;  %v2288_v17 = vld [vmem:[#allocation2 + $0x1b0] sm:$0xff] }
 0x2b4   : > { %v8125_v10 = vld [vmem:[#allocation3 + $0x4f] sm:$0xff] }
 0x2b5   : > { %3029 = vst.msk [vmem:[#allocation3 + $0x68] sm:$0xff] %vm2951_vm2, %v2923_v37  ;;  %v2826_v7 = vadd.f32 %v7996_v21, %v2792_v30  ;;  %6053 = vmatmul.msk.f32.gmra.mxu3 %vm250_vm1, %v2287_v6  ;;  %v2715_v48 = vpop.f32.mrf.mxu0  ;;  %v3095_v6 = vld [vmem:[#allocation3 + $0x48] sm:$0xff] }
 0x2b7   : > { %v2858_v59 = vmax.f32 %v2826_v7, 0.0 }
 0x2b8   : > { %v2432_v8 = vpop.f32.mrf.mxu3  ;;  %6088 = vmatmul.msk.f32.gmra.mxu0 %vm250_vm1, %v2566_v28  ;;  %v8114_v28 = vpop.f32.mrf.mxu2  ;;  %6100 = vmatmul.msk.f32.gmra.mxu1 %vm2951_vm2, %v3095_v6 }
 0x2b9   : > { %v2891_v47 = vmul.f32 %v8026_v24, %v2858_v59  ;;  %v2516_v12 = vadd.f32 %v2432_v8, %v7753_v36  ;;  %v8116_v59 = vpop.f32.mrf.mxu1 }
 0x2ba   : > { %9892 = vst [vmem:[#allocation29_spill] sm:$0xff] %v8116_v59  ;;  %6132 = vmatmul.msk.f32.gmra.mxu2 %vm2951_vm2, %v8109_v61  ;;  %v2568_v59 = vld [vmem:[#allocation2 + $0x1e9] sm:$0xff] }
 0x2bb   : > { %v2924_v37 = vadd.f32 %v8039_v52, %v2891_v47  ;;  %v2793_v30 = vadd.f32 %v2709_v55, %v2516_v12  ;;  %v2289_v12 = vld [vmem:[#allocation2 + $0x1c8] sm:$0xff] }
 0x2bd   : > { %3030 = vst.msk [vmem:[#allocation3 + $0x70] sm:$0xff] %vm2951_vm2, %v2924_v37  ;;  %v2827_v63 = vadd.f32 %v7996_v21, %v2793_v30  ;;  %6054 = vmatmul.msk.f32.gmra.mxu3 %vm250_vm1, %v2288_v17  ;;  %v2718_v7 = vpop.f32.mrf.mxu0  ;;  %v3096_v30 = vld [vmem:[#allocation3 + $0x50] sm:$0xff] }
 0x2bf   : > { %v2859_v36 = vmax.f32 %v2827_v63, 0.0 }
 0x2c0   : > { %v2435_v55 = vpop.f32.mrf.mxu3  ;;  %6089 = vmatmul.msk.f32.gmra.mxu0 %vm250_vm1, %v2567_v4  ;;  %6101 = vmatmul.msk.f32.gmra.mxu1 %vm2951_vm2, %v3096_v30  ;;  %v8133_v4 = vpop.f32.mrf.mxu2  ;;  %v8141_v30 = vld [vmem:[#allocation3 + $0x67] sm:$0xff] }
 0x2c1   : > { %v2892_v8 = vmul.f32 %v8026_v24, %v2859_v36  ;;  %v2517_v47 = vadd.f32 %v2435_v55, %v7764_v0  ;;  %9893 = vst [vmem:[#allocation10_spill] sm:$0xff] %v8133_v4  ;;  %v8136_v36 = vpop.f32.mrf.mxu1  ;;  %v2569_v4 = vld [vmem:[#allocation2 + $0x1f1] sm:$0xff] }
 0x2c2   : > { %6133 = vmatmul.msk.f32.gmra.mxu2 %vm2951_vm2, %v8125_v10  ;;  %9894 = vst [vmem:[#allocation31_spill] sm:$0xff] %v8136_v36 }
 0x2c3   : > { %v2925_v17 = vadd.f32 %v8039_v52, %v2892_v8  ;;  %v2794_v37 = vadd.f32 %v2712_v41, %v2517_v47  ;;  %v2290_v47 = vld [vmem:[#allocation2 + $0x1d0] sm:$0xff] }
 0x2c4   : > { %v8157_v36 = vld [vmem:[#allocation3 + $0x6f] sm:$0xff] }
 0x2c5   : > { %3031 = vst.msk [vmem:[#allocation3 + $0x88] sm:$0xff] %vm2951_vm2, %v2925_v17  ;;  %v2828_v6 = vadd.f32 %v7996_v21, %v2794_v37  ;;  %6055 = vmatmul.msk.f32.gmra.mxu3 %vm250_vm1, %v2289_v12  ;;  %v2721_v63 = vpop.f32.mrf.mxu0  ;;  %v3097_v37 = vld [vmem:[#allocation3 + $0x68] sm:$0xff] }
 0x2c7   : > { %v2860_v0 = vmax.f32 %v2828_v6, 0.0 }
 0x2c8   : > { %v2438_v41 = vpop.f32.mrf.mxu3  ;;  %6090 = vmatmul.msk.f32.gmra.mxu0 %vm250_vm1, %v2568_v59  ;;  %6102 = vmatmul.msk.f32.gmra.mxu1 %vm2951_vm2, %v3097_v37  ;;  %v3098_v37 = vld [vmem:[#allocation3 + $0x70] sm:$0xff] }
 0x2c9   : > { %v2893_v55 = vmul.f32 %v8026_v24, %v2860_v0  ;;  %v2518_v8 = vadd.f32 %v2438_v41, %v7775_v56 }
 0x2ca   : > { %6134 = vmatmul.msk.f32.gmra.mxu2 %vm2951_vm2, %v8141_v30 }
 0x2cb   : > { %v2926_v12 = vadd.f32 %v8039_v52, %v2893_v55  ;;  %v2795_v17 = vadd.f32 %v2715_v48, %v2518_v8  ;;  %v8152_v55 = vpop.f32.mrf.mxu2  ;;  %v2291_v8 = vld [vmem:[#allocation2 + $0x1e8] sm:$0xff] }
 0x2cd   : > { %3032 = vst.msk [vmem:[#allocation3 + $0x90] sm:$0xff] %vm2951_vm2, %v2926_v12  ;;  %v2829_v6 = vadd.f32 %v7996_v21, %v2795_v17  ;;  %6056 = vmatmul.msk.f32.gmra.mxu3 %vm250_vm1, %v2290_v47  ;;  %v2724_v59 = vpop.f32.mrf.mxu0  ;;  %v8154_v12 = vpop.f32.mrf.mxu1 }
 0x2ce   : > { %9895 = vst [vmem:[#allocation11_spill] sm:$0xff] %v8154_v12  ;;  %v8171_v12 = vld [vmem:[#allocation3 + $0x87] sm:$0xff] }
 0x2cf   : > { %v2861_v56 = vmax.f32 %v2829_v6, 0.0  ;;  %v1965_v6 = vadd.f32 %v7760_v33, %v7608_v14 }
 0x2d0   : > { %v2441_v0 = vpop.f32.mrf.mxu3  ;;  %6091 = vmatmul.msk.f32.gmra.mxu0 %vm250_vm1, %v2569_v4  ;;  %6103 = vmatmul.msk.f32.gmra.mxu1 %vm2951_vm2, %v3098_v37  ;;  %v1966_v37 = vadd.f32 %v7773_v3, %v7624_v57 }
 0x2d1   : > { %v2894_v48 = vmul.f32 %v8026_v24, %v2861_v56  ;;  %v2519_v41 = vadd.f32 %v2441_v0, %v7787_v31  ;;  %v2570_v56 = vld [vmem:[#allocation2 + $0x209] sm:$0xff]  ;;  %v2243_v0 = vadd.f32 %v7797_v15, %v1965_v6 }
 0x2d2   : > { %6135 = vmatmul.msk.f32.gmra.mxu2 %vm2951_vm2, %v8157_v36 }
 0x2d3   : > { %v2927_v47 = vadd.f32 %v8039_v52, %v2894_v48  ;;  %v2796_v17 = vadd.f32 %v2718_v7, %v2519_v41  ;;  %v2292_v41 = vld [vmem:[#allocation2 + $0x1f0] sm:$0xff]  ;;  %v8173_v15 = vpop.f32.mrf.mxu2 }
 0x2d5   : > { %3033 = vst.msk [vmem:[#allocation3 + $0xa8] sm:$0xff] %vm2951_vm2, %v2927_v47  ;;  %v2830_v4 = vadd.f32 %v7996_v21, %v2796_v17  ;;  %6057 = vmatmul.msk.f32.gmra.mxu3 %vm250_vm1, %v2291_v8  ;;  %v2727_v31 = vpop.f32.mrf.mxu0  ;;  %v3099_v17 = vld [vmem:[#allocation3 + $0x88] sm:$0xff]  ;;  %v8177_v6 = vpop.f32.mrf.mxu1 }
 0x2d7   : > { %v2862_v7 = vmax.f32 %v2830_v4, 0.0 }
 0x2d8   : > { %v2444_v48 = vpop.f32.mrf.mxu3  ;;  %6092 = vmatmul.msk.f32.gmra.mxu0 %vm250_vm1, %v2570_v56  ;;  %6104 = vmatmul.msk.f32.gmra.mxu1 %vm2951_vm2, %v3099_v17 }
 0x2d9   : > { %v2895_v14 = vmul.f32 %v8026_v24, %v2862_v7  ;;  %v2520_v33 = vadd.f32 %v2444_v48, %v2243_v0  ;;  %v2571_v0 = vld [vmem:[#allocation2 + $0x211] sm:$0xff] }
 0x2da   : > { %6136 = vmatmul.msk.f32.gmra.mxu2 %vm2951_vm2, %v8171_v12 }
 0x2db   : > { %v2928_v47 = vadd.f32 %v8039_v52, %v2895_v14  ;;  %v2797_v8 = vadd.f32 %v2721_v63, %v2520_v33  ;;  %v2244_v63 = vadd.f32 %v7807_v11, %v1966_v37  ;;  %v2293_v14 = vld [vmem:[#allocation2 + $0x208] sm:$0xff]  ;;  %v1967_v11 = vadd.f32 %v7790_v1, %v7639_v22  ;;  %v3851_v1 = vld [vmem:[%s9718_s3 + $0x38] sm:$0xff] }
 0x2dc   : > { %3962 = vmatpush.msrb.mxu0 %v3851_v1 }
 0x2dd   : > { %3034 = vst.msk [vmem:[#allocation3 + $0xb0] sm:$0xff] %vm2951_vm2, %v2928_v47  ;;  %v2831_v4 = vadd.f32 %v7996_v21, %v2797_v8  ;;  %6058 = vmatmul.msk.f32.gmra.mxu3 %vm250_vm1, %v2292_v41  ;;  %v2730_v56 = vpop.f32.mrf.mxu0  ;;  %v3100_v47 = vld [vmem:[#allocation3 + $0x90] sm:$0xff] }
 0x2de   : > { %v8189_v8 = vld [vmem:[#allocation3 + $0x8f] sm:$0xff] }
 0x2df   : > { %v2863_v7 = vmax.f32 %v2831_v4, 0.0  ;;  %v2572_v4 = vld [vmem:[#allocation2 + $0x229] sm:$0xff] }
 0x2e0   : > { %v2447_v48 = vpop.f32.mrf.mxu3  ;;  %6093 = vmatmul.msk.f32.gmra.mxu0 %vm250_vm1, %v2571_v0  ;;  %v8198_v0 = vpop.f32.mrf.mxu2  ;;  %6105 = vmatmul.msk.f32.gmra.mxu1 %vm2951_vm2, %v3100_v47  ;;  %v1968_v47 = vadd.f32 %v7801_v29, %v7656_v62  ;;  %v3850_v62 = vld [vmem:[%s9718_s3 + $0x30] sm:$0xff]  ;;  %v3576_v29 = vld [vmem:[%s9718_s3 + $0x28] sm:$0xff] }
 0x2e1   : > { %v2896_v57 = vmul.f32 %v8026_v24, %v2863_v7  ;;  %v2521_v3 = vadd.f32 %v2447_v48, %v2244_v63  ;;  %v8200_v63 = vpop.f32.mrf.mxu1  ;;  %3687 = vmatpush.msra.mxu3 %v3576_v29  ;;  %3963 = vmatpush.msrb.mxu0 %v3850_v62 }
 0x2e2   : > { %6137 = vmatmul.msk.f32.gmra.mxu2 %vm2951_vm2, %v8189_v8 }
 0x2e3   : > { %v2929_v33 = vadd.f32 %v8039_v52, %v2896_v57  ;;  %v2798_v41 = vadd.f32 %v2724_v59, %v2521_v3  ;;  %v2245_v59 = vadd.f32 %v7840_v45, %v1967_v11  ;;  %v2294_v3 = vld [vmem:[#allocation2 + $0x210] sm:$0xff] }
 0x2e5   : > { %3035 = vst.msk [vmem:[#allocation3 + $0xc8] sm:$0xff] %vm2951_vm2, %v2929_v33  ;;  %v2832_v17 = vadd.f32 %v7996_v21, %v2798_v41  ;;  %6059 = vmatmul.msk.f32.gmra.mxu3 %vm250_vm1, %v2293_v14  ;;  %v8196_v37 = vpop.f32.mrf.mxu0  ;;  %v3101_v33 = vld [vmem:[#allocation3 + $0xa8] sm:$0xff] }
 0x2e6   : > { %v8212_v41 = vld [vmem:[#allocation3 + $0xa7] sm:$0xff] }
 0x2e7   : > { %v2864_v22 = vmax.f32 %v2832_v17, 0.0 }
 0x2e8   : > { %v2450_v7 = vpop.f32.mrf.mxu3  ;;  %6094 = vmatmul.msk.f32.gmra.mxu0 %vm250_vm1, %v2572_v4  ;;  %v2573_v4 = vld [vmem:[#allocation2 + $0x231] sm:$0xff]  ;;  %6106 = vmatmul.msk.f32.gmra.mxu1 %vm2951_vm2, %v3101_v33  ;;  %v8232_v1 = vpop.f32.mrf.mxu2 }
 0x2e9   : > { %v2897_v48 = vmul.f32 %v8026_v24, %v2864_v22  ;;  %v2522_v57 = vadd.f32 %v2450_v7, %v2245_v59  ;;  %v2246_v59 = vadd.f32 %v7867_v16, %v1968_v47  ;;  %v3575_v22 = vld [vmem:[%s9718_s3 + $0x20] sm:$0xff]  ;;  %v8235_v7 = vpop.f32.mrf.mxu1  ;;  %v3102_v33 = vld [vmem:[#allocation3 + $0xb0] sm:$0xff] }
 0x2ea   : > { %6138 = vmatmul.msk.f32.gmra.mxu2 %vm2951_vm2, %v8212_v41  ;;  %3688 = vmatpush.msra.mxu3 %v3575_v22  ;;  %v8239_v47 = vld [vmem:[#allocation3 + $0xaf] sm:$0xff] }
 0x2eb   : > { %v2930_v45 = vadd.f32 %v8039_v52, %v2897_v48  ;;  %v2799_v14 = vadd.f32 %v2727_v31, %v2522_v57  ;;  %v2296_v22 = vld [vmem:[#allocation2 + $0x230] sm:$0xff] }
 0x2ed   : > { %3036 = vst.msk [vmem:[#allocation3 + $0xd0] sm:$0xff] %vm2951_vm2, %v2930_v45  ;;  %v2833_v11 = vadd.f32 %v7996_v21, %v2799_v14  ;;  %6060 = vmatmul.msk.f32.gmra.mxu3 %vm250_vm1, %v2294_v3  ;;  %v2736_v17 = vpop.f32.mrf.mxu0  ;;  %v2295_v3 = vld [vmem:[#allocation2 + $0x228] sm:$0xff] }
 0x2ef   : > { %v2865_v31 = vmax.f32 %v2833_v11, 0.0  ;;  %v1969_v11 = vadd.f32 %v7830_v50, %v7672_v46 }
 0x2f0   : > { %v2453_v16 = vpop.f32.mrf.mxu3  ;;  %6095 = vmatmul.msk.f32.gmra.mxu0 %vm250_vm1, %v2573_v4  ;;  %6107 = vmatmul.msk.f32.gmra.mxu1 %vm2951_vm2, %v3102_v33  ;;  %v8253_v29 = vpop.f32.mrf.mxu2 }
 0x2f1   : > { %v2898_v48 = vmul.f32 %v8026_v24, %v2865_v31  ;;  %v2523_v57 = vadd.f32 %v2453_v16, %v2246_v59  ;;  %v2247_v59 = vadd.f32 %v7893_v60, %v1969_v11  ;;  %v8255_v16 = vpop.f32.mrf.mxu1 }
 0x2f2   : > { %6139 = vmatmul.msk.f32.gmra.mxu2 %vm2951_vm2, %v8239_v47 }
 0x2f3   : > { %v2931_v45 = vadd.f32 %v8039_v52, %v2898_v48  ;;  %v2800_v14 = vadd.f32 %v2730_v56, %v2523_v57  ;;  %v3103_v57 = vld [vmem:[#allocation3 + $0xc8] sm:$0xff] }
 0x2f5   : > { %3037 = vst.msk [vmem:[#allocation3 + $0xe8] sm:$0xff] %vm2951_vm2, %v2931_v45  ;;  %v2834_v4 = vadd.f32 %v7996_v21, %v2800_v14  ;;  %6061 = vmatmul.msk.f32.gmra.mxu3 %vm250_vm1, %v2295_v3  ;;  %v2739_v31 = vpop.f32.mrf.mxu0  ;;  %v8259_v3 = vld [vmem:[#allocation3 + $0xc7] sm:$0xff]  ;;  %v1970_v45 = vadd.f32 %v7865_v39, %v7686_v26 }
 0x2f7   : > { %v2866_v56 = vmax.f32 %v2834_v4, 0.0  ;;  %v2248_v33 = vadd.f32 %v7924_v27, %v1970_v45  ;;  %v3543_v4 = vld [vmem:[#allocation3 + $0x9] sm:$0xff]  ;;  %v3544_v45 = vld [vmem:[#allocation3 + $0x11] sm:$0xff] }
 0x2f8   : > { %v2456_v62 = vpop.f32.mrf.mxu3  ;;  %6192 = vmatmul.msk.f32.vlgmr.msrb.gmra.mxu0 %vm2951_vm2, %v8084_v32  ;;  %6108 = vmatmul.msk.f32.gmra.mxu1 %vm2951_vm2, %v3103_v57  ;;  %v3104_v27 = vld [vmem:[#allocation3 + $0xd0] sm:$0xff] }
 0x2f9   : > { %v2899_v46 = vmul.f32 %v8026_v24, %v2866_v56  ;;  %v2524_v50 = vadd.f32 %v2456_v62, %v2247_v59  ;;  %v8274_v62 = vpop.f32.mrf.mxu2 }
 0x2fa   : > { %6140 = vmatmul.msk.f32.gmra.mxu2 %vm2951_vm2, %v8259_v3 }
 0x2fb   : > { %v2932_v60 = vadd.f32 %v8039_v52, %v2899_v46  ;;  %v2801_v48 = vadd.f32 %v8196_v37, %v2524_v50  ;;  %v8276_v46 = vld [vmem:[#allocation3 + $0xcf] sm:$0xff]  ;;  %v1971_v50 = vadd.f32 %v7900_v44, %v7697_v40 }
 0x2fd   : > { %3038 = vst.msk [vmem:[#allocation3 + $0xf0] sm:$0xff] %vm2951_vm2, %v2932_v60  ;;  %v2835_v32 = vadd.f32 %v7996_v21, %v2801_v48  ;;  %6062 = vmatmul.msk.f32.gmra.mxu3 %vm250_vm1, %v2296_v22  ;;  %v2742_v14 = vpop.f32.mrf.mxu0  ;;  %v8280_v22 = vpop.f32.mrf.mxu1  ;;  %v2249_v48 = vadd.f32 %v7953_v2, %v1971_v50  ;;  %v1972_v2 = vadd.f32 %v7937_v9, %v7708_v25 }
 0x2ff   : > { %v2867_v37 = vmax.f32 %v2835_v32, 0.0 }
 0x300   : > { %v2459_v11 = vpop.f32.mrf.mxu3  ;;  %6193 = vmatmul.msk.f32.gmra.mxu0 %vm2951_vm2, %v8093_v13  ;;  %6109 = vmatmul.msk.f32.gmra.mxu1 %vm2951_vm2, %v3104_v27 }
 0x301   : > { %v2900_v26 = vmul.f32 %v8026_v24, %v2867_v37  ;;  %v2525_v39 = vadd.f32 %v2459_v11, %v2248_v33  ;;  %v3105_v37 = vld [vmem:[#allocation3 + $0xe8] sm:$0xff] }
 0x302   : > { %6141 = vmatmul.msk.f32.gmra.mxu2 %vm2951_vm2, %v8276_v46  ;;  %v8293_v11 = vld [vmem:[#allocation3 + $0xe7] sm:$0xff] }
 0x303   : > { %v2933_v59 = vadd.f32 %v8039_v52, %v2900_v26  ;;  %v2802_v56 = vadd.f32 %v2736_v17, %v2525_v39  ;;  %v8300_v39 = vpop.f32.mrf.mxu2 }
 0x305   : > { %3039 = vst.msk [vmem:[#allocation3 + $0x108] sm:$0xff] %vm2951_vm2, %v2933_v59  ;;  %v2836_v13 = vadd.f32 %v7996_v21, %v2802_v56  ;;  %6160 = vmatmul.msk.f32.vlgmr.msra.gmra.mxu3 %vm2951_vm2, %v3543_v4  ;;  %v2745_v60 = vpop.f32.mrf.mxu0  ;;  %v8302_v4 = vpop.f32.mrf.mxu1  ;;  %v2250_v59 = vadd.f32 %v7980_v35, %v1972_v2  ;;  %v8314_v35 = vld [vmem:[#allocation3 + $0x29] sm:$0xff] }
 0x307   : > { %v2868_v17 = vmax.f32 %v2836_v13, 0.0  ;;  %v3106_v13 = vld [vmem:[#allocation3 + $0xf0] sm:$0xff] }
 0x308   : > { %v2462_v57 = vpop.f32.mrf.mxu3  ;;  %6194 = vmatmul.msk.f32.gmra.mxu0 %vm2951_vm2, %v8109_v61  ;;  %6110 = vmatmul.msk.f32.gmra.mxu1 %vm2951_vm2, %v3105_v37 }
 0x309   : > { %v2901_v40 = vmul.f32 %v8026_v24, %v2868_v17  ;;  %v2526_v44 = vadd.f32 %v2462_v57, %v2249_v48  ;;  %v8312_v48 = vld [vmem:[#allocation3 + $0xef] sm:$0xff]  ;;  %v1973_v17 = vadd.f32 %v7968_v5, %v7719_v54 }
 0x30a   : > { %6142 = vmatmul.msk.f32.gmra.mxu2 %vm2951_vm2, %v8293_v11 }
 0x30b   : > { %v2934_v32 = vadd.f32 %v8039_v52, %v2901_v40  ;;  %v2803_v33 = vadd.f32 %v2739_v31, %v2526_v44  ;;  %v2251_v40 = vadd.f32 %v8013_v34, %v1973_v17 }
 0x30c   : > { %v3107_v37 = vld [vmem:[#allocation3 + $0x108] sm:$0xff] }
 0x30d   : > { %3040 = vst.msk [vmem:[#allocation3 + $0x110] sm:$0xff] %vm2951_vm2, %v2934_v32  ;;  %v2837_v26 = vadd.f32 %v7996_v21, %v2803_v33  ;;  %6161 = vmatmul.msk.f32.gmra.mxu3 %vm2951_vm2, %v3544_v45  ;;  %v2748_v61 = vpop.f32.mrf.mxu0  ;;  %v8328_v45 = vpop.f32.mrf.mxu2  ;;  %v8334_v2 = vld [vmem:[#allocation3 + $0x107] sm:$0xff] }
 0x30f   : > { %v2869_v31 = vmax.f32 %v2837_v26, 0.0  ;;  %v8336_v26 = vld [vmem:[#allocation3 + $0x31] sm:$0xff] }
 0x310   : > { %v2465_v25 = vpop.f32.mrf.mxu3  ;;  %6195 = vmatmul.msk.f32.gmra.mxu0 %vm2951_vm2, %v8125_v10  ;;  %6111 = vmatmul.msk.f32.gmra.mxu1 %vm2951_vm2, %v3106_v13 }
 0x311   : > { %v2902_v9 = vmul.f32 %v8026_v24, %v2869_v31  ;;  %v2527_v56 = vadd.f32 %v2465_v25, %v2250_v59  ;;  %v1974_v59 = vadd.f32 %v8008_v51, %v7730_v19 }
 0x312   : > { %6143 = vmatmul.msk.f32.gmra.mxu2 %vm2951_vm2, %v8312_v48 }
 0x313   : > { %v2935_v27 = vadd.f32 %v8039_v52, %v2902_v9  ;;  %v2804_v50 = vadd.f32 %v2742_v14, %v2527_v56  ;;  %v8326_v14 = vpop.f32.mrf.mxu1  ;;  %v2252_v25 = vadd.f32 %v8044_v38, %v1974_v59 }
 0x314   : > { %v3108_v13 = vld [vmem:[#allocation3 + $0x110] sm:$0xff] }
 0x315   : > { %3041 = vst.msk [vmem:[#allocation3 + $0x128] sm:$0xff] %vm2951_vm2, %v2935_v27  ;;  %v2838_v57 = vadd.f32 %v7996_v21, %v2804_v50  ;;  %6162 = vmatmul.msk.f32.gmra.mxu3 %vm2951_vm2, %v8314_v35  ;;  %v2751_v10 = vpop.f32.mrf.mxu0  ;;  %v8348_v9 = vpop.f32.mrf.mxu2  ;;  %v8356_v17 = vld [vmem:[#allocation3 + $0x10f] sm:$0xff] }
 0x317   : > { %v2870_v44 = vmax.f32 %v2838_v57, 0.0  ;;  %v8358_v57 = vld [vmem:[#allocation3 + $0x49] sm:$0xff] }
 0x318   : > { %v2468_v54 = vpop.f32.mrf.mxu3  ;;  %6196 = vmatmul.msk.f32.gmra.mxu0 %vm2951_vm2, %v8141_v30  ;;  %6112 = vmatmul.msk.f32.gmra.mxu1 %vm2951_vm2, %v3107_v37 }
 0x319   : > { %v2903_v5 = vmul.f32 %v8026_v24, %v2870_v44  ;;  %v2528_v32 = vadd.f32 %v2468_v54, %v2251_v40  ;;  %v1975_v40 = vadd.f32 %v8047_v23, %v7739_v49 }
 0x31a   : > { %6144 = vmatmul.msk.f32.gmra.mxu2 %vm2951_vm2, %v8334_v2 }
 0x31b   : > { %v2936_v33 = vadd.f32 %v8039_v52, %v2903_v5  ;;  %v2805_v34 = vadd.f32 %v2745_v60, %v2528_v32  ;;  %v8353_v27 = vpop.f32.mrf.mxu1  ;;  %v2253_v54 = vadd.f32 %v8075_v20, %v1975_v40 }
 0x31c   : > { %v3109_v20 = vld [vmem:[#allocation3 + $0x128] sm:$0xff] }
 0x31d   : > { %3042 = vst.msk [vmem:[#allocation3 + $0x130] sm:$0xff] %vm2951_vm2, %v2936_v33  ;;  %v2839_v31 = vadd.f32 %v7996_v21, %v2805_v34  ;;  %6163 = vmatmul.msk.f32.gmra.mxu3 %vm2951_vm2, %v8336_v26  ;;  %v2754_v30 = vpop.f32.mrf.mxu0  ;;  %v8373_v32 = vpop.f32.mrf.mxu2  ;;  %v8376_v59 = vld [vmem:[#allocation3 + $0x127] sm:$0xff] }
 0x31f   : > { %v2871_v60 = vmax.f32 %v2839_v31, 0.0  ;;  %v8378_v31 = vld [vmem:[#allocation3 + $0x51] sm:$0xff] }
 0x320   : > { %v2471_v56 = vpop.f32.mrf.mxu3  ;;  %6197 = vmatmul.msk.f32.gmra.mxu0 %vm2951_vm2, %v8157_v36  ;;  %6113 = vmatmul.msk.f32.gmra.mxu1 %vm2951_vm2, %v3108_v13 }
 0x321   : > { %v2904_v19 = vmul.f32 %v8026_v24, %v2871_v60  ;;  %v2529_v51 = vadd.f32 %v2471_v56, %v2252_v25  ;;  %v1976_v25 = vadd.f32 %v8077_v53, %v7748_v18 }
 0x322   : > { %6145 = vmatmul.msk.f32.gmra.mxu2 %vm2951_vm2, %v8356_v17 }
 0x323   : > { %v2937_v50 = vadd.f32 %v8039_v52, %v2904_v19  ;;  %v2806_v38 = vadd.f32 %v2748_v61, %v2529_v51  ;;  %v2254_v56 = vadd.f32 %v8095_v43, %v1976_v25 }
 0x324   : > { %v8396_v40 = vld [vmem:[#allocation3 + $0x130] sm:$0xff] }
 0x325   : > { %3043 = vst.msk [vmem:[#allocation3 + $0x148] sm:$0xff] %vm2951_vm2, %v2937_v50  ;;  %v2840_v36 = vadd.f32 %v7996_v21, %v2806_v38  ;;  %6164 = vmatmul.msk.f32.gmra.mxu3 %vm2951_vm2, %v8358_v57  ;;  %v2757_v44 = vpop.f32.mrf.mxu0  ;;  %v3244_v37 = vpop.f32.mrf.mxu1 }
 0x327   : > { %v2872_v61 = vmax.f32 %v2840_v36, 0.0  ;;  %v8398_v36 = vld [vmem:[#allocation3 + $0x12f] sm:$0xff] }
 0x328   : > { %v2474_v5 = vpop.f32.mrf.mxu3  ;;  %6198 = vmatmul.msk.f32.gmra.mxu0 %vm2951_vm2, %v8171_v12  ;;  %6114 = vmatmul.msk.f32.gmra.mxu1 %vm2951_vm2, %v3109_v20 }
 0x329   : > { %v2905_v49 = vmul.f32 %v8026_v24, %v2872_v61  ;;  %v2530_v23 = vadd.f32 %v2474_v5, %v2253_v54  ;;  %v8400_v54 = vld [vmem:[#allocation3 + $0x69] sm:$0xff]  ;;  %v1977_v61 = vadd.f32 %v8097_v58, %v7757_v42 }
 0x32a   : > { %6146 = vmatmul.msk.f32.gmra.mxu2 %vm2951_vm2, %v8376_v59 }
 0x32b   : > { %v2938_v33 = vadd.f32 %v8039_v52, %v2905_v49  ;;  %v2807_v34 = vadd.f32 %v2751_v10, %v2530_v23 }
 0x32c   : > { %v8419_v25 = vld [vmem:[#allocation3 + $0x148] sm:$0xff] }
 0x32d   : > { %3044 = vst.msk [vmem:[#allocation3 + $0x150] sm:$0xff] %vm2951_vm2, %v2938_v33  ;;  %v2841_v12 = vadd.f32 %v7996_v21, %v2807_v34  ;;  %6165 = vmatmul.msk.f32.gmra.mxu3 %vm2951_vm2, %v8378_v31  ;;  %v2760_v60 = vpop.f32.mrf.mxu0  ;;  %v3453_v51 = vpop.f32.mrf.mxu2 }
 0x32e   : > { %v8393_v50 = vadd.f32 %v3453_v51, %v3244_v37  ;;  %v3247_v43 = vpop.f32.mrf.mxu1  ;;  %v9898_v51 = vld [vmem:[#allocation10_spill] sm:$0xff] }
 0x32f   : > { %v2873_v10 = vmax.f32 %v2841_v12, 0.0  ;;  %v8421_v12 = vld [vmem:[#allocation3 + $0x147] sm:$0xff] }
 0x330   : > { %v2477_v19 = vpop.f32.mrf.mxu3  ;;  %6199 = vmatmul.msk.f32.gmra.mxu0 %vm2951_vm2, %v8189_v8  ;;  %6115 = vmatmul.msk.f32.gmra.mxu1 %vm2951_vm2, %v8396_v40 }
 0x331   : > { %v2906_v18 = vmul.f32 %v8026_v24, %v2873_v10  ;;  %v2531_v53 = vadd.f32 %v2477_v19, %v2254_v56  ;;  %v8423_v56 = vld [vmem:[#allocation3 + $0x71] sm:$0xff] }
 0x332   : > { %6147 = vmatmul.msk.f32.gmra.mxu2 %vm2951_vm2, %v8398_v36  ;;  %v9896_v10 = vld [vmem:[#allocation17_spill] sm:$0xff] }
 0x333   : > { %v2939_v38 = vadd.f32 %v8039_v52, %v2906_v18  ;;  %v2808_v13 = vadd.f32 %v2754_v30, %v2531_v53  ;;  %v2255_v30 = vadd.f32 %v8114_v28, %v1977_v61  ;;  %v9897_v19 = vld [vmem:[#allocation29_spill] sm:$0xff] }
 0x334   : > { %v1978_v18 = vadd.f32 %v9897_v19, %v9896_v10  ;;  %v9900_v10 = vld [vmem:[#allocation31_spill] sm:$0xff] }
 0x335   : > { %3045 = vst.msk [vmem:[#allocation3 + $0x168] sm:$0xff] %vm2951_vm2, %v2939_v38  ;;  %v2842_v8 = vadd.f32 %v7996_v21, %v2808_v13  ;;  %6166 = vmatmul.msk.f32.gmra.mxu3 %vm2951_vm2, %v8400_v54  ;;  %v2763_v5 = vpop.f32.mrf.mxu0  ;;  %v3456_v33 = vpop.f32.mrf.mxu2 }
 0x336   : > { %v8416_v34 = vadd.f32 %v3456_v33, %v3247_v43  ;;  %v3250_v20 = vpop.f32.mrf.mxu1  ;;  %v8444_v33 = vld [vmem:[#allocation3 + $0x14f] sm:$0xff] }
 0x337   : > { %v2874_v49 = vmax.f32 %v2842_v8, 0.0 }
 0x338   : > { %v2480_v23 = vpop.f32.mrf.mxu3  ;;  %6200 = vmatmul.msk.f32.gmra.mxu0 %vm2951_vm2, %v8212_v41  ;;  %6116 = vmatmul.msk.f32.gmra.mxu1 %vm2951_vm2, %v8419_v25 }
 0x339   : > { %v2907_v42 = vmul.f32 %v8026_v24, %v2874_v49  ;;  %v2532_v58 = vadd.f32 %v2480_v23, %v2255_v30 }
 0x33a   : > { %6148 = vmatmul.msk.f32.gmra.mxu2 %vm2951_vm2, %v8421_v12 }
 0x33b   : > { %v2940_v37 = vadd.f32 %v8039_v52, %v2907_v42  ;;  %v2809_v28 = vadd.f32 %v2757_v44, %v2532_v58  ;;  %v2256_v44 = vadd.f32 %v9898_v51, %v1978_v18  ;;  %v8442_v58 = vld [vmem:[#allocation3 + $0x150] sm:$0xff] }
 0x33d   : > { %3046 = vst.msk [vmem:[#allocation3 + $0x170] sm:$0xff] %vm2951_vm2, %v2940_v37  ;;  %v2843_v41 = vadd.f32 %v7996_v21, %v2809_v28  ;;  %6167 = vmatmul.msk.f32.gmra.mxu3 %vm2951_vm2, %v8423_v56  ;;  %v2766_v53 = vpop.f32.mrf.mxu0  ;;  %v3459_v8 = vpop.f32.mrf.mxu2  ;;  %v8446_v37 = vld [vmem:[#allocation3 + $0x89] sm:$0xff]  ;;  %v9899_v28 = vld [vmem:[#allocation18_spill] sm:$0xff] }
 0x33e   : > { %v8439_v30 = vadd.f32 %v3459_v8, %v3250_v20  ;;  %v3253_v42 = vpop.f32.mrf.mxu1  ;;  %v1979_v19 = vadd.f32 %v9900_v10, %v9899_v28  ;;  %v8465_v8 = vld [vmem:[#allocation3 + $0x168] sm:$0xff]  ;;  %v9901_v28 = vld [vmem:[#allocation7_spill] sm:$0xff] }
 0x33f   : > { %v2875_v38 = vmax.f32 %v2843_v41, 0.0  ;;  %v9902_v10 = vld [vmem:[#allocation11_spill] sm:$0xff] }
 0x340   : > { %v2483_v13 = vpop.f32.mrf.mxu3  ;;  %6201 = vmatmul.msk.f32.gmra.mxu0 %vm2951_vm2, %v8239_v47  ;;  %6117 = vmatmul.msk.f32.gmra.mxu1 %vm2951_vm2, %v8442_v58 }
 0x341   : > { %v2908_v43 = vmul.f32 %v8026_v24, %v2875_v38  ;;  %v2533_v61 = vadd.f32 %v2483_v13, %v2256_v44 }
 0x342   : > { %6149 = vmatmul.msk.f32.gmra.mxu2 %vm2951_vm2, %v8444_v33 }
 0x343   : > { %v2941_v49 = vadd.f32 %v8039_v52, %v2908_v43  ;;  %v2810_v23 = vadd.f32 %v2760_v60, %v2533_v61  ;;  %v2257_v60 = vadd.f32 %v8152_v55, %v1979_v19  ;;  %v1980_v19 = vadd.f32 %v9902_v10, %v9901_v28  ;;  %v8492_v10 = vld [vmem:[#allocation3 + $0xa9] sm:$0xff] }
 0x344   : > { %v8490_v28 = vld [vmem:[#allocation3 + $0x16f] sm:$0xff] }
 0x345   : > { %3047 = vst.msk [vmem:[#allocation3 + $0x188] sm:$0xff] %vm2951_vm2, %v2941_v49  ;;  %v2844_v47 = vadd.f32 %v7996_v21, %v2810_v23  ;;  %6168 = vmatmul.msk.f32.gmra.mxu3 %vm2951_vm2, %v8446_v37  ;;  %v2769_v20 = vpop.f32.mrf.mxu0  ;;  %v3462_v38 = vpop.f32.mrf.mxu2  ;;  %v8467_v49 = vld [vmem:[#allocation3 + $0x167] sm:$0xff]  ;;  %v8469_v23 = vld [vmem:[#allocation3 + $0x91] sm:$0xff] }
 0x346   : > { %v8462_v13 = vadd.f32 %v3462_v38, %v3253_v42  ;;  %v3256_v61 = vpop.f32.mrf.mxu1 }
 0x347   : > { %v2876_v18 = vmax.f32 %v2844_v47, 0.0 }
 0x348   : > { %v2486_v41 = vpop.f32.mrf.mxu3  ;;  %6202 = vmatmul.msk.f32.gmra.mxu0 %vm2951_vm2, %v8259_v3  ;;  %6118 = vmatmul.msk.f32.gmra.mxu1 %vm2951_vm2, %v8465_v8 }
 0x349   : > { %v2909_v51 = vmul.f32 %v8026_v24, %v2876_v18  ;;  %v2534_v44 = vadd.f32 %v2486_v41, %v2257_v60 }
 0x34a   : > { %6150 = vmatmul.msk.f32.gmra.mxu2 %vm2951_vm2, %v8467_v49 }
 0x34b   : > { %v2942_v43 = vadd.f32 %v8039_v52, %v2909_v51  ;;  %v2811_v55 = vadd.f32 %v2763_v5, %v2534_v44  ;;  %v2258_v5 = vadd.f32 %v8173_v15, %v1980_v19  ;;  %v9904_v19 = vld [vmem:[#allocation21_spill] sm:$0xff] }
 0x34d   : > { %3048 = vst.msk [vmem:[#allocation3 + $0x190] sm:$0xff] %vm2951_vm2, %v2942_v43  ;;  %v2845_v3 = vadd.f32 %v7996_v21, %v2811_v55  ;;  %6169 = vmatmul.msk.f32.gmra.mxu3 %vm2951_vm2, %v8469_v23  ;;  %v2772_v42 = vpop.f32.mrf.mxu0  ;;  %v3465_v51 = vpop.f32.mrf.mxu2  ;;  %v8488_v55 = vld [vmem:[#allocation3 + $0x170] sm:$0xff] }
 0x34e   : > { %v8485_v44 = vadd.f32 %v3465_v51, %v3256_v61  ;;  %v3259_v43 = vpop.f32.mrf.mxu1  ;;  %9903 = vst [vmem:[#allocation33_spill] sm:$0xff] %v8488_v55 }
 0x34f   : > { %v2877_v47 = vmax.f32 %v2845_v3, 0.0  ;;  %v1981_v3 = vadd.f32 %v8177_v6, %v9904_v19  ;;  %v8513_v19 = vld [vmem:[#allocation3 + $0x187] sm:$0xff] }
 0x350   : > { %v2489_v60 = vpop.f32.mrf.mxu3  ;;  %6203 = vmatmul.msk.f32.gmra.mxu0 %vm2951_vm2, %v8276_v46  ;;  %6119 = vmatmul.msk.f32.gmra.mxu1 %vm2951_vm2, %v8488_v55 }
 0x351   : > { %v2910_v18 = vmul.f32 %v8026_v24, %v2877_v47  ;;  %v2535_v41 = vadd.f32 %v2489_v60, %v2258_v5 }
 0x352   : > { %6151 = vmatmul.msk.f32.gmra.mxu2 %vm2951_vm2, %v8490_v28 }
 0x353   : > { %v2943_v38 = vadd.f32 %v8039_v52, %v2910_v18  ;;  %v2812_v15 = vadd.f32 %v2766_v53, %v2535_v41  ;;  %v2259_v53 = vadd.f32 %v8198_v0, %v1981_v3  ;;  %v8515_v3 = vld [vmem:[#allocation3 + $0xb1] sm:$0xff] }
 0x355   : > { %3049 = vst.msk [vmem:[#allocation3 + $0x1a8] sm:$0xff] %vm2951_vm2, %v2943_v38  ;;  %v2846_v46 = vadd.f32 %v7996_v21, %v2812_v15  ;;  %6170 = vmatmul.msk.f32.gmra.mxu3 %vm2951_vm2, %v8492_v10  ;;  %v2775_v61 = vpop.f32.mrf.mxu0  ;;  %v3468_v18 = vpop.f32.mrf.mxu2  ;;  %v8511_v15 = vld [vmem:[#allocation3 + $0x188] sm:$0xff] }
 0x356   : > { %v8508_v41 = vadd.f32 %v3468_v18, %v3259_v43  ;;  %v3262_v38 = vpop.f32.mrf.mxu1  ;;  %9905 = vst [vmem:[#allocation34_spill] sm:$0xff] %v8511_v15 }
 0x357   : > { %v2878_v5 = vmax.f32 %v2846_v46, 0.0  ;;  %v9906_v46 = vld [vmem:[#allocation22_spill] sm:$0xff] }
 0x358   : > { %v2492_v47 = vpop.f32.mrf.mxu3  ;;  %6204 = vmatmul.msk.f32.gmra.mxu0 %vm2951_vm2, %v8293_v11  ;;  %v1982_v55 = vadd.f32 %v8200_v63, %v9906_v46  ;;  %6120 = vmatmul.msk.f32.gmra.mxu1 %vm2951_vm2, %v8511_v15  ;;  %v4126_v63 = vld [vmem:[%s9718_s3 + $0x48] sm:$0xff] }
 0x359   : > { %v2911_v6 = vmul.f32 %v8026_v24, %v2878_v5  ;;  %v2536_v60 = vadd.f32 %v2492_v47, %v2259_v53  ;;  %4237 = vmatpush.msrb.mxu1 %v4126_v63  ;;  %v8539_v46 = vld [vmem:[#allocation3 + $0x18f] sm:$0xff] }
 0x35a   : > { %6152 = vmatmul.msk.f32.gmra.mxu2 %vm2951_vm2, %v8513_v19  ;;  %v9908_v15 = vld [vmem:[#allocation8_spill] sm:$0xff] }
 0x35b   : > { %v2944_v51 = vadd.f32 %v8039_v52, %v2911_v6  ;;  %v2813_v0 = vadd.f32 %v2769_v20, %v2536_v60  ;;  %v2260_v20 = vadd.f32 %v8232_v1, %v1982_v55 }
 0x35d   : > { %3050 = vst.msk [vmem:[#allocation3 + $0x1b0] sm:$0xff] %vm2951_vm2, %v2944_v51  ;;  %v2847_v11 = vadd.f32 %v7996_v21, %v2813_v0  ;;  %6171 = vmatmul.msk.f32.gmra.mxu3 %vm2951_vm2, %v8515_v3  ;;  %v2778_v43 = vpop.f32.mrf.mxu0  ;;  %v3471_v1 = vpop.f32.mrf.mxu2  ;;  %v8537_v0 = vld [vmem:[#allocation3 + $0x190] sm:$0xff] }
 0x35e   : > { %v8534_v55 = vadd.f32 %v3471_v1, %v3262_v38  ;;  %v3265_v51 = vpop.f32.mrf.mxu1  ;;  %9907 = vst [vmem:[#allocation12_spill] sm:$0xff] %v8537_v0 }
 0x35f   : > { %v2879_v53 = vmax.f32 %v2847_v11, 0.0  ;;  %v8541_v11 = vld [vmem:[#allocation3 + $0xc9] sm:$0xff] }
 0x360   : > { %v2495_v5 = vpop.f32.mrf.mxu3  ;;  %6205 = vmatmul.msk.f32.gmra.mxu0 %vm2951_vm2, %v8312_v48  ;;  %v1983_v48 = vadd.f32 %v8235_v7, %v9908_v15  ;;  %6121 = vmatmul.msk.f32.gmra.mxu1 %vm2951_vm2, %v8537_v0 }
 0x361   : > { %v2912_v47 = vmul.f32 %v8026_v24, %v2879_v53  ;;  %v2537_v6 = vadd.f32 %v2495_v5, %v2260_v20 }
 0x362   : > { %6153 = vmatmul.msk.f32.gmra.mxu2 %vm2951_vm2, %v8539_v46 }
 0x363   : > { %v2945_v60 = vadd.f32 %v8039_v52, %v2912_v47  ;;  %v2814_v18 = vadd.f32 %v2772_v42, %v2537_v6  ;;  %v2261_v42 = vadd.f32 %v8253_v29, %v1983_v48  ;;  %v8564_v48 = vld [vmem:[#allocation3 + $0xd1] sm:$0xff] }
 0x365   : > { %3051 = vst.msk [vmem:[#allocation3 + $0x1c8] sm:$0xff] %vm2951_vm2, %v2945_v60  ;;  %v2848_v20 = vadd.f32 %v7996_v21, %v2814_v18  ;;  %6172 = vmatmul.msk.f32.gmra.mxu3 %vm2951_vm2, %v8541_v11  ;;  %v2781_v38 = vpop.f32.mrf.mxu0  ;;  %v3474_v5 = vpop.f32.mrf.mxu2  ;;  %v8560_v60 = vld [vmem:[#allocation3 + $0x1a8] sm:$0xff] }
 0x366   : > { %v8557_v47 = vadd.f32 %v3474_v5, %v3265_v51  ;;  %v3268_v1 = vpop.f32.mrf.mxu1  ;;  %9909 = vst [vmem:[#allocation36_spill] sm:$0xff] %v8560_v60  ;;  %v8562_v18 = vld [vmem:[#allocation3 + $0x1a7] sm:$0xff] }
 0x367   : > { %v2880_v53 = vmax.f32 %v2848_v20, 0.0  ;;  %v9910_v20 = vld [vmem:[#allocation25_spill] sm:$0xff] }
 0x368   : > { %v2498_v63 = vpop.f32.mrf.mxu3  ;;  %6206 = vmatmul.msk.f32.gmra.mxu0 %vm2951_vm2, %v8334_v2  ;;  %v1984_v0 = vadd.f32 %v8255_v16, %v9910_v20  ;;  %6122 = vmatmul.msk.f32.gmra.mxu1 %vm2951_vm2, %v8560_v60  ;;  %v8587_v20 = vld [vmem:[#allocation3 + $0xe9] sm:$0xff] }
 0x369   : > { %v2913_v7 = vmul.f32 %v8026_v24, %v2880_v53  ;;  %v2538_v15 = vadd.f32 %v2498_v63, %v2261_v42 }
 0x36a   : > { %6154 = vmatmul.msk.f32.gmra.mxu2 %vm2951_vm2, %v8562_v18 }
 0x36b   : > { %v2946_v6 = vadd.f32 %v8039_v52, %v2913_v7  ;;  %v2815_v29 = vadd.f32 %v2775_v61, %v2538_v15  ;;  %v2262_v61 = vadd.f32 %v8274_v62, %v1984_v0 }
 0x36d   : > { %3052 = vst.msk [vmem:[#allocation3 + $0x1d0] sm:$0xff] %vm2951_vm2, %v2946_v6  ;;  %v2849_v2 = vadd.f32 %v7996_v21, %v2815_v29  ;;  %6173 = vmatmul.msk.f32.gmra.mxu3 %vm2951_vm2, %v8564_v48  ;;  %v2784_v51 = vpop.f32.mrf.mxu0  ;;  %v3477_v7 = vpop.f32.mrf.mxu2  ;;  %v8583_v6 = vld [vmem:[#allocation3 + $0x1b0] sm:$0xff] }
 0x36e   : > { %v8580_v15 = vadd.f32 %v3477_v7, %v3268_v1  ;;  %v3271_v0 = vpop.f32.mrf.mxu1  ;;  %9911 = vst [vmem:[#allocation37_spill] sm:$0xff] %v8583_v6  ;;  %v8585_v29 = vld [vmem:[#allocation3 + $0x1af] sm:$0xff] }
 0x36f   : > { %v2881_v42 = vmax.f32 %v2849_v2, 0.0  ;;  %v9912_v2 = vld [vmem:[#allocation9_spill] sm:$0xff] }
 0x370   : > { %v2501_v53 = vpop.f32.mrf.mxu3  ;;  %6207 = vmatmul.msk.f32.gmra.mxu0 %vm2951_vm2, %v8356_v17  ;;  %v1985_v60 = vadd.f32 %v8280_v22, %v9912_v2  ;;  %6123 = vmatmul.msk.f32.gmra.mxu1 %vm2951_vm2, %v8583_v6  ;;  %v8611_v2 = vld [vmem:[#allocation3 + $0x1c8] sm:$0xff] }
 0x371   : > { %v2914_v16 = vmul.f32 %v8026_v24, %v2881_v42  ;;  %v2539_v63 = vadd.f32 %v2501_v53, %v2262_v61  ;;  %9913 = vst [vmem:[#allocation13_spill] sm:$0xff] %v8611_v2  ;;  %v8802_v6 = vld [vmem:[#allocation3 + $0x88] sm:$0xff] }
 0x372   : > { %6155 = vmatmul.msk.f32.gmra.mxu2 %vm2951_vm2, %v8585_v29 }
 0x373   : > { %v2947_v5 = vadd.f32 %v8039_v52, %v2914_v16  ;;  %v2816_v62 = vadd.f32 %v2778_v43, %v2539_v63  ;;  %v2263_v43 = vadd.f32 %v8300_v39, %v1985_v60  ;;  %v8606_v60 = vld [vmem:[#allocation3 + $0xf1] sm:$0xff] }
 0x375   : > { %3053 = vst.msk [vmem:[#allocation3 + $0x1e8] sm:$0xff] %vm2951_vm2, %v2947_v5  ;;  %v2850_v17 = vadd.f32 %v7996_v21, %v2816_v62  ;;  %6174 = vmatmul.msk.f32.gmra.mxu3 %vm2951_vm2, %v8587_v20  ;;  %v3965_v1 = vpop.f32.mrf.mxu0  ;;  %v3480_v16 = vpop.f32.mrf.mxu2  ;;  %v4401_v5 = vld [vmem:[%s9718_s3 + $0x58] sm:$0xff] }
 0x376   : > { %v8603_v63 = vadd.f32 %v3480_v16, %v3271_v0  ;;  %v3274_v62 = vpop.f32.mrf.mxu1  ;;  %4512 = vmatpush.msra.mxu2 %v4401_v5  ;;  %v9914_v0 = vld [vmem:[#allocation28_spill] sm:$0xff] }
 0x377   : > { %v2882_v61 = vmax.f32 %v2850_v17, 0.0  ;;  %v8613_v17 = vld [vmem:[#allocation3 + $0x1c7] sm:$0xff] }
 0x378   : > { %v2504_v42 = vpop.f32.mrf.mxu3  ;;  %6208 = vmatmul.msk.f32.gmra.mxu0 %vm2951_vm2, %v8376_v59  ;;  %v4125_v59 = vld [vmem:[%s9718_s3 + $0x40] sm:$0xff]  ;;  %6124 = vmatmul.msk.f32.gmra.mxu1 %vm2951_vm2, %v8611_v2  ;;  %v8642_v2 = vld [vmem:[#allocation3 + $0x109] sm:$0xff] }
 0x379   : > { %v2915_v22 = vmul.f32 %v8026_v24, %v2882_v61  ;;  %v2540_v53 = vadd.f32 %v2504_v42, %v2263_v43  ;;  %v1986_v43 = vadd.f32 %v8302_v4, %v9914_v0  ;;  %4238 = vmatpush.msrb.mxu1 %v4125_v59  ;;  %v4400_v42 = vld [vmem:[%s9718_s3 + $0x50] sm:$0xff] }
 0x37a   : > { %4513 = vmatpush.msra.mxu2 %v4400_v42  ;;  %v8640_v42 = vld [vmem:[#allocation3 + $0x1cf] sm:$0xff] }
 0x37b   : > { %v2948_v7 = vadd.f32 %v8039_v52, %v2915_v22  ;;  %v2817_v39 = vadd.f32 %v2781_v38, %v2540_v53  ;;  %v2264_v22 = vadd.f32 %v8328_v45, %v1986_v43  ;;  %6156 = vmatmul.msk.f32.gmra.mxu2 %vm2951_vm2, %v8613_v17  ;;  %v8638_v43 = vld [vmem:[#allocation3 + $0x1d0] sm:$0xff] }
 0x37c   : > { %9915 = vst [vmem:[#allocation19_spill] sm:$0xff] %v8638_v43 }
 0x37d   : > { %3054 = vst.msk [vmem:[#allocation3 + $0x1f0] sm:$0xff] %vm2951_vm2, %v2948_v7  ;;  %v2851_v38 = vadd.f32 %v7996_v21, %v2817_v39  ;;  %6175 = vmatmul.msk.f32.gmra.mxu3 %vm2951_vm2, %v8606_v60  ;;  %v3968_v61 = vpop.f32.mrf.mxu0  ;;  %v3483_v39 = vpop.f32.mrf.mxu2 }
 0x37e   : > { %v8635_v5 = vadd.f32 %v3483_v39, %v3274_v62  ;;  %v3277_v0 = vpop.f32.mrf.mxu1  ;;  %v3448_v62 = vadd.f32 %v8348_v9, %v8326_v14  ;;  %v8662_v39 = vld [vmem:[#allocation3 + $0x1e8] sm:$0xff] }
 0x37f   : > { %v2883_v4 = vmax.f32 %v2851_v38, 0.0  ;;  %9916 = vst [vmem:[#allocation39_spill] sm:$0xff] %v8662_v39 }
 0x380   : > { %v2507_v53 = vpop.f32.mrf.mxu3  ;;  %6209 = vmatmul.msk.f32.gmra.mxu0 %vm2951_vm2, %v8398_v36  ;;  %6125 = vmatmul.msk.f32.gmra.mxu1 %vm2951_vm2, %v8638_v43  ;;  %v8785_v43 = vld [vmem:[#allocation3 + $0x70] sm:$0xff] }
 0x381   : > { %v2916_v16 = vmul.f32 %v8026_v24, %v2883_v4  ;;  %v2541_v7 = vadd.f32 %v2507_v53, %v2264_v22 }
 0x383   : > { %v2949_v59 = vadd.f32 %v8039_v52, %v2916_v16  ;;  %v2818_v45 = vadd.f32 %v2784_v51, %v2541_v7  ;;  %6157 = vmatmul.msk.f32.gmra.mxu2 %vm2951_vm2, %v8640_v42 }
 0x385   : > { %3055 = vst.msk [vmem:[#allocation3 + $0x208] sm:$0xff] %vm2951_vm2, %v2949_v59  ;;  %v2852_v36 = vadd.f32 %v7996_v21, %v2818_v45  ;;  %6176 = vmatmul.msk.f32.gmra.mxu3 %vm2951_vm2, %v8642_v2  ;;  %v3971_v38 = vpop.f32.mrf.mxu0  ;;  %v3486_v53 = vpop.f32.mrf.mxu2  ;;  %v8664_v59 = vld [vmem:[#allocation3 + $0x1e7] sm:$0xff]  ;;  %v8666_v45 = vld [vmem:[#allocation3 + $0x111] sm:$0xff] }
 0x386   : > { %v8657_v16 = vadd.f32 %v3486_v53, %v3277_v0  ;;  %v3280_v9 = vpop.f32.mrf.mxu1 }
 0x387   : > { %v2884_v51 = vmax.f32 %v2852_v36, 0.0 }
 0x388   : > { %v3690_v22 = vpop.f32.mrf.mxu3  ;;  %6210 = vmatmul.msk.f32.gmra.mxu0 %vm2951_vm2, %v8421_v12  ;;  %v3451_v12 = vadd.f32 %v8373_v32, %v8353_v27  ;;  %6126 = vmatmul.msk.f32.gmra.mxu1 %vm2951_vm2, %v8662_v39  ;;  %v8685_v27 = vld [vmem:[#allocation3 + $0x1ef] sm:$0xff] }
 0x389   : > { %v2917_v21 = vmul.f32 %v8026_v24, %v2884_v51  ;;  %v3786_v4 = vadd.f32 %v3690_v22, %v3448_v62  ;;  %v8683_v22 = vld [vmem:[#allocation3 + $0x1f0] sm:$0xff]  ;;  %v8768_v39 = vld [vmem:[#allocation3 + $0x68] sm:$0xff] }
 0x38a   : > { %9917 = vst [vmem:[#allocation40_spill] sm:$0xff] %v8683_v22  ;;  %v8687_v32 = vld [vmem:[#allocation3 + $0x129] sm:$0xff] }
 0x38b   : > { %v2950_v7 = vadd.f32 %v8039_v52, %v2917_v21  ;;  %v8660_v14 = vadd.f32 %v3965_v1, %v3786_v4  ;;  %6158 = vmatmul.msk.f32.gmra.mxu2 %vm2951_vm2, %v8664_v59 }
 0x38d   : > { %3056 = vst.msk [vmem:[#allocation3 + $0x210] sm:$0xff] %vm2951_vm2, %v2950_v7  ;;  %6177 = vmatmul.msk.f32.gmra.mxu3 %vm2951_vm2, %v8666_v45  ;;  %v3974_v24 = vpop.f32.mrf.mxu0  ;;  %v3489_v0 = vpop.f32.mrf.mxu2 }
 0x38e   : > { %v8679_v36 = vadd.f32 %v3489_v0, %v3280_v9  ;;  %v3283_v51 = vpop.f32.mrf.mxu1 }
 0x390   : > { %v3693_v52 = vpop.f32.mrf.mxu3  ;;  %6211 = vmatmul.msk.f32.gmra.mxu0 %vm2951_vm2, %v8444_v33  ;;  %6127 = vmatmul.msk.f32.gmra.mxu1 %vm2951_vm2, %v8683_v22  ;;  %v8751_v22 = vld [vmem:[#allocation3 + $0x50] sm:$0xff] }
 0x391   : > { %v3787_v1 = vadd.f32 %v3693_v52, %v3451_v12  ;;  %v8702_v12 = vld [vmem:[#allocation3 + $0x131] sm:$0xff] }
 0x393   : > { %v8681_v62 = vadd.f32 %v3968_v61, %v3787_v1  ;;  %6159 = vmatmul.msk.f32.gmra.mxu2 %vm2951_vm2, %v8685_v27  ;;  %v4093_v1 = vld [vmem:[#allocation3 + $0x28] sm:$0xff] }
 0x395   : > { %6178 = vmatmul.msk.f32.gmra.mxu3 %vm2951_vm2, %v8687_v32  ;;  %v3977_v21 = vpop.f32.mrf.mxu0  ;;  %v3492_v4 = vpop.f32.mrf.mxu2 }
 0x396   : > { %v8698_v53 = vadd.f32 %v3492_v4, %v3283_v51  ;;  %v3286_v9 = vpop.f32.mrf.mxu1 }
 0x398   : > { %v3696_v33 = vpop.f32.mrf.mxu3  ;;  %6212 = vmatmul.msk.f32.gmra.mxu0 %vm2951_vm2, %v8467_v49  ;;  %6224 = vmatmul.msk.f32.vlgmr.msrb.gmra.mxu1 %vm2951_vm2, %v4093_v1  ;;  %v4094_v1 = vld [vmem:[#allocation3 + $0x30] sm:$0xff] }
 0x399   : > { %v3788_v61 = vadd.f32 %v3696_v33, %v8393_v50 }
 0x39b   : > { %v8700_v7 = vadd.f32 %v3971_v38, %v3788_v61  ;;  %6256 = vmatmul.msk.f32.vlgmr.msra.gmra.mxu2 %vm2951_vm2, %v8314_v35  ;;  %v8716_v61 = vld [vmem:[#allocation3 + $0x149] sm:$0xff] }
 0x39d   : > { %6179 = vmatmul.msk.f32.gmra.mxu3 %vm2951_vm2, %v8702_v12  ;;  %v3980_v52 = vpop.f32.mrf.mxu0  ;;  %v3495_v38 = vpop.f32.mrf.mxu2 }
 0x39e   : > { %v8712_v0 = vadd.f32 %v3495_v38, %v3286_v9  ;;  %v3289_v33 = vpop.f32.mrf.mxu1 }
 0x3a0   : > { %v3699_v49 = vpop.f32.mrf.mxu3  ;;  %6213 = vmatmul.msk.f32.gmra.mxu0 %vm2951_vm2, %v8490_v28  ;;  %6225 = vmatmul.msk.f32.gmra.mxu1 %vm2951_vm2, %v4094_v1  ;;  %v8734_v1 = vld [vmem:[#allocation3 + $0x48] sm:$0xff] }
 0x3a1   : > { %v3789_v50 = vadd.f32 %v3699_v49, %v8416_v34 }
 0x3a3   : > { %v8714_v51 = vadd.f32 %v3974_v24, %v3789_v50  ;;  %6257 = vmatmul.msk.f32.gmra.mxu2 %vm2951_vm2, %v8336_v26  ;;  %v8730_v50 = vld [vmem:[#allocation3 + $0x151] sm:$0xff] }
 0x3a5   : > { %6180 = vmatmul.msk.f32.gmra.mxu3 %vm2951_vm2, %v8716_v61  ;;  %v3983_v4 = vpop.f32.mrf.mxu0  ;;  %v3498_v28 = vpop.f32.mrf.mxu2 }
 0x3a6   : > { %v8726_v24 = vadd.f32 %v3498_v28, %v3289_v33  ;;  %v3292_v49 = vpop.f32.mrf.mxu1 }
 0x3a8   : > { %v3702_v35 = vpop.f32.mrf.mxu3  ;;  %6214 = vmatmul.msk.f32.gmra.mxu0 %vm2951_vm2, %v8513_v19  ;;  %6226 = vmatmul.msk.f32.gmra.mxu1 %vm2951_vm2, %v8734_v1 }
 0x3a9   : > { %v3790_v34 = vadd.f32 %v3702_v35, %v8439_v30 }
 0x3ab   : > { %v8728_v9 = vadd.f32 %v3977_v21, %v3790_v34  ;;  %6258 = vmatmul.msk.f32.gmra.mxu2 %vm2951_vm2, %v8358_v57  ;;  %v8747_v34 = vld [vmem:[#allocation3 + $0x169] sm:$0xff] }
 0x3ad   : > { %6181 = vmatmul.msk.f32.gmra.mxu3 %vm2951_vm2, %v8730_v50  ;;  %v3986_v38 = vpop.f32.mrf.mxu0  ;;  %v3501_v19 = vpop.f32.mrf.mxu2 }
 0x3ae   : > { %v8743_v21 = vadd.f32 %v3501_v19, %v3292_v49  ;;  %v3295_v35 = vpop.f32.mrf.mxu1 }
 0x3b0   : > { %v3705_v26 = vpop.f32.mrf.mxu3  ;;  %6215 = vmatmul.msk.f32.gmra.mxu0 %vm2951_vm2, %v8539_v46  ;;  %6227 = vmatmul.msk.f32.gmra.mxu1 %vm2951_vm2, %v8751_v22 }
 0x3b1   : > { %v3791_v30 = vadd.f32 %v3705_v26, %v8462_v13 }
 0x3b3   : > { %v8745_v33 = vadd.f32 %v3980_v52, %v3791_v30  ;;  %6259 = vmatmul.msk.f32.gmra.mxu2 %vm2951_vm2, %v8378_v31  ;;  %v8764_v30 = vld [vmem:[#allocation3 + $0x171] sm:$0xff] }
 0x3b5   : > { %6182 = vmatmul.msk.f32.gmra.mxu3 %vm2951_vm2, %v8747_v34  ;;  %v3989_v28 = vpop.f32.mrf.mxu0  ;;  %v3504_v46 = vpop.f32.mrf.mxu2 }
 0x3b6   : > { %v8760_v52 = vadd.f32 %v3504_v46, %v3295_v35  ;;  %v3298_v26 = vpop.f32.mrf.mxu1 }
 0x3b8   : > { %v3708_v57 = vpop.f32.mrf.mxu3  ;;  %6216 = vmatmul.msk.f32.gmra.mxu0 %vm2951_vm2, %v8562_v18  ;;  %6228 = vmatmul.msk.f32.gmra.mxu1 %vm2951_vm2, %v8768_v39 }
 0x3b9   : > { %v3792_v13 = vadd.f32 %v3708_v57, %v8485_v44 }
 0x3bb   : > { %v8762_v49 = vadd.f32 %v3983_v4, %v3792_v13  ;;  %6260 = vmatmul.msk.f32.gmra.mxu2 %vm2951_vm2, %v8400_v54  ;;  %v8781_v13 = vld [vmem:[#allocation3 + $0x189] sm:$0xff] }
 0x3bd   : > { %6183 = vmatmul.msk.f32.gmra.mxu3 %vm2951_vm2, %v8764_v30  ;;  %v3992_v19 = vpop.f32.mrf.mxu0  ;;  %v3507_v18 = vpop.f32.mrf.mxu2 }
 0x3be   : > { %v8777_v4 = vadd.f32 %v3507_v18, %v3298_v26  ;;  %v3301_v57 = vpop.f32.mrf.mxu1 }
 0x3c0   : > { %v3711_v31 = vpop.f32.mrf.mxu3  ;;  %6217 = vmatmul.msk.f32.gmra.mxu0 %vm2951_vm2, %v8585_v29  ;;  %6229 = vmatmul.msk.f32.gmra.mxu1 %vm2951_vm2, %v8785_v43 }
 0x3c1   : > { %v3793_v44 = vadd.f32 %v3711_v31, %v8508_v41 }
 0x3c3   : > { %v8779_v35 = vadd.f32 %v3986_v38, %v3793_v44  ;;  %6261 = vmatmul.msk.f32.gmra.mxu2 %vm2951_vm2, %v8423_v56  ;;  %v8798_v44 = vld [vmem:[#allocation3 + $0x191] sm:$0xff] }
 0x3c5   : > { %6184 = vmatmul.msk.f32.gmra.mxu3 %vm2951_vm2, %v8781_v13  ;;  %v3995_v46 = vpop.f32.mrf.mxu0  ;;  %v3510_v29 = vpop.f32.mrf.mxu2 }
 0x3c6   : > { %v8794_v38 = vadd.f32 %v3510_v29, %v3301_v57  ;;  %v3304_v31 = vpop.f32.mrf.mxu1 }
 0x3c8   : > { %v3714_v54 = vpop.f32.mrf.mxu3  ;;  %6218 = vmatmul.msk.f32.gmra.mxu0 %vm2951_vm2, %v8613_v17  ;;  %6230 = vmatmul.msk.f32.gmra.mxu1 %vm2951_vm2, %v8802_v6 }
 0x3c9   : > { %v3794_v41 = vadd.f32 %v3714_v54, %v8534_v55 }
 0x3cb   : > { %v8796_v26 = vadd.f32 %v3989_v28, %v3794_v41  ;;  %6262 = vmatmul.msk.f32.gmra.mxu2 %vm2951_vm2, %v8446_v37  ;;  %v8815_v41 = vld [vmem:[#allocation3 + $0x1a9] sm:$0xff] }
 0x3cd   : > { %9918 = vst [vmem:[#allocation14_spill] sm:$0xff] %v8796_v26  ;;  %6185 = vmatmul.msk.f32.gmra.mxu3 %vm2951_vm2, %v8798_v44  ;;  %v3998_v18 = vpop.f32.mrf.mxu0  ;;  %v3513_v17 = vpop.f32.mrf.mxu2  ;;  %v8819_v26 = vld [vmem:[#allocation3 + $0x90] sm:$0xff] }
 0x3ce   : > { %v8811_v28 = vadd.f32 %v3513_v17, %v3304_v31  ;;  %v3307_v54 = vpop.f32.mrf.mxu1 }
 0x3d0   : > { %v3717_v56 = vpop.f32.mrf.mxu3  ;;  %6219 = vmatmul.msk.f32.gmra.mxu0 %vm2951_vm2, %v8640_v42  ;;  %6231 = vmatmul.msk.f32.gmra.mxu1 %vm2951_vm2, %v8819_v26 }
 0x3d1   : > { %v3795_v55 = vadd.f32 %v3717_v56, %v8557_v47 }
 0x3d3   : > { %v8813_v57 = vadd.f32 %v3992_v19, %v3795_v55  ;;  %6263 = vmatmul.msk.f32.gmra.mxu2 %vm2951_vm2, %v8469_v23  ;;  %v8832_v55 = vld [vmem:[#allocation3 + $0x1b1] sm:$0xff] }
 0x3d5   : > { %9919 = vst [vmem:[#allocation23_spill] sm:$0xff] %v8813_v57  ;;  %6186 = vmatmul.msk.f32.gmra.mxu3 %vm2951_vm2, %v8815_v41  ;;  %v4001_v29 = vpop.f32.mrf.mxu0  ;;  %v3516_v42 = vpop.f32.mrf.mxu2  ;;  %v8836_v57 = vld [vmem:[#allocation3 + $0xa8] sm:$0xff] }
 0x3d6   : > { %v8828_v19 = vadd.f32 %v3516_v42, %v3307_v54  ;;  %v3310_v56 = vpop.f32.mrf.mxu1 }
 0x3d8   : > { %v3720_v37 = vpop.f32.mrf.mxu3  ;;  %6220 = vmatmul.msk.f32.gmra.mxu0 %vm2951_vm2, %v8664_v59  ;;  %6232 = vmatmul.msk.f32.gmra.mxu1 %vm2951_vm2, %v8836_v57 }
 0x3d9   : > { %v3796_v47 = vadd.f32 %v3720_v37, %v8580_v15 }
 0x3db   : > { %v8830_v31 = vadd.f32 %v3995_v46, %v3796_v47  ;;  %6264 = vmatmul.msk.f32.gmra.mxu2 %vm2951_vm2, %v8492_v10  ;;  %v8849_v47 = vld [vmem:[#allocation3 + $0x1c9] sm:$0xff] }
 0x3dc   : > { %v8859_v10 = vld [vmem:[#allocation3 + $0x207] sm:$0xff] }
 0x3dd   : > { %9920 = vst [vmem:[#allocation54_spill] sm:$0xff] %v8830_v31  ;;  %6187 = vmatmul.msk.f32.gmra.mxu3 %vm2951_vm2, %v8832_v55  ;;  %v4004_v17 = vpop.f32.mrf.mxu0  ;;  %v3519_v59 = vpop.f32.mrf.mxu2  ;;  %v8853_v31 = vld [vmem:[#allocation3 + $0xb0] sm:$0xff] }
 0x3de   : > { %v8845_v46 = vadd.f32 %v3519_v59, %v3310_v56  ;;  %v3313_v37 = vpop.f32.mrf.mxu1  ;;  %9922 = vst [vmem:[#allocation43_spill] sm:$0xff] %v8859_v10  ;;  %v8868_v59 = vld [vmem:[#allocation3 + $0x1d1] sm:$0xff] }
 0x3df   : > { %9924 = vst [vmem:[#allocation26_spill] sm:$0xff] %v8868_v59 }
 0x3e0   : > { %v3723_v23 = vpop.f32.mrf.mxu3  ;;  %6221 = vmatmul.msk.f32.gmra.mxu0 %vm2951_vm2, %v8685_v27  ;;  %6233 = vmatmul.msk.f32.gmra.mxu1 %vm2951_vm2, %v8853_v31 }
 0x3e1   : > { %v3797_v15 = vadd.f32 %v3723_v23, %v8603_v63 }
 0x3e3   : > { %v8847_v54 = vadd.f32 %v3998_v18, %v3797_v15  ;;  %6265 = vmatmul.msk.f32.gmra.mxu2 %vm2951_vm2, %v8515_v3  ;;  %v4952_v3 = vld [vmem:[%s9718_s3 + $0x78] sm:$0xff] }
 0x3e4   : > { %5063 = vmatpush.msra.mxu0 %v4952_v3 }
 0x3e5   : > { %9921 = vst [vmem:[#allocation42_spill] sm:$0xff] %v8847_v54  ;;  %6188 = vmatmul.msk.f32.gmra.mxu3 %vm2951_vm2, %v8849_v47  ;;  %v4007_v42 = vpop.f32.mrf.mxu0  ;;  %v3522_v18 = vpop.f32.mrf.mxu2 }
 0x3e6   : > { %v8864_v56 = vadd.f32 %v3522_v18, %v3313_v37  ;;  %v3316_v15 = vpop.f32.mrf.mxu1 }
 0x3e8   : > { %v3726_v63 = vpop.f32.mrf.mxu3  ;;  %6222 = vmatmul.msk.f32.gmra.mxu0 %vm2951_vm2, %v8859_v10  ;;  %v8875_v10 = vld [vmem:[#allocation3 + $0xc8] sm:$0xff] }
 0x3e9   : > { %v3798_v27 = vadd.f32 %v3726_v63, %v8635_v5  ;;  %6234 = vmatmul.msk.f32.gmra.mxu1 %vm2951_vm2, %v8875_v10  ;;  %v8881_v5 = vld [vmem:[#allocation3 + $0x20f] sm:$0xff] }
 0x3ea   : > { %9925 = vst [vmem:[#allocation57_spill] sm:$0xff] %v8881_v5 }
 0x3eb   : > { %v8866_v23 = vadd.f32 %v4001_v29, %v3798_v27  ;;  %6266 = vmatmul.msk.f32.gmra.mxu2 %vm2951_vm2, %v8541_v11  ;;  %v4951_v29 = vld [vmem:[%s9718_s3 + $0x70] sm:$0xff]  ;;  %v4677_v11 = vld [vmem:[%s9718_s3 + $0x68] sm:$0xff] }
 0x3ec   : > { %5064 = vmatpush.msra.mxu0 %v4951_v29  ;;  %4788 = vmatpush.msrb.mxu3 %v4677_v11 }
 0x3ed   : > { %9923 = vst [vmem:[#allocation16_spill] sm:$0xff] %v8866_v23  ;;  %6189 = vmatmul.msk.f32.gmra.mxu3 %vm2951_vm2, %v8868_v59  ;;  %v4010_v54 = vpop.f32.mrf.mxu0  ;;  %v3525_v27 = vpop.f32.mrf.mxu2  ;;  %v8896_v59 = vld [vmem:[#allocation3 + $0x1e9] sm:$0xff] }
 0x3ee   : > { %v8889_v18 = vadd.f32 %v3525_v27, %v3316_v15  ;;  %v3319_v23 = vpop.f32.mrf.mxu1  ;;  %9927 = vst [vmem:[#allocation45_spill] sm:$0xff] %v8896_v59  ;;  %v8903_v15 = vld [vmem:[#allocation3 + $0xd0] sm:$0xff] }
 0x3f0   : > { %v3729_v37 = vpop.f32.mrf.mxu3  ;;  %6223 = vmatmul.msk.f32.gmra.mxu0 %vm2951_vm2, %v8881_v5  ;;  %v4676_v5 = vld [vmem:[%s9718_s3 + $0x60] sm:$0xff] }
 0x3f1   : > { %v3799_v63 = vadd.f32 %v3729_v37, %v8657_v16  ;;  %4789 = vmatpush.msrb.mxu3 %v4676_v5  ;;  %6235 = vmatmul.msk.f32.gmra.mxu1 %vm2951_vm2, %v8903_v15 }
 0x3f3   : > { %v8894_v3 = vadd.f32 %v4004_v17, %v3799_v63  ;;  %6267 = vmatmul.msk.f32.gmra.mxu2 %vm2951_vm2, %v8564_v48 }
 0x3f5   : > { %9926 = vst [vmem:[#allocation44_spill] sm:$0xff] %v8894_v3  ;;  %6190 = vmatmul.msk.f32.gmra.mxu3 %vm2951_vm2, %v8896_v59  ;;  %v4013_v16 = vpop.f32.mrf.mxu0  ;;  %v3528_v37 = vpop.f32.mrf.mxu2  ;;  %v8916_v3 = vld [vmem:[#allocation3 + $0x1f1] sm:$0xff]  ;;  %v8920_v59 = vld [vmem:[#allocation3 + $0xe8] sm:$0xff] }
 0x3f6   : > { %v8912_v63 = vadd.f32 %v3528_v37, %v3319_v23  ;;  %v3322_v11 = vpop.f32.mrf.mxu1 }
 0x3f8   : > { %v3732_v17 = vpop.f32.mrf.mxu3  ;;  %6320 = vmatmul.msk.f32.vlgmr.msra.gmra.mxu0 %vm2951_vm2, %v8734_v1 }
 0x3f9   : > { %v3800_v29 = vadd.f32 %v3732_v17, %v8679_v36  ;;  %6236 = vmatmul.msk.f32.gmra.mxu1 %vm2951_vm2, %v8920_v59 }
 0x3fb   : > { %v8914_v27 = vadd.f32 %v4007_v42, %v3800_v29  ;;  %6268 = vmatmul.msk.f32.gmra.mxu2 %vm2951_vm2, %v8587_v20  ;;  %v4644_v29 = vld [vmem:[#allocation3 + $0x47] sm:$0xff] }
 0x3fd   : > { %9928 = vst [vmem:[#allocation20_spill] sm:$0xff] %v8914_v27  ;;  %6191 = vmatmul.msk.f32.gmra.mxu3 %vm2951_vm2, %v8916_v3  ;;  %v4016_v5 = vpop.f32.mrf.mxu0  ;;  %v8934_v27 = vld [vmem:[#allocation3 + $0xf0] sm:$0xff] }
 0x3fe   : > { %v3531_v1 = vpop.f32.mrf.mxu2  ;;  %v3325_v17 = vpop.f32.mrf.mxu1 }
 0x3ff   : > { %v8929_v42 = vadd.f32 %v3531_v1, %v3322_v11 }
 0x400   : > { %v3735_v48 = vpop.f32.mrf.mxu3  ;;  %6321 = vmatmul.msk.f32.gmra.mxu0 %vm2951_vm2, %v8751_v22 }
 0x401   : > { %v3801_v36 = vadd.f32 %v3735_v48, %v8698_v53  ;;  %6237 = vmatmul.msk.f32.gmra.mxu1 %vm2951_vm2, %v8934_v27 }
 0x403   : > { %v8931_v23 = vadd.f32 %v4010_v54, %v3801_v36  ;;  %6269 = vmatmul.msk.f32.gmra.mxu2 %vm2951_vm2, %v8606_v60  ;;  %v4645_v36 = vld [vmem:[#allocation3 + $0x4f] sm:$0xff] }
 0x405   : > { %6288 = vmatmul.msk.f32.vlgmr.msrb.gmra.mxu3 %vm2951_vm2, %v4644_v29  ;;  %v4019_v37 = vpop.f32.mrf.mxu0  ;;  %v8948_v29 = vld [vmem:[#allocation3 + $0x108] sm:$0xff] }
 0x406   : > { %v3534_v53 = vpop.f32.mrf.mxu2  ;;  %v3328_v48 = vpop.f32.mrf.mxu1 }
 0x407   : > { %v8943_v54 = vadd.f32 %v3534_v53, %v3325_v17 }
 0x408   : > { %v3738_v20 = vpop.f32.mrf.mxu3  ;;  %6322 = vmatmul.msk.f32.gmra.mxu0 %vm2951_vm2, %v8768_v39 }
 0x409   : > { %v3802_v22 = vadd.f32 %v3738_v20, %v8712_v0  ;;  %6238 = vmatmul.msk.f32.gmra.mxu1 %vm2951_vm2, %v8948_v29 }
 0x40b   : > { %v8945_v11 = vadd.f32 %v4013_v16, %v3802_v22  ;;  %6270 = vmatmul.msk.f32.gmra.mxu2 %vm2951_vm2, %v8642_v2  ;;  %v4646_v22 = vld [vmem:[#allocation3 + $0x67] sm:$0xff] }
 0x40d   : > { %6289 = vmatmul.msk.f32.gmra.mxu3 %vm2951_vm2, %v4645_v36  ;;  %v4022_v1 = vpop.f32.mrf.mxu0  ;;  %v8962_v36 = vld [vmem:[#allocation3 + $0x110] sm:$0xff] }
 0x40e   : > { %v3537_v0 = vpop.f32.mrf.mxu2  ;;  %v3331_v20 = vpop.f32.mrf.mxu1 }
 0x40f   : > { %v8957_v16 = vadd.f32 %v3537_v0, %v3328_v48 }
 0x410   : > { %v3741_v60 = vpop.f32.mrf.mxu3  ;;  %6323 = vmatmul.msk.f32.gmra.mxu0 %vm2951_vm2, %v8785_v43 }
 0x411   : > { %v3803_v39 = vadd.f32 %v3741_v60, %v8726_v24  ;;  %6239 = vmatmul.msk.f32.gmra.mxu1 %vm2951_vm2, %v8962_v36 }
 0x413   : > { %v8959_v17 = vadd.f32 %v4016_v5, %v3803_v39  ;;  %6271 = vmatmul.msk.f32.gmra.mxu2 %vm2951_vm2, %v8666_v45  ;;  %v4647_v39 = vld [vmem:[#allocation3 + $0x6f] sm:$0xff] }
 0x415   : > { %6290 = vmatmul.msk.f32.gmra.mxu3 %vm2951_vm2, %v4646_v22  ;;  %v4025_v53 = vpop.f32.mrf.mxu0  ;;  %v8976_v22 = vld [vmem:[#allocation3 + $0x128] sm:$0xff] }
 0x416   : > { %v3540_v24 = vpop.f32.mrf.mxu2  ;;  %v4240_v60 = vpop.f32.mrf.mxu1 }
 0x417   : > { %v8971_v5 = vadd.f32 %v3540_v24, %v3331_v20  ;;  %v4336_v45 = vadd.f32 %v4240_v60, %v8660_v14  ;;  %v4648_v24 = vld [vmem:[#allocation3 + $0x87] sm:$0xff] }
 0x418   : > { %v3744_v2 = vpop.f32.mrf.mxu3  ;;  %6324 = vmatmul.msk.f32.gmra.mxu0 %vm2951_vm2, %v8802_v6 }
 0x419   : > { %v3804_v43 = vadd.f32 %v3744_v2, %v8743_v21  ;;  %6240 = vmatmul.msk.f32.gmra.mxu1 %vm2951_vm2, %v8976_v22 }
 0x41b   : > { %v8973_v48 = vadd.f32 %v4019_v37, %v3804_v43  ;;  %6272 = vmatmul.msk.f32.gmra.mxu2 %vm2951_vm2, %v8687_v32 }
 0x41d   : > { %6291 = vmatmul.msk.f32.gmra.mxu3 %vm2951_vm2, %v4647_v39  ;;  %v4028_v0 = vpop.f32.mrf.mxu0 }
 0x41e   : > { %v4515_v37 = vpop.f32.mrf.mxu2  ;;  %v4243_v43 = vpop.f32.mrf.mxu1 }
 0x41f   : > { %v8986_v20 = vadd.f32 %v4515_v37, %v4336_v45  ;;  %v4337_v14 = vadd.f32 %v4243_v43, %v8681_v62  ;;  %v4649_v45 = vld [vmem:[#allocation3 + $0x8f] sm:$0xff]  ;;  %v4650_v43 = vld [vmem:[#allocation3 + $0xa7] sm:$0xff] }
 0x420   : > { %v3747_v6 = vpop.f32.mrf.mxu3  ;;  %6325 = vmatmul.msk.f32.gmra.mxu0 %vm2951_vm2, %v8819_v26 }
 0x421   : > { %v3805_v21 = vadd.f32 %v3747_v6, %v8760_v52  ;;  %6241 = vmatmul.msk.f32.gmra.mxu1 %vm2951_vm2, %v8396_v40 }
 0x423   : > { %v8988_v2 = vadd.f32 %v4022_v1, %v3805_v21  ;;  %6273 = vmatmul.msk.f32.gmra.mxu2 %vm2951_vm2, %v8702_v12 }
 0x425   : > { %6292 = vmatmul.msk.f32.gmra.mxu3 %vm2951_vm2, %v4648_v24  ;;  %v4031_v39 = vpop.f32.mrf.mxu0 }
 0x426   : > { %v4518_v26 = vpop.f32.mrf.mxu2  ;;  %v4246_v6 = vpop.f32.mrf.mxu1 }
 0x427   : > { %v8999_v1 = vadd.f32 %v4518_v26, %v4337_v14  ;;  %v4338_v62 = vadd.f32 %v4246_v6, %v8700_v7  ;;  %v4651_v14 = vld [vmem:[#allocation3 + $0xaf] sm:$0xff]  ;;  %v4652_v6 = vld [vmem:[#allocation3 + $0xc7] sm:$0xff] }
 0x428   : > { %v3750_v32 = vpop.f32.mrf.mxu3  ;;  %6326 = vmatmul.msk.f32.gmra.mxu0 %vm2951_vm2, %v8836_v57 }
 0x429   : > { %v3806_v52 = vadd.f32 %v3750_v32, %v8777_v4  ;;  %6242 = vmatmul.msk.f32.gmra.mxu1 %vm2951_vm2, %v8419_v25 }
 0x42b   : > { %v9001_v60 = vadd.f32 %v4025_v53, %v3806_v52  ;;  %6274 = vmatmul.msk.f32.gmra.mxu2 %vm2951_vm2, %v8716_v61 }
 0x42d   : > { %6293 = vmatmul.msk.f32.gmra.mxu3 %vm2951_vm2, %v4649_v45  ;;  %v4034_v40 = vpop.f32.mrf.mxu0  ;;  %v9929_v45 = vld [vmem:[#allocation33_spill] sm:$0xff] }
 0x42e   : > { %v4521_v57 = vpop.f32.mrf.mxu2  ;;  %v4249_v37 = vpop.f32.mrf.mxu1 }
 0x42f   : > { %v9012_v53 = vadd.f32 %v4521_v57, %v4338_v62  ;;  %v4339_v7 = vadd.f32 %v4249_v37, %v8714_v51  ;;  %v9930_v37 = vld [vmem:[#allocation34_spill] sm:$0xff] }
 0x430   : > { %v3753_v12 = vpop.f32.mrf.mxu3  ;;  %6327 = vmatmul.msk.f32.gmra.mxu0 %vm2951_vm2, %v8853_v31 }
 0x431   : > { %v3807_v4 = vadd.f32 %v3753_v12, %v8794_v38  ;;  %6243 = vmatmul.msk.f32.gmra.mxu1 %vm2951_vm2, %v8442_v58 }
 0x433   : > { %v9014_v21 = vadd.f32 %v4028_v0, %v3807_v4  ;;  %6275 = vmatmul.msk.f32.gmra.mxu2 %vm2951_vm2, %v8730_v50  ;;  %v4653_v4 = vld [vmem:[#allocation3 + $0xcf] sm:$0xff] }
 0x435   : > { %6294 = vmatmul.msk.f32.gmra.mxu3 %vm2951_vm2, %v4650_v43  ;;  %v4037_v25 = vpop.f32.mrf.mxu0 }
 0x436   : > { %v4524_v31 = vpop.f32.mrf.mxu2  ;;  %v4252_v32 = vpop.f32.mrf.mxu1 }
 0x437   : > { %v9025_v0 = vadd.f32 %v4524_v31, %v4339_v7  ;;  %v4340_v51 = vadd.f32 %v4252_v32, %v8728_v9  ;;  %v4654_v7 = vld [vmem:[#allocation3 + $0xe7] sm:$0xff] }
 0x438   : > { %v3756_v61 = vpop.f32.mrf.mxu3  ;;  %6328 = vmatmul.msk.f32.gmra.mxu0 %vm2951_vm2, %v8875_v10  ;;  %v9931_v31 = vld [vmem:[#allocation12_spill] sm:$0xff] }
 0x439   : > { %v3808_v38 = vadd.f32 %v3756_v61, %v8811_v28  ;;  %6244 = vmatmul.msk.f32.gmra.mxu1 %vm2951_vm2, %v8465_v8 }
 0x43b   : > { %v9027_v24 = vadd.f32 %v4031_v39, %v3808_v38  ;;  %6276 = vmatmul.msk.f32.gmra.mxu2 %vm2951_vm2, %v8747_v34 }
 0x43d   : > { %6295 = vmatmul.msk.f32.gmra.mxu3 %vm2951_vm2, %v4651_v14  ;;  %v4040_v58 = vpop.f32.mrf.mxu0 }
 0x43e   : > { %v4527_v10 = vpop.f32.mrf.mxu2  ;;  %v4255_v26 = vpop.f32.mrf.mxu1 }
 0x43f   : > { %v9038_v39 = vadd.f32 %v4527_v10, %v4340_v51  ;;  %v4341_v9 = vadd.f32 %v4255_v26, %v8745_v33  ;;  %v4656_v26 = vld [vmem:[#allocation3 + $0x107] sm:$0xff] }
 0x440   : > { %v3759_v50 = vpop.f32.mrf.mxu3  ;;  %6329 = vmatmul.msk.f32.gmra.mxu0 %vm2951_vm2, %v8903_v15 }
 0x441   : > { %v3809_v28 = vadd.f32 %v3759_v50, %v8828_v19  ;;  %6245 = vmatmul.msk.f32.gmra.mxu1 %vm2951_vm2, %v9929_v45  ;;  %v4655_v50 = vld [vmem:[#allocation3 + $0xef] sm:$0xff] }
 0x443   : > { %v9040_v52 = vadd.f32 %v4034_v40, %v3809_v28  ;;  %6277 = vmatmul.msk.f32.gmra.mxu2 %vm2951_vm2, %v8764_v30 }
 0x445   : > { %6296 = vmatmul.msk.f32.gmra.mxu3 %vm2951_vm2, %v4652_v6  ;;  %v4043_v8 = vpop.f32.mrf.mxu0 }
 0x446   : > { %v4530_v15 = vpop.f32.mrf.mxu2  ;;  %v4258_v62 = vpop.f32.mrf.mxu1 }
 0x447   : > { %v9051_v40 = vadd.f32 %v4530_v15, %v4341_v9  ;;  %v4342_v33 = vadd.f32 %v4258_v62, %v8762_v49 }
 0x448   : > { %v3762_v34 = vpop.f32.mrf.mxu3  ;;  %6330 = vmatmul.msk.f32.gmra.mxu0 %vm2951_vm2, %v8920_v59 }
 0x449   : > { %v3810_v19 = vadd.f32 %v3762_v34, %v8845_v46  ;;  %6246 = vmatmul.msk.f32.gmra.mxu1 %vm2951_vm2, %v9930_v37  ;;  %v4657_v34 = vld [vmem:[#allocation3 + $0x10f] sm:$0xff]  ;;  %v9936_v37 = vld [vmem:[#allocation19_spill] sm:$0xff] }
 0x44b   : > { %v9053_v12 = vadd.f32 %v4037_v25, %v3810_v19  ;;  %6278 = vmatmul.msk.f32.gmra.mxu2 %vm2951_vm2, %v8781_v13  ;;  %v9934_v19 = vld [vmem:[#allocation13_spill] sm:$0xff] }
 0x44d   : > { %6297 = vmatmul.msk.f32.gmra.mxu3 %vm2951_vm2, %v4653_v4  ;;  %v4046_v57 = vpop.f32.mrf.mxu0  ;;  %v4658_v4 = vld [vmem:[#allocation3 + $0x127] sm:$0xff] }
 0x44e   : > { %v4533_v59 = vpop.f32.mrf.mxu2  ;;  %v4261_v61 = vpop.f32.mrf.mxu1 }
 0x44f   : > { %v9064_v43 = vadd.f32 %v4533_v59, %v4342_v33  ;;  %v4343_v49 = vadd.f32 %v4261_v61, %v8779_v35  ;;  %v5227_v35 = vld [vmem:[%s9718_s3 + $0x88] sm:$0xff] }
 0x450   : > { %v3765_v30 = vpop.f32.mrf.mxu3  ;;  %6331 = vmatmul.msk.f32.gmra.mxu0 %vm2951_vm2, %v8934_v27  ;;  %5338 = vmatpush.msra.mxu1 %v5227_v35  ;;  %v4659_v61 = vld [vmem:[#allocation3 + $0x12f] sm:$0xff] }
 0x451   : > { %v3811_v46 = vadd.f32 %v3765_v30, %v8864_v56  ;;  %6247 = vmatmul.msk.f32.gmra.mxu1 %vm2951_vm2, %v9931_v31  ;;  %v9937_v30 = vld [vmem:[#allocation26_spill] sm:$0xff]  ;;  %v9939_v31 = vld [vmem:[#allocation39_spill] sm:$0xff]  ;;  %v9942_v35 = vld [vmem:[#allocation40_spill] sm:$0xff] }
 0x453   : > { %v9066_v25 = vadd.f32 %v4040_v58, %v3811_v46  ;;  %6279 = vmatmul.msk.f32.gmra.mxu2 %vm2951_vm2, %v8798_v44  ;;  %v9932_v44 = vld [vmem:[#allocation36_spill] sm:$0xff] }
 0x455   : > { %6298 = vmatmul.msk.f32.gmra.mxu3 %vm2951_vm2, %v4654_v7  ;;  %v4049_v38 = vpop.f32.mrf.mxu0 }
 0x456   : > { %v4536_v27 = vpop.f32.mrf.mxu2  ;;  %v9081_v58 = vpop.f32.mrf.mxu1 }
 0x457   : > { %v9077_v32 = vadd.f32 %v4536_v27, %v4343_v49 }
 0x458   : > { %v3768_v13 = vpop.f32.mrf.mxu3  ;;  %6332 = vmatmul.msk.f32.gmra.mxu0 %vm2951_vm2, %v8948_v29 }
 0x459   : > { %v3812_v56 = vadd.f32 %v3768_v13, %v8889_v18  ;;  %6248 = vmatmul.msk.f32.gmra.mxu1 %vm2951_vm2, %v9932_v44  ;;  %v9940_v13 = vld [vmem:[#allocation45_spill] sm:$0xff] }
 0x45b   : > { %v9079_v14 = vadd.f32 %v4043_v8, %v3812_v56  ;;  %6280 = vmatmul.msk.f32.gmra.mxu2 %vm2951_vm2, %v8815_v41  ;;  %v9933_v41 = vld [vmem:[#allocation37_spill] sm:$0xff] }
 0x45d   : > { %6299 = vmatmul.msk.f32.gmra.mxu3 %vm2951_vm2, %v4655_v50  ;;  %v4052_v51 = vpop.f32.mrf.mxu0 }
 0x45e   : > { %v9096_v10 = vpop.f32.mrf.mxu1 }
 0x460   : > { %v3771_v18 = vpop.f32.mrf.mxu3  ;;  %6333 = vmatmul.msk.f32.gmra.mxu0 %vm2951_vm2, %v8962_v36 }
 0x461   : > { %v3813_v29 = vadd.f32 %v3771_v18, %v8912_v63  ;;  %6249 = vmatmul.msk.f32.gmra.mxu1 %vm2951_vm2, %v9933_v41  ;;  %v4937_v18 = vld [vmem:[#allocation3 + $0x168] sm:$0xff] }
 0x462   : > { %v4661_v41 = vld [vmem:[#allocation3 + $0x14f] sm:$0xff] }
 0x463   : > { %v9094_v28 = vadd.f32 %v4046_v57, %v3813_v29  ;;  %6281 = vmatmul.msk.f32.gmra.mxu2 %vm2951_vm2, %v8832_v55  ;;  %v4934_v55 = vld [vmem:[#allocation3 + $0x130] sm:$0xff] }
 0x465   : > { %6300 = vmatmul.msk.f32.gmra.mxu3 %vm2951_vm2, %v4656_v26  ;;  %v4055_v6 = vpop.f32.mrf.mxu0 }
 0x466   : > { %v9108_v45 = vpop.f32.mrf.mxu1 }
 0x468   : > { %v3774_v8 = vpop.f32.mrf.mxu3  ;;  %6334 = vmatmul.msk.f32.gmra.mxu0 %vm2951_vm2, %v8976_v22 }
 0x469   : > { %v3814_v63 = vadd.f32 %v3774_v8, %v8929_v42  ;;  %6250 = vmatmul.msk.f32.gmra.mxu1 %vm2951_vm2, %v9934_v19 }
 0x46b   : > { %v9106_v36 = vadd.f32 %v4049_v38, %v3814_v63  ;;  %6282 = vmatmul.msk.f32.gmra.mxu2 %vm2951_vm2, %v8849_v47  ;;  %v4935_v47 = vld [vmem:[#allocation3 + $0x148] sm:$0xff]  ;;  %v5226_v38 = vld [vmem:[%s9718_s3 + $0x80] sm:$0xff] }
 0x46c   : > { %5339 = vmatpush.msra.mxu1 %v5226_v38  ;;  %v9158_v63 = vld [vmem:[#allocation3 + $0x208] sm:$0xff]  ;;  %v4940_v38 = vld [vmem:[#allocation3 + $0x190] sm:$0xff] }
 0x46d   : > { %6301 = vmatmul.msk.f32.gmra.mxu3 %vm2951_vm2, %v4657_v34  ;;  %v4058_v9 = vpop.f32.mrf.mxu0  ;;  %v9160_v34 = vld [vmem:[#allocation3 + $0x209] sm:$0xff] }
 0x46e   : > { %v9119_v62 = vpop.f32.mrf.mxu1 }
 0x470   : > { %v3777_v15 = vpop.f32.mrf.mxu3  ;;  %6335 = vmatmul.msk.f32.gmra.mxu0 %vm2951_vm2, %v4934_v55 }
 0x471   : > { %v3815_v42 = vadd.f32 %v3777_v15, %v8943_v54  ;;  %6251 = vmatmul.msk.f32.gmra.mxu1 %vm2951_vm2, %v9936_v37  ;;  %v4662_v15 = vld [vmem:[#allocation3 + $0x167] sm:$0xff] }
 0x472   : > { %v4939_v37 = vld [vmem:[#allocation3 + $0x188] sm:$0xff] }
 0x473   : > { %v9117_v22 = vadd.f32 %v4052_v51, %v3815_v42  ;;  %6283 = vmatmul.msk.f32.gmra.mxu2 %vm2951_vm2, %v9937_v30  ;;  %v4660_v51 = vld [vmem:[#allocation3 + $0x147] sm:$0xff] }
 0x475   : > { %9935 = vst [vmem:[#allocation30_spill] sm:$0xff] %v9117_v22  ;;  %6302 = vmatmul.msk.f32.gmra.mxu3 %vm2951_vm2, %v4658_v4  ;;  %v5066_v57 = vpop.f32.mrf.mxu0  ;;  %v9173_v4 = vld [vmem:[#allocation3 + $0x210] sm:$0xff] }
 0x476   : > { %v9130_v59 = vpop.f32.mrf.mxu1  ;;  %v5205_v22 = vld [vmem:[#allocation3 + $0xf1] sm:$0xff] }
 0x478   : > { %v3780_v33 = vpop.f32.mrf.mxu3  ;;  %6336 = vmatmul.msk.f32.gmra.mxu0 %vm2951_vm2, %v4935_v47 }
 0x479   : > { %v3816_v54 = vadd.f32 %v3780_v33, %v8957_v16  ;;  %6252 = vmatmul.msk.f32.gmra.mxu1 %vm2951_vm2, %v9939_v31  ;;  %v4936_v16 = vld [vmem:[#allocation3 + $0x150] sm:$0xff] }
 0x47b   : > { %v9128_v46 = vadd.f32 %v4055_v6, %v3816_v54  ;;  %6284 = vmatmul.msk.f32.gmra.mxu2 %vm2951_vm2, %v9940_v13  ;;  %v4663_v54 = vld [vmem:[#allocation3 + $0x16f] sm:$0xff] }
 0x47d   : > { %9938 = vst [vmem:[#allocation46_spill] sm:$0xff] %v9128_v46  ;;  %6303 = vmatmul.msk.f32.gmra.mxu3 %vm2951_vm2, %v4659_v61  ;;  %v5069_v7 = vpop.f32.mrf.mxu0  ;;  %v9950_v46 = vld [vmem:[#allocation57_spill] sm:$0xff] }
 0x47e   : > { %v9144_v50 = vpop.f32.mrf.mxu1 }
 0x480   : > { %v3783_v49 = vpop.f32.mrf.mxu3  ;;  %6337 = vmatmul.msk.f32.gmra.mxu0 %vm2951_vm2, %v4936_v16 }
 0x481   : > { %v3817_v56 = vadd.f32 %v3783_v49, %v8971_v5  ;;  %6253 = vmatmul.msk.f32.gmra.mxu1 %vm2951_vm2, %v9942_v35  ;;  %v4664_v49 = vld [vmem:[#allocation3 + $0x187] sm:$0xff] }
 0x482   : > { %v4941_v35 = vld [vmem:[#allocation3 + $0x1a8] sm:$0xff] }
 0x483   : > { %v9142_v27 = vadd.f32 %v4058_v9, %v3817_v56  ;;  %6285 = vmatmul.msk.f32.gmra.mxu2 %vm2951_vm2, %v8916_v3  ;;  %v4938_v3 = vld [vmem:[#allocation3 + $0x170] sm:$0xff] }
 0x485   : > { %9941 = vst [vmem:[#allocation47_spill] sm:$0xff] %v9142_v27  ;;  %6304 = vmatmul.msk.f32.gmra.mxu3 %vm2951_vm2, %v4660_v51  ;;  %v5072_v44 = vpop.f32.mrf.mxu0  ;;  %v4539_v51 = vpop.f32.mrf.mxu2 }
 0x486   : > { %v9155_v6 = vpop.f32.mrf.mxu1 }
 0x488   : > { %v4791_v29 = vpop.f32.mrf.mxu3  ;;  %6338 = vmatmul.msk.f32.gmra.mxu0 %vm2951_vm2, %v4937_v18 }
 0x489   : > { %v4887_v5 = vadd.f32 %v4791_v29, %v8986_v20  ;;  %6254 = vmatmul.msk.f32.gmra.mxu1 %vm2951_vm2, %v9158_v63 }
 0x48b   : > { %v9153_v26 = vadd.f32 %v5066_v57, %v4887_v5  ;;  %6286 = vmatmul.msk.f32.gmra.mxu2 %vm2951_vm2, %v9160_v34  ;;  %v9175_v57 = vld [vmem:[#allocation3 + $0x211] sm:$0xff] }
 0x48d   : > { %6305 = vmatmul.msk.f32.gmra.mxu3 %vm2951_vm2, %v4661_v41  ;;  %v5075_v8 = vpop.f32.mrf.mxu0  ;;  %v4665_v41 = vld [vmem:[#allocation3 + $0x18f] sm:$0xff] }
 0x48e   : > { %v9170_v55 = vpop.f32.mrf.mxu1 }
 0x490   : > { %v4794_v20 = vpop.f32.mrf.mxu3  ;;  %6339 = vmatmul.msk.f32.gmra.mxu0 %vm2951_vm2, %v4938_v3  ;;  %v5196_v3 = vld [vmem:[#allocation3 + $0x69] sm:$0xff] }
 0x491   : > { %v4888_v9 = vadd.f32 %v4794_v20, %v8999_v1  ;;  %6255 = vmatmul.msk.f32.gmra.mxu1 %vm2951_vm2, %v9173_v4  ;;  %v4942_v20 = vld [vmem:[#allocation3 + $0x1b0] sm:$0xff] }
 0x493   : > { %v9168_v19 = vadd.f32 %v5069_v7, %v4888_v9  ;;  %6287 = vmatmul.msk.f32.gmra.mxu2 %vm2951_vm2, %v9175_v57  ;;  %v5194_v7 = vld [vmem:[#allocation3 + $0x49] sm:$0xff]  ;;  %v4542_v9 = vpop.f32.mrf.mxu2 }
 0x495   : > { %6306 = vmatmul.msk.f32.gmra.mxu3 %vm2951_vm2, %v4662_v15  ;;  %v5078_v42 = vpop.f32.mrf.mxu0 }
 0x496   : > { %v9185_v33 = vpop.f32.mrf.mxu1 }
 0x498   : > { %v4797_v1 = vpop.f32.mrf.mxu3  ;;  %6340 = vmatmul.msk.f32.gmra.mxu0 %vm2951_vm2, %v4939_v37 }
 0x499   : > { %v4889_v30 = vadd.f32 %v4797_v1, %v9012_v53  ;;  %6352 = vmatmul.msk.f32.vlgmr.msra.gmra.mxu1 %vm2951_vm2, %v5194_v7  ;;  %v4666_v1 = vld [vmem:[#allocation3 + $0x1a7] sm:$0xff] }
 0x49a   : > { %v4943_v7 = vld [vmem:[#allocation3 + $0x1c8] sm:$0xff] }
 0x49b   : > { %v9183_v47 = vadd.f32 %v5072_v44, %v4889_v30  ;;  %v5195_v44 = vld [vmem:[#allocation3 + $0x51] sm:$0xff] }
 0x49d   : > { %6307 = vmatmul.msk.f32.gmra.mxu3 %vm2951_vm2, %v4663_v54  ;;  %v5081_v61 = vpop.f32.mrf.mxu0  ;;  %v5197_v54 = vld [vmem:[#allocation3 + $0x71] sm:$0xff] }
 0x49e   : > { %v9193_v53 = vpop.f32.mrf.mxu1 }
 0x4a0   : > { %v4800_v31 = vpop.f32.mrf.mxu3  ;;  %6341 = vmatmul.msk.f32.gmra.mxu0 %vm2951_vm2, %v4940_v38 }
 0x4a1   : > { %v4890_v13 = vadd.f32 %v4800_v31, %v9025_v0  ;;  %6353 = vmatmul.msk.f32.gmra.mxu1 %vm2951_vm2, %v5195_v44  ;;  %v5198_v44 = vld [vmem:[#allocation3 + $0x89] sm:$0xff] }
 0x4a3   : > { %v9191_v16 = vadd.f32 %v5075_v8, %v4890_v13  ;;  %v4545_v13 = vpop.f32.mrf.mxu2 }
 0x4a5   : > { %6308 = vmatmul.msk.f32.gmra.mxu3 %vm2951_vm2, %v4664_v49  ;;  %v9196_v56 = vpop.f32.mrf.mxu0 }
 0x4a6   : > { %v9203_v5 = vpop.f32.mrf.mxu1 }
 0x4a8   : > { %v4803_v18 = vpop.f32.mrf.mxu3  ;;  %6342 = vmatmul.msk.f32.gmra.mxu0 %vm2951_vm2, %v4941_v35  ;;  %v4944_v35 = vld [vmem:[#allocation3 + $0x1d0] sm:$0xff] }
 0x4a9   : > { %v4891_v29 = vadd.f32 %v4803_v18, %v9038_v39  ;;  %6354 = vmatmul.msk.f32.gmra.mxu1 %vm2951_vm2, %v5196_v3  ;;  %v4668_v3 = vld [vmem:[#allocation3 + $0x1c7] sm:$0xff] }
 0x4ab   : > { %v9201_v0 = vadd.f32 %v5078_v42, %v4891_v29 }
 0x4ad   : > { %6309 = vmatmul.msk.f32.gmra.mxu3 %vm2951_vm2, %v4665_v41  ;;  %v9206_v8 = vpop.f32.mrf.mxu0  ;;  %v4548_v41 = vpop.f32.mrf.mxu2 }
 0x4ae   : > { %v9213_v42 = vpop.f32.mrf.mxu1 }
 0x4b0   : > { %v4806_v15 = vpop.f32.mrf.mxu3  ;;  %6343 = vmatmul.msk.f32.gmra.mxu0 %vm2951_vm2, %v4942_v20  ;;  %v9943_v20 = vld [vmem:[#allocation14_spill] sm:$0xff] }
 0x4b1   : > { %v4892_v37 = vadd.f32 %v4806_v15, %v9051_v40  ;;  %6355 = vmatmul.msk.f32.gmra.mxu1 %vm2951_vm2, %v5197_v54  ;;  %v4344_v15 = vadd.f32 %v9081_v58, %v9943_v20 }
 0x4b3   : > { %v9211_v39 = vadd.f32 %v5081_v61, %v4892_v37  ;;  %v4667_v61 = vld [vmem:[#allocation3 + $0x1af] sm:$0xff]  ;;  %v4619_v54 = vadd.f32 %v4539_v51, %v4344_v15 }
 0x4b4   : > { %v5200_v51 = vld [vmem:[#allocation3 + $0xa9] sm:$0xff] }
 0x4b5   : > { %6310 = vmatmul.msk.f32.gmra.mxu3 %vm2951_vm2, %v4666_v1  ;;  %v5090_v30 = vpop.f32.mrf.mxu0  ;;  %v5199_v1 = vld [vmem:[#allocation3 + $0x91] sm:$0xff]  ;;  %v4551_v20 = vpop.f32.mrf.mxu2 }
 0x4b6   : > { %v9221_v40 = vpop.f32.mrf.mxu1 }
 0x4b8   : > { %v4809_v38 = vpop.f32.mrf.mxu3  ;;  %6344 = vmatmul.msk.f32.gmra.mxu0 %vm2951_vm2, %v4943_v7  ;;  %v4945_v7 = vld [vmem:[#allocation3 + $0x1e8] sm:$0xff] }
 0x4b9   : > { %v9219_v31 = vadd.f32 %v4809_v38, %v9064_v43  ;;  %6356 = vmatmul.msk.f32.gmra.mxu1 %vm2951_vm2, %v5198_v44 }
 0x4bd   : > { %6311 = vmatmul.msk.f32.gmra.mxu3 %vm2951_vm2, %v4667_v61  ;;  %v5093_v49 = vpop.f32.mrf.mxu0 }
 0x4be   : > { %v9229_v43 = vpop.f32.mrf.mxu1 }
 0x4c0   : > { %v4812_v18 = vpop.f32.mrf.mxu3  ;;  %6345 = vmatmul.msk.f32.gmra.mxu0 %vm2951_vm2, %v4944_v35  ;;  %v4669_v35 = vld [vmem:[#allocation3 + $0x1cf] sm:$0xff] }
 0x4c1   : > { %v9227_v29 = vadd.f32 %v4812_v18, %v9077_v32  ;;  %6357 = vmatmul.msk.f32.gmra.mxu1 %vm2951_vm2, %v5199_v1  ;;  %v9944_v18 = vld [vmem:[#allocation23_spill] sm:$0xff]  ;;  %v4946_v1 = vld [vmem:[#allocation3 + $0x1f0] sm:$0xff] }
 0x4c2   : > { %v4345_v58 = vadd.f32 %v9096_v10, %v9944_v18  ;;  %v5201_v18 = vld [vmem:[#allocation3 + $0xb1] sm:$0xff] }
 0x4c4   : > { %v4620_v15 = vadd.f32 %v4542_v9, %v4345_v58  ;;  %v4554_v58 = vpop.f32.mrf.mxu2 }
 0x4c5   : > { %6312 = vmatmul.msk.f32.gmra.mxu3 %vm2951_vm2, %v4668_v3  ;;  %v5096_v37 = vpop.f32.mrf.mxu0 }
 0x4c6   : > { %v9238_v44 = vpop.f32.mrf.mxu1 }
 0x4c8   : > { %v4815_v38 = vpop.f32.mrf.mxu3  ;;  %6346 = vmatmul.msk.f32.gmra.mxu0 %vm2951_vm2, %v4945_v7 }
 0x4c9   : > { %v4895_v32 = vadd.f32 %v4815_v38, %v4619_v54  ;;  %6358 = vmatmul.msk.f32.gmra.mxu1 %vm2951_vm2, %v5200_v51  ;;  %v4670_v38 = vld [vmem:[#allocation3 + $0x1e7] sm:$0xff] }
 0x4cb   : > { %v9236_v61 = vadd.f32 %v5090_v30, %v4895_v32  ;;  %v9945_v32 = vld [vmem:[#allocation54_spill] sm:$0xff] }
 0x4cc   : > { %v4346_v10 = vadd.f32 %v9108_v45, %v9945_v32 }
 0x4cd   : > { %6313 = vmatmul.msk.f32.gmra.mxu3 %vm2951_vm2, %v4669_v35  ;;  %v5099_v3 = vpop.f32.mrf.mxu0 }
 0x4ce   : > { %v9247_v7 = vpop.f32.mrf.mxu1  ;;  %v4621_v9 = vadd.f32 %v4545_v13, %v4346_v10 }
 0x4d0   : > { %v4818_v27 = vpop.f32.mrf.mxu3  ;;  %6347 = vmatmul.msk.f32.gmra.mxu0 %vm2951_vm2, %v4946_v1  ;;  %v4671_v1 = vld [vmem:[#allocation3 + $0x1ef] sm:$0xff] }
 0x4d1   : > { %v4896_v30 = vadd.f32 %v4818_v27, %v4620_v15  ;;  %6359 = vmatmul.msk.f32.gmra.mxu1 %vm2951_vm2, %v5201_v18 }
 0x4d3   : > { %v9245_v54 = vadd.f32 %v5093_v49, %v4896_v30  ;;  %v9946_v30 = vld [vmem:[#allocation42_spill] sm:$0xff] }
 0x4d4   : > { %v4347_v45 = vadd.f32 %v9119_v62, %v9946_v30 }
 0x4d5   : > { %6314 = vmatmul.msk.f32.gmra.mxu3 %vm2951_vm2, %v4670_v38  ;;  %v5102_v35 = vpop.f32.mrf.mxu0  ;;  %v5202_v38 = vld [vmem:[#allocation3 + $0xc9] sm:$0xff] }
 0x4d6   : > { %v9257_v15 = vpop.f32.mrf.mxu1  ;;  %v4622_v32 = vadd.f32 %v4548_v41, %v4347_v45 }
 0x4d8   : > { %v4821_v51 = vpop.f32.mrf.mxu3  ;;  %6348 = vmatmul.msk.f32.gmra.mxu0 %vm2951_vm2, %v9158_v63 }
 0x4d9   : > { %v4897_v27 = vadd.f32 %v4821_v51, %v4621_v9  ;;  %6360 = vmatmul.msk.f32.gmra.mxu1 %vm2951_vm2, %v5202_v38  ;;  %v9947_v51 = vld [vmem:[#allocation16_spill] sm:$0xff] }
 0x4da   : > { %v4348_v62 = vadd.f32 %v9130_v59, %v9947_v51  ;;  %v4949_v59 = vld [vmem:[#allocation3 + $0x228] sm:$0xff] }
 0x4db   : > { %v9255_v49 = vadd.f32 %v5096_v37, %v4897_v27  ;;  %v4557_v37 = vpop.f32.mrf.mxu2  ;;  %v9948_v27 = vld [vmem:[#allocation43_spill] sm:$0xff]  ;;  %v5204_v51 = vld [vmem:[#allocation3 + $0xe9] sm:$0xff] }
 0x4dc   : > { %v4623_v41 = vadd.f32 %v4551_v20, %v4348_v62 }
 0x4dd   : > { %6315 = vmatmul.msk.f32.gmra.mxu3 %vm2951_vm2, %v4671_v1  ;;  %v5105_v13 = vpop.f32.mrf.mxu0  ;;  %v5203_v1 = vld [vmem:[#allocation3 + $0xd1] sm:$0xff] }
 0x4de   : > { %v9267_v9 = vpop.f32.mrf.mxu1 }
 0x4e0   : > { %v4824_v10 = vpop.f32.mrf.mxu3  ;;  %6349 = vmatmul.msk.f32.gmra.mxu0 %vm2951_vm2, %v9173_v4 }
 0x4e1   : > { %v4898_v63 = vadd.f32 %v4824_v10, %v4622_v32  ;;  %6361 = vmatmul.msk.f32.gmra.mxu1 %vm2951_vm2, %v5203_v1  ;;  %v9949_v10 = vld [vmem:[#allocation44_spill] sm:$0xff] }
 0x4e2   : > { %v4674_v1 = vld [vmem:[#allocation3 + $0x227] sm:$0xff] }
 0x4e3   : > { %v9265_v18 = vadd.f32 %v5099_v3, %v4898_v63  ;;  %v4560_v32 = vpop.f32.mrf.mxu2  ;;  %v4349_v63 = vadd.f32 %v9144_v50, %v9949_v10 }
 0x4e5   : > { %6316 = vmatmul.msk.f32.gmra.mxu3 %vm2951_vm2, %v9948_v27  ;;  %v5108_v45 = vpop.f32.mrf.mxu0  ;;  %v4624_v20 = vadd.f32 %v4554_v58, %v4349_v63 }
 0x4e6   : > { %v9276_v3 = vpop.f32.mrf.mxu1 }
 0x4e8   : > { %v4827_v30 = vpop.f32.mrf.mxu3  ;;  %6350 = vmatmul.msk.f32.gmra.mxu0 %vm2951_vm2, %v4949_v59 }
 0x4e9   : > { %v4899_v38 = vadd.f32 %v4827_v30, %v4623_v41  ;;  %6362 = vmatmul.msk.f32.gmra.mxu1 %vm2951_vm2, %v5204_v51  ;;  %v4675_v51 = vld [vmem:[#allocation3 + $0x22f] sm:$0xff] }
 0x4eb   : > { %v9274_v4 = vadd.f32 %v5102_v35, %v4899_v38  ;;  %v9951_v38 = vld [vmem:[#allocation20_spill] sm:$0xff]  ;;  %v4563_v10 = vpop.f32.mrf.mxu2 }
 0x4ec   : > { %v4350_v50 = vadd.f32 %v9155_v6, %v9951_v38  ;;  %v4351_v6 = vadd.f32 %v9170_v55, %v8931_v23 }
 0x4ed   : > { %6317 = vmatmul.msk.f32.gmra.mxu3 %vm2951_vm2, %v9950_v46  ;;  %v5111_v35 = vpop.f32.mrf.mxu0  ;;  %v4950_v46 = vld [vmem:[#allocation3 + $0x230] sm:$0xff] }
 0x4ee   : > { %v9286_v30 = vpop.f32.mrf.mxu1  ;;  %v4625_v58 = vadd.f32 %v4557_v37, %v4350_v50 }
 0x4f0   : > { %v4830_v62 = vpop.f32.mrf.mxu3  ;;  %6351 = vmatmul.msk.f32.gmra.mxu0 %vm2951_vm2, %v4950_v46 }
 0x4f1   : > { %v4900_v27 = vadd.f32 %v4830_v62, %v4624_v20  ;;  %6363 = vmatmul.msk.f32.gmra.mxu1 %vm2951_vm2, %v5205_v22 }
 0x4f3   : > { %v9284_v41 = vadd.f32 %v5105_v13, %v4900_v27  ;;  %v5206_v27 = vld [vmem:[#allocation3 + $0x109] sm:$0xff]  ;;  %v4566_v37 = vpop.f32.mrf.mxu2 }
 0x4f5   : > { %6318 = vmatmul.msk.f32.gmra.mxu3 %vm2951_vm2, %v4674_v1  ;;  %v5114_v62 = vpop.f32.mrf.mxu0  ;;  %v4626_v1 = vadd.f32 %v4560_v32, %v4351_v6 }
 0x4f6   : > { %v9295_v20 = vpop.f32.mrf.mxu1 }
 0x4f8   : > { %v4833_v63 = vpop.f32.mrf.mxu3 }
 0x4f9   : > { %v4901_v59 = vadd.f32 %v4833_v63, %v4625_v58  ;;  %6364 = vmatmul.msk.f32.gmra.mxu1 %vm2951_vm2, %v5206_v27  ;;  %v5207_v58 = vld [vmem:[#allocation3 + $0x111] sm:$0xff]  ;;  %v5208_v27 = vld [vmem:[#allocation3 + $0x129] sm:$0xff] }
 0x4fb   : > { %v9293_v13 = vadd.f32 %v5108_v45, %v4901_v59  ;;  %v4352_v45 = vadd.f32 %v9185_v33, %v8945_v11  ;;  %v4569_v32 = vpop.f32.mrf.mxu2 }
 0x4fd   : > { %6319 = vmatmul.msk.f32.gmra.mxu3 %vm2951_vm2, %v4675_v51  ;;  %v5117_v63 = vpop.f32.mrf.mxu0  ;;  %v4627_v59 = vadd.f32 %v4563_v10, %v4352_v45 }
 0x4fe   : > { %v9303_v46 = vpop.f32.mrf.mxu1 }
 0x500   : > { %v4836_v38 = vpop.f32.mrf.mxu3 }
 0x501   : > { %v4902_v22 = vadd.f32 %v4836_v38, %v4626_v1  ;;  %6365 = vmatmul.msk.f32.gmra.mxu1 %vm2951_vm2, %v5207_v58  ;;  %v5209_v58 = vld [vmem:[#allocation3 + $0x131] sm:$0xff] }
 0x503   : > { %v9301_v50 = vadd.f32 %v5111_v35, %v4902_v22  ;;  %v4353_v35 = vadd.f32 %v9193_v53, %v8959_v17  ;;  %v4572_v22 = vpop.f32.mrf.mxu2 }
 0x505   : > { %v4628_v1 = vadd.f32 %v4566_v37, %v4353_v35  ;;  %v5120_v11 = vpop.f32.mrf.mxu0 }
 0x506   : > { %v9310_v6 = vpop.f32.mrf.mxu1 }
 0x508   : > { %v4839_v23 = vpop.f32.mrf.mxu3 }
 0x509   : > { %v4903_v55 = vadd.f32 %v4839_v23, %v4627_v59  ;;  %6366 = vmatmul.msk.f32.gmra.mxu1 %vm2951_vm2, %v5208_v27  ;;  %v5210_v27 = vld [vmem:[#allocation3 + $0x149] sm:$0xff] }
 0x50b   : > { %v9308_v51 = vadd.f32 %v5114_v62, %v4903_v55  ;;  %v4354_v62 = vadd.f32 %v9203_v5, %v8973_v48  ;;  %v4575_v35 = vpop.f32.mrf.mxu2  ;;  %v5469_v5 = vld [vmem:[%s9719_s4] sm:$0x7] }
 0x50d   : > { %v4629_v59 = vadd.f32 %v4569_v32, %v4354_v62  ;;  %v5123_v37 = vpop.f32.mrf.mxu0  ;;  %v4356_v62 = vadd.f32 %v9221_v40, %v9001_v60  ;;  %v9343_v40 = vperm.slane %v5469_v5, 1 }
 0x50e   : > { %v9317_v45 = vpop.f32.mrf.mxu1 }
 0x510   : > { %v4842_v33 = vpop.f32.mrf.mxu3 }
 0x511   : > { %v4904_v38 = vadd.f32 %v4842_v33, %v4628_v1  ;;  %6367 = vmatmul.msk.f32.gmra.mxu1 %vm2951_vm2, %v5209_v58  ;;  %v4631_v58 = vadd.f32 %v4575_v35, %v4356_v62  ;;  %v5212_v35 = vld [vmem:[#allocation3 + $0x169] sm:$0xff] }
 0x513   : > { %v9315_v10 = vadd.f32 %v5117_v63, %v4904_v38  ;;  %v4355_v63 = vadd.f32 %v9213_v42, %v8988_v2  ;;  %v9335_v42 = vperm.slane %v5469_v5, 0 }
 0x515   : > { %v4630_v1 = vadd.f32 %v4572_v22, %v4355_v63  ;;  %v5211_v22 = vld [vmem:[#allocation3 + $0x151] sm:$0xff] }
 0x516   : > { %v5341_v55 = vpop.f32.mrf.mxu1 }
 0x517   : > { %v5437_v2 = vadd.f32 %v5341_v55, %v9153_v26 }
 0x518   : > { %v4845_v17 = vpop.f32.mrf.mxu3 }
 0x519   : > { %v4905_v53 = vadd.f32 %v4845_v17, %v4629_v59  ;;  %6368 = vmatmul.msk.f32.gmra.mxu1 %vm2951_vm2, %v5210_v27  ;;  %v4578_v59 = vpop.f32.mrf.mxu2  ;;  %v4357_v27 = vadd.f32 %v9229_v43, %v9014_v21 }
 0x51b   : > { %v9322_v23 = vadd.f32 %v5120_v11, %v4905_v53  ;;  %v5126_v11 = vpop.f32.mrf.mxu0  ;;  %v5471_v53 = vadd.f32 %v9335_v42, %v5437_v2  ;;  %v9349_v2 = vperm.slane %v5469_v5, 2 }
 0x51d   : > { %v5503_v60 = vmax.f32 %v5471_v53, 0.0 }
 0x51e   : > { %v5344_v38 = vpop.f32.mrf.mxu1 }
 0x51f   : > { %v5438_v26 = vadd.f32 %v5344_v38, %v9168_v19  ;;  %v5536_v21 = vmul.f32 %v9343_v40, %v5503_v60  ;;  %v4358_v38 = vadd.f32 %v9238_v44, %v9027_v24 }
 0x520   : > { %v4848_v33 = vpop.f32.mrf.mxu3 }
 0x521   : > { %v4906_v48 = vadd.f32 %v4848_v33, %v4630_v1  ;;  %6369 = vmatmul.msk.f32.gmra.mxu1 %vm2951_vm2, %v5211_v22  ;;  %v5472_v43 = vadd.f32 %v9335_v42, %v5438_v26  ;;  %v9360_v5 = vadd.f32 %v9349_v2, %v5536_v21 }
 0x523   : > { %v9330_v32 = vadd.f32 %v5123_v37, %v4906_v48  ;;  %v5129_v33 = vpop.f32.mrf.mxu0  ;;  %v4632_v48 = vadd.f32 %v4578_v59, %v4357_v27  ;;  %v5504_v53 = vmax.f32 %v5472_v43, 0.0  ;;  %v4359_v43 = vadd.f32 %v9247_v7, %v9040_v52  ;;  %v5215_v7 = vld [vmem:[#allocation3 + $0x191] sm:$0xff] }
 0x526   : > { %v5347_v1 = vpop.f32.mrf.mxu1 }
 0x527   : > { %v5439_v55 = vadd.f32 %v5347_v1, %v9183_v47  ;;  %v5213_v1 = vld [vmem:[#allocation3 + $0x171] sm:$0xff] }
 0x528   : > { %v4851_v17 = vpop.f32.mrf.mxu3 }
 0x529   : > { %v4907_v63 = vadd.f32 %v4851_v17, %v4631_v58  ;;  %v5473_v62 = vadd.f32 %v9335_v42, %v5439_v55  ;;  %6370 = vmatmul.msk.f32.gmra.mxu1 %vm2951_vm2, %v5212_v35  ;;  %v4581_v17 = vpop.f32.mrf.mxu2  ;;  %v5537_v35 = vmul.f32 %v9343_v40, %v5504_v53 }
 0x52a   : > { %v4633_v60 = vadd.f32 %v4581_v17, %v4358_v38  ;;  %v5214_v17 = vld [vmem:[#allocation3 + $0x189] sm:$0xff] }
 0x52b   : > { %v9339_v37 = vadd.f32 %v5126_v11, %v4907_v63  ;;  %v5505_v22 = vmax.f32 %v5473_v62, 0.0  ;;  %v5132_v24 = vpop.f32.mrf.mxu0 }
 0x52d   : > { %v5538_v19 = vmul.f32 %v9343_v40, %v5505_v22  ;;  %v9376_v22 = vadd.f32 %v9349_v2, %v5537_v35 }
 0x52e   : > { %v5350_v59 = vpop.f32.mrf.mxu1 }
 0x52f   : > { %v5440_v63 = vadd.f32 %v5350_v59, %v9191_v16  ;;  %v9363_v27 = vadd.f32 %v9349_v2, %v5538_v19 }
 0x530   : > { %v4854_v11 = vpop.f32.mrf.mxu3 }
 0x531   : > { %v4908_v58 = vadd.f32 %v4854_v11, %v4632_v48  ;;  %v5474_v26 = vadd.f32 %v9335_v42, %v5440_v63  ;;  %6371 = vmatmul.msk.f32.gmra.mxu1 %vm2951_vm2, %v5213_v1  ;;  %v4584_v11 = vpop.f32.mrf.mxu2 }
 0x532   : > { %v4634_v19 = vadd.f32 %v4584_v11, %v4359_v43 }
 0x533   : > { %v9354_v47 = vadd.f32 %v5129_v33, %v4908_v58  ;;  %v5506_v16 = vmax.f32 %v5474_v26, 0.0  ;;  %v5135_v63 = vpop.f32.mrf.mxu0 }
 0x535   : > { %v5539_v48 = vmul.f32 %v9343_v40, %v5506_v16 }
 0x536   : > { %v5353_v21 = vpop.f32.mrf.mxu1 }
 0x537   : > { %v9379_v58 = vadd.f32 %v9349_v2, %v5539_v48  ;;  %v5441_v52 = vadd.f32 %v5353_v21, %v9201_v0  ;;  %v5216_v48 = vld [vmem:[#allocation3 + $0x1a9] sm:$0xff] }
 0x538   : > { %v4857_v44 = vpop.f32.mrf.mxu3 }
 0x539   : > { %v4909_v33 = vadd.f32 %v4857_v44, %v4633_v60  ;;  %6372 = vmatmul.msk.f32.gmra.mxu1 %vm2951_vm2, %v5214_v17  ;;  %v5475_v26 = vadd.f32 %v9335_v42, %v5441_v52 }
 0x53b   : > { %v9371_v62 = vadd.f32 %v5132_v24, %v4909_v33  ;;  %v5168_v24 = vadd.f32 %v9196_v56, %v9219_v31  ;;  %v5507_v35 = vmax.f32 %v5475_v26, 0.0  ;;  %v5169_v56 = vadd.f32 %v9206_v8, %v9227_v29 }
 0x53d   : > { %v5540_v0 = vmul.f32 %v9343_v40, %v5507_v35 }
 0x53e   : > { %v5356_v60 = vpop.f32.mrf.mxu1 }
 0x53f   : > { %v5442_v16 = vadd.f32 %v5356_v60, %v9211_v39  ;;  %v9400_v39 = vadd.f32 %v9349_v2, %v5540_v0  ;;  %v5219_v0 = vld [vmem:[#allocation3 + $0x1d1] sm:$0xff] }
 0x540   : > { %v4860_v59 = vpop.f32.mrf.mxu3 }
 0x541   : > { %v4910_v53 = vadd.f32 %v4860_v59, %v4634_v19  ;;  %6373 = vmatmul.msk.f32.gmra.mxu1 %vm2951_vm2, %v5215_v7  ;;  %v5476_v21 = vadd.f32 %v9335_v42, %v5442_v16  ;;  %v5218_v16 = vld [vmem:[#allocation3 + $0x1c9] sm:$0xff] }
 0x543   : > { %v9384_v1 = vadd.f32 %v5135_v63, %v4910_v53  ;;  %v5508_v19 = vmax.f32 %v5476_v21, 0.0  ;;  %v5217_v63 = vld [vmem:[#allocation3 + $0x1b1] sm:$0xff] }
 0x545   : > { %v5541_v7 = vmul.f32 %v9343_v40, %v5508_v19 }
 0x546   : > { %v5359_v44 = vpop.f32.mrf.mxu1 }
 0x547   : > { %v5443_v33 = vadd.f32 %v5359_v44, %v5168_v24  ;;  %v9413_v44 = vadd.f32 %v9349_v2, %v5541_v7 }
 0x549   : > { %v5477_v11 = vadd.f32 %v9335_v42, %v5443_v33  ;;  %6374 = vmatmul.msk.f32.gmra.mxu1 %vm2951_vm2, %v5216_v48 }
 0x54b   : > { %v5509_v43 = vmax.f32 %v5477_v11, 0.0 }
 0x54d   : > { %v5542_v17 = vmul.f32 %v9343_v40, %v5509_v43 }
 0x54e   : > { %v5362_v31 = vpop.f32.mrf.mxu1 }
 0x54f   : > { %v5444_v59 = vadd.f32 %v5362_v31, %v5169_v56  ;;  %v9403_v53 = vadd.f32 %v9349_v2, %v5542_v17  ;;  %v5220_v56 = vld [vmem:[#allocation3 + $0x1e9] sm:$0xff] }
 0x551   : > { %v5478_v60 = vadd.f32 %v9335_v42, %v5444_v59  ;;  %6375 = vmatmul.msk.f32.gmra.mxu1 %vm2951_vm2, %v5217_v63 }
 0x553   : > { %v5510_v8 = vmax.f32 %v5478_v60, 0.0 }
 0x555   : > { %v5543_v29 = vmul.f32 %v9343_v40, %v5510_v8 }
 0x556   : > { %v5365_v26 = vpop.f32.mrf.mxu1 }
 0x557   : > { %v5445_v24 = vadd.f32 %v5365_v26, %v9236_v61  ;;  %v9416_v35 = vadd.f32 %v9349_v2, %v5543_v29  ;;  %v5221_v26 = vld [vmem:[#allocation3 + $0x1f1] sm:$0xff] }
 0x559   : > { %6376 = vmatmul.msk.f32.gmra.mxu1 %vm2951_vm2, %v5218_v16  ;;  %v5479_v61 = vadd.f32 %v9335_v42, %v5445_v24 }
 0x55b   : > { %v5511_v43 = vmax.f32 %v5479_v61, 0.0 }
 0x55d   : > { %v5544_v19 = vmul.f32 %v9343_v40, %v5511_v43 }
 0x55e   : > { %v5368_v48 = vpop.f32.mrf.mxu1 }
 0x55f   : > { %v5446_v11 = vadd.f32 %v5368_v48, %v9245_v54  ;;  %v9432_v29 = vadd.f32 %v9349_v2, %v5544_v19 }
 0x561   : > { %6377 = vmatmul.msk.f32.gmra.mxu1 %vm2951_vm2, %v5219_v0  ;;  %v5480_v59 = vadd.f32 %v9335_v42, %v5446_v11 }
 0x563   : > { %v5512_v7 = vmax.f32 %v5480_v59, 0.0  ;;  %v5224_v59 = vld [vmem:[#allocation3 + $0x229] sm:$0xff] }
 0x565   : > { %v5545_v48 = vmul.f32 %v9343_v40, %v5512_v7 }
 0x566   : > { %v5371_v21 = vpop.f32.mrf.mxu1 }
 0x567   : > { %v5447_v17 = vadd.f32 %v5371_v21, %v9255_v49  ;;  %v9445_v21 = vadd.f32 %v9349_v2, %v5545_v48 }
 0x569   : > { %v5481_v31 = vadd.f32 %v9335_v42, %v5447_v17  ;;  %6378 = vmatmul.msk.f32.gmra.mxu1 %vm2951_vm2, %v5220_v56  ;;  %v4361_v17 = vadd.f32 %v9267_v9, %v9066_v25 }
 0x56b   : > { %v5513_v63 = vmax.f32 %v5481_v31, 0.0 }
 0x56d   : > { %v5546_v54 = vmul.f32 %v9343_v40, %v5513_v63 }
 0x56e   : > { %v5374_v60 = vpop.f32.mrf.mxu1 }
 0x56f   : > { %v5448_v8 = vadd.f32 %v5374_v60, %v9265_v18  ;;  %v9435_v49 = vadd.f32 %v9349_v2, %v5546_v54 }
 0x571   : > { %v5482_v24 = vadd.f32 %v9335_v42, %v5448_v8  ;;  %6379 = vmatmul.msk.f32.gmra.mxu1 %vm2951_vm2, %v5221_v26 }
 0x573   : > { %v5514_v11 = vmax.f32 %v5482_v24, 0.0 }
 0x575   : > { %v5547_v0 = vmul.f32 %v9343_v40, %v5514_v11 }
 0x576   : > { %v5377_v18 = vpop.f32.mrf.mxu1 }
 0x577   : > { %v5449_v61 = vadd.f32 %v5377_v18, %v9274_v4  ;;  %v9448_v43 = vadd.f32 %v9349_v2, %v5547_v0 }
 0x579   : > { %6380 = vmatmul.msk.f32.gmra.mxu1 %vm2951_vm2, %v9160_v34  ;;  %v5483_v4 = vadd.f32 %v9335_v42, %v5449_v61 }
 0x57b   : > { %v5515_v63 = vmax.f32 %v5483_v4, 0.0 }
 0x57d   : > { %v5548_v34 = vmul.f32 %v9343_v40, %v5515_v63 }
 0x57e   : > { %v5380_v56 = vpop.f32.mrf.mxu1 }
 0x57f   : > { %v5450_v31 = vadd.f32 %v5380_v56, %v9284_v41  ;;  %v9466_v11 = vadd.f32 %v9349_v2, %v5548_v34 }
 0x581   : > { %6381 = vmatmul.msk.f32.gmra.mxu1 %vm2951_vm2, %v9175_v57  ;;  %v5484_v7 = vadd.f32 %v9335_v42, %v5450_v31  ;;  %v5225_v57 = vld [vmem:[#allocation3 + $0x231] sm:$0xff] }
 0x583   : > { %v5516_v24 = vmax.f32 %v5484_v7, 0.0 }
 0x585   : > { %v5549_v61 = vmul.f32 %v9343_v40, %v5516_v24 }
 0x586   : > { %v5383_v19 = vpop.f32.mrf.mxu1 }
 0x587   : > { %v5451_v54 = vadd.f32 %v5383_v19, %v9293_v13  ;;  %v9479_v19 = vadd.f32 %v9349_v2, %v5549_v61 }
 0x589   : > { %v5485_v60 = vadd.f32 %v9335_v42, %v5451_v54  ;;  %6382 = vmatmul.msk.f32.gmra.mxu1 %vm2951_vm2, %v5224_v59 }
 0x58b   : > { %v5517_v8 = vmax.f32 %v5485_v60, 0.0 }
 0x58d   : > { %v5550_v41 = vmul.f32 %v9343_v40, %v5517_v8 }
 0x58e   : > { %v5386_v26 = vpop.f32.mrf.mxu1 }
 0x58f   : > { %v5452_v48 = vadd.f32 %v5386_v26, %v9301_v50  ;;  %v9469_v13 = vadd.f32 %v9349_v2, %v5550_v41 }
 0x591   : > { %v5486_v0 = vadd.f32 %v9335_v42, %v5452_v48  ;;  %6383 = vmatmul.msk.f32.gmra.mxu1 %vm2951_vm2, %v5225_v57 }
 0x593   : > { %v5518_v56 = vmax.f32 %v5486_v0, 0.0 }
 0x595   : > { %v5551_v31 = vmul.f32 %v9343_v40, %v5518_v56 }
 0x596   : > { %v5389_v4 = vpop.f32.mrf.mxu1 }
 0x597   : > { %v5453_v50 = vadd.f32 %v5389_v4, %v9308_v51  ;;  %v9482_v59 = vadd.f32 %v9349_v2, %v5551_v31  ;;  %v4363_v4 = vadd.f32 %v9286_v30, %v9094_v28 }
 0x599   : > { %v5487_v34 = vadd.f32 %v9335_v42, %v5453_v50 }
 0x59b   : > { %v5519_v8 = vmax.f32 %v5487_v34, 0.0 }
 0x59d   : > { %v5552_v26 = vmul.f32 %v9343_v40, %v5519_v8 }
 0x59e   : > { %v5392_v54 = vpop.f32.mrf.mxu1 }
 0x59f   : > { %v5454_v60 = vadd.f32 %v5392_v54, %v9315_v10  ;;  %v9495_v10 = vadd.f32 %v9349_v2, %v5552_v26 }
 0x5a1   : > { %v5488_v57 = vadd.f32 %v9335_v42, %v5454_v60 }
 0x5a3   : > { %v5520_v61 = vmax.f32 %v5488_v57, 0.0 }
 0x5a5   : > { %v5553_v50 = vmul.f32 %v9343_v40, %v5520_v61 }
 0x5a6   : > { %v5395_v7 = vpop.f32.mrf.mxu1 }
 0x5a7   : > { %v5455_v41 = vadd.f32 %v5395_v7, %v9322_v23 }
 0x5a9   : > { %v5489_v51 = vadd.f32 %v9335_v42, %v5455_v41 }
 0x5ab   : > { %v5521_v24 = vmax.f32 %v5489_v51, 0.0  ;;  %v4587_v51 = vpop.f32.mrf.mxu2 }
 0x5ad   : > { %v5554_v48 = vmul.f32 %v9343_v40, %v5521_v24  ;;  %v4863_v24 = vpop.f32.mrf.mxu3 }
 0x5ae   : > { %v5398_v0 = vpop.f32.mrf.mxu1 }
 0x5af   : > { %v5456_v56 = vadd.f32 %v5398_v0, %v9330_v32  ;;  %v9498_v31 = vadd.f32 %v9349_v2, %v5554_v48  ;;  %v9507_v32 = vadd.f32 %v9349_v2, %v5553_v50  ;;  %v5138_v0 = vpop.f32.mrf.mxu0 }
 0x5b1   : > { %v5490_v23 = vadd.f32 %v9335_v42, %v5456_v56 }
 0x5b3   : > { %v5522_v54 = vmax.f32 %v5490_v23, 0.0  ;;  %v4590_v23 = vpop.f32.mrf.mxu2 }
 0x5b5   : > { %v5555_v60 = vmul.f32 %v9343_v40, %v5522_v54  ;;  %v4866_v54 = vpop.f32.mrf.mxu3 }
 0x5b6   : > { %v5401_v34 = vpop.f32.mrf.mxu1 }
 0x5b7   : > { %v5457_v7 = vadd.f32 %v5401_v34, %v9339_v37  ;;  %v9510_v8 = vadd.f32 %v9349_v2, %v5555_v60 }
 0x5b9   : > { %v5491_v48 = vadd.f32 %v9335_v42, %v5457_v7 }
 0x5bb   : > { %v5523_v56 = vmax.f32 %v5491_v48, 0.0  ;;  %v5141_v48 = vpop.f32.mrf.mxu0 }
 0x5bd   : > { %v5556_v60 = vmul.f32 %v9343_v40, %v5523_v56 }
 0x5be   : > { %v5404_v26 = vpop.f32.mrf.mxu1 }
 0x5bf   : > { %v5458_v57 = vadd.f32 %v5404_v26, %v9354_v47  ;;  %v9523_v52 = vadd.f32 %v9349_v2, %v5556_v60 }
 0x5c1   : > { %v5492_v34 = vadd.f32 %v9335_v42, %v5458_v57  ;;  %v4593_v57 = vpop.f32.mrf.mxu2 }
 0x5c3   : > { %v5524_v26 = vmax.f32 %v5492_v34, 0.0 }
 0x5c6   : > { %v5407_v61 = vpop.f32.mrf.mxu1 }
 0x5c7   : > { %v5459_v37 = vadd.f32 %v5407_v61, %v9371_v62 }
 0x5c9   : > { %v5493_v50 = vadd.f32 %v9335_v42, %v5459_v37  ;;  %v5557_v37 = vmul.f32 %v9343_v40, %v5524_v26  ;;  %v5144_v26 = vpop.f32.mrf.mxu0 }
 0x5cb   : > { %v5525_v55 = vmax.f32 %v5493_v50, 0.0  ;;  %v4869_v50 = vpop.f32.mrf.mxu3 }
 0x5cd   : > { %v5558_v38 = vmul.f32 %v9343_v40, %v5525_v55 }
 0x5ce   : > { %v5410_v47 = vpop.f32.mrf.mxu1 }
 0x5cf   : > { %v5460_v7 = vadd.f32 %v5410_v47, %v9384_v1  ;;  %v9526_v62 = vadd.f32 %v9349_v2, %v5558_v38  ;;  %v4360_v1 = vadd.f32 %v9257_v15, %v9053_v12  ;;  %v9536_v38 = vadd.f32 %v9349_v2, %v5557_v37 }
 0x5d0   : > { %v4362_v12 = vadd.f32 %v9276_v3, %v9079_v14  ;;  %v4636_v37 = vadd.f32 %v4590_v23, %v4361_v17 }
 0x5d1   : > { %v5494_v61 = vadd.f32 %v9335_v42, %v5460_v7  ;;  %v4635_v47 = vadd.f32 %v4587_v51, %v4360_v1 }
 0x5d2   : > { %v4637_v1 = vadd.f32 %v4593_v57, %v4362_v12 }
 0x5d3   : > { %v5526_v55 = vmax.f32 %v5494_v61, 0.0  ;;  %v4911_v33 = vadd.f32 %v4863_v24, %v4635_v47  ;;  %v4596_v61 = vpop.f32.mrf.mxu2  ;;  %v4872_v51 = vpop.f32.mrf.mxu3 }
 0x5d4   : > { %v4913_v63 = vadd.f32 %v4869_v50, %v4637_v1  ;;  %v5147_v47 = vpop.f32.mrf.mxu0  ;;  %v4638_v16 = vadd.f32 %v4596_v61, %v4363_v4 }
 0x5d5   : > { %v5559_v60 = vmul.f32 %v9343_v40, %v5526_v55  ;;  %v5186_v15 = vadd.f32 %v5138_v0, %v4911_v33 }
 0x5d6   : > { %v5413_v34 = vpop.f32.mrf.mxu1  ;;  %v5188_v56 = vadd.f32 %v5144_v26, %v4913_v63  ;;  %v4914_v17 = vadd.f32 %v4872_v51, %v4638_v16  ;;  %v4364_v51 = vadd.f32 %v9295_v20, %v9106_v36 }
 0x5d7   : > { %v9539_v7 = vadd.f32 %v9349_v2, %v5559_v60  ;;  %v5461_v18 = vadd.f32 %v5413_v34, %v5186_v15  ;;  %v4912_v60 = vadd.f32 %v4866_v54, %v4636_v37 }
 0x5d8   : > { %v5189_v28 = vadd.f32 %v5147_v47, %v4914_v17  ;;  %v9952_v17 = vld [vmem:[#allocation30_spill] sm:$0xff] }
 0x5d9   : > { %v5495_v24 = vadd.f32 %v9335_v42, %v5461_v18  ;;  %v5187_v41 = vadd.f32 %v5141_v48, %v4912_v60 }
 0x5db   : > { %v4599_v25 = vpop.f32.mrf.mxu2  ;;  %v5527_v14 = vmax.f32 %v5495_v24, 0.0  ;;  %v4875_v0 = vpop.f32.mrf.mxu3 }
 0x5dc   : > { %v5150_v30 = vpop.f32.mrf.mxu0  ;;  %v4639_v1 = vadd.f32 %v4599_v25, %v4364_v51 }
 0x5dd   : > { %v5560_v54 = vmul.f32 %v9343_v40, %v5527_v14 }
 0x5de   : > { %v5416_v55 = vpop.f32.mrf.mxu1 }
 0x5df   : > { %v5462_v3 = vadd.f32 %v5416_v55, %v5187_v41  ;;  %v9555_v4 = vadd.f32 %v9349_v2, %v5560_v54  ;;  %v9953_v54 = vld [vmem:[#allocation46_spill] sm:$0xff] }
 0x5e1   : > { %v5496_v18 = vadd.f32 %v9335_v42, %v5462_v3 }
 0x5e3   : > { %v5528_v48 = vmax.f32 %v5496_v18, 0.0  ;;  %v4602_v16 = vpop.f32.mrf.mxu2  ;;  %v4878_v61 = vpop.f32.mrf.mxu3  ;;  %v4366_v18 = vadd.f32 %v9310_v6, %v9953_v54 }
 0x5e4   : > { %v5153_v47 = vpop.f32.mrf.mxu0 }
 0x5e5   : > { %v5561_v12 = vmul.f32 %v9343_v40, %v5528_v48 }
 0x5e6   : > { %v5419_v9 = vpop.f32.mrf.mxu1 }
 0x5e7   : > { %v5463_v33 = vadd.f32 %v5419_v9, %v5188_v56  ;;  %v5594_v60 = vadd.f32 %v9349_v2, %v5561_v12  ;;  %v4915_v9 = vadd.f32 %v4875_v0, %v4639_v1 }
 0x5e9   : > { %v5497_v23 = vadd.f32 %v9335_v42, %v5463_v33  ;;  %v5190_v36 = vadd.f32 %v5150_v30, %v4915_v9 }
 0x5eb   : > { %v5529_v57 = vmax.f32 %v5497_v23, 0.0  ;;  %v4605_v3 = vpop.f32.mrf.mxu2  ;;  %v4881_v33 = vpop.f32.mrf.mxu3  ;;  %v4365_v23 = vadd.f32 %v9303_v46, %v9952_v17 }
 0x5ed   : > { %v5562_v50 = vmul.f32 %v9343_v40, %v5529_v57  ;;  %v4640_v57 = vadd.f32 %v4602_v16, %v4365_v23 }
 0x5ee   : > { %v5422_v63 = vpop.f32.mrf.mxu1 }
 0x5ef   : > { %v5464_v34 = vadd.f32 %v5422_v63, %v5189_v28  ;;  %v9558_v41 = vadd.f32 %v9349_v2, %v5562_v50  ;;  %v4641_v50 = vadd.f32 %v4605_v3, %v4366_v18  ;;  %v5156_v28 = vpop.f32.mrf.mxu0  ;;  %v4916_v63 = vadd.f32 %v4878_v61, %v4640_v57 }
 0x5f1   : > { %v5498_v56 = vadd.f32 %v9335_v42, %v5464_v34  ;;  %v5613_v26 = vmax.f32 %v9555_v4, %v9558_v41  ;;  %v4917_v48 = vadd.f32 %v4881_v33, %v4641_v50  ;;  %v9954_v4 = vld [vmem:[#allocation47_spill] sm:$0xff]  ;;  %v5191_v12 = vadd.f32 %v5153_v47, %v4916_v63 }
 0x5f2   : > { %v4367_v41 = vadd.f32 %v9317_v45, %v9954_v4  ;;  %v9955_v63 = vmax.f32 %v9536_v38, %v9539_v7  ;;  %v9960_v38 = vmax.f32 %v9466_v11, %v9469_v13  ;;  %v9965_v11 = vmax.f32 %v9376_v22, %v9379_v58  ;;  %v5620_v22 = vld [vmem:[%s9720_s5 + $0x18] sm:$0xff]  ;;  %v5623_v58 = vld [vmem:[%s9720_s5 + $0x30] sm:$0xff] }
 0x5f3   : > { %v5530_v15 = vmax.f32 %v5498_v56, 0.0  ;;  %v4608_v0 = vpop.f32.mrf.mxu2  ;;  %v5192_v56 = vadd.f32 %v5156_v28, %v4917_v48  ;;  %v4884_v46 = vpop.f32.mrf.mxu3  ;;  %v5628_v13 = vld [vmem:[%s9720_s5 + $0x58] sm:$0xff] }
 0x5f4   : > { %v4642_v51 = vadd.f32 %v4608_v0, %v4367_v41 }
 0x5f5   : > { %v5563_v55 = vmul.f32 %v9343_v40, %v5530_v15 }
 0x5f6   : > { %v5425_v37 = vpop.f32.mrf.mxu1  ;;  %v4918_v16 = vadd.f32 %v4884_v46, %v4642_v51 }
 0x5f7   : > { %v5596_v24 = vadd.f32 %v9349_v2, %v5563_v55  ;;  %v5465_v25 = vadd.f32 %v5425_v37, %v5190_v36  ;;  %v5159_v1 = vpop.f32.mrf.mxu0 }
 0x5f8   : > { %v5193_v9 = vadd.f32 %v5159_v1, %v4918_v16 }
 0x5f9   : > { %v5614_v14 = vmax.f32 %v5594_v60, %v5596_v24  ;;  %v5499_v34 = vadd.f32 %v9335_v42, %v5465_v25 }
 0x5fb   : > { %v5531_v6 = vmax.f32 %v5499_v34, 0.0 }
 0x5fd   : > { %v5564_v61 = vmul.f32 %v9343_v40, %v5531_v6 }
 0x5fe   : > { %v5428_v20 = vpop.f32.mrf.mxu1 }
 0x5ff   : > { %v5466_v30 = vadd.f32 %v5428_v20, %v5191_v12  ;;  %v5597_v17 = vadd.f32 %v9349_v2, %v5564_v61 }
 0x601   : > { %v5500_v60 = vadd.f32 %v9335_v42, %v5466_v30 }
 0x603   : > { %v5532_v47 = vmax.f32 %v5500_v60, 0.0 }
 0x605   : > { %v5565_v36 = vmul.f32 %v9343_v40, %v5532_v47 }
 0x606   : > { %v5431_v15 = vpop.f32.mrf.mxu1 }
 0x607   : > { %v5467_v55 = vadd.f32 %v5431_v15, %v5192_v56  ;;  %v5598_v50 = vadd.f32 %v9349_v2, %v5565_v36 }
 0x609   : > { %v5501_v37 = vadd.f32 %v9335_v42, %v5467_v55 }
 0x60b   : > { %v5533_v24 = vmax.f32 %v5501_v37, 0.0 }
 0x60d   : > { %v5566_v45 = vmul.f32 %v9343_v40, %v5533_v24 }
 0x60e   : > { %v5434_v3 = vpop.f32.mrf.mxu1 }
 0x60f   : > { %v5468_v33 = vadd.f32 %v5434_v3, %v5193_v9  ;;  %v5599_v23 = vadd.f32 %v9349_v2, %v5566_v45 }
 0x611   : > { %v5502_v54 = vadd.f32 %v9335_v42, %v5468_v33  ;;  %v5615_v18 = vmax.f32 %v5597_v17, %v5599_v23  ;;  %v9956_v42 = vmax.f32 %v9523_v52, %v9526_v62  ;;  %v9961_v52 = vmax.f32 %v9445_v21, %v9448_v43  ;;  %v5617_v21 = vld [vmem:[%s9720_s5] sm:$0xff]  ;;  %v5627_v43 = vld [vmem:[%s9720_s5 + $0x50] sm:$0xff]  ;;  %v5632_v62 = vld [vmem:[%s9720_s5 + $0x78] sm:$0xff] }
 0x613   : > { %v5534_v20 = vmax.f32 %v5502_v54, 0.0 }
 0x615   : > { %v5567_v57 = vmul.f32 %v9343_v40, %v5534_v20  ;;  %v9957_v40 = vmax.f32 %v9507_v32, %v9510_v8  ;;  %v9962_v32 = vmax.f32 %v9432_v29, %v9435_v49  ;;  %v9966_v29 = vmax.f32 %v9360_v5, %v9363_v27  ;;  %v5621_v5 = vld [vmem:[%s9720_s5 + $0x20] sm:$0xff]  ;;  %v5622_v27 = vld [vmem:[%s9720_s5 + $0x28] sm:$0xff]  ;;  %v5631_v8 = vld [vmem:[%s9720_s5 + $0x70] sm:$0xff] }
 0x616   : > { %v5626_v49 = vld [vmem:[%s9720_s5 + $0x48] sm:$0xff] }
 0x617   : > { %v5600_v25 = vadd.f32 %v9349_v2, %v5567_v57  ;;  %v9958_v2 = vmax.f32 %v9495_v10, %v9498_v31  ;;  %v9963_v10 = vmax.f32 %v9413_v44, %v9416_v35  ;;  %v5618_v44 = vld [vmem:[%s9720_s5 + $0x8] sm:$0xff]  ;;  %v5625_v35 = vld [vmem:[%s9720_s5 + $0x40] sm:$0xff] }
 0x618   : > { %v5630_v31 = vld [vmem:[%s9720_s5 + $0x68] sm:$0xff] }
 0x619   : > { %v5616_v28 = vmax.f32 %v5598_v50, %v5600_v25 }
 0x61b   : > { %5633 = vmatpush.msrb.mxu2 %v5616_v28 }
 0x61d   : > { %5634 = vmatpush.msrb.mxu2 %v5615_v18 }
 0x61f   : > { %5635 = vmatpush.msrb.mxu2 %v5614_v14  ;;  %v9959_v14 = vmax.f32 %v9479_v19, %v9482_v59  ;;  %v9964_v19 = vmax.f32 %v9400_v39, %v9403_v53  ;;  %v5619_v39 = vld [vmem:[%s9720_s5 + $0x10] sm:$0xff]  ;;  %v5624_v53 = vld [vmem:[%s9720_s5 + $0x38] sm:$0xff]  ;;  %v5629_v59 = vld [vmem:[%s9720_s5 + $0x60] sm:$0xff] }
 0x621   : > { %5636 = vmatpush.msrb.mxu2 %v5613_v26 }
 0x623   : > { %5637 = vmatpush.msrb.mxu2 %v9955_v63 }
 0x625   : > { %5638 = vmatpush.msrb.mxu2 %v9956_v42 }
 0x627   : > { %5639 = vmatpush.msrb.mxu2 %v9957_v40 }
 0x629   : > { %5640 = vmatpush.msrb.mxu2 %v9958_v2 }
 0x62b   : > { %5641 = vmatpush.msrb.mxu2 %v9959_v14 }
 0x62d   : > { %5642 = vmatpush.msrb.mxu2 %v9960_v38 }
 0x62f   : > { %5643 = vmatpush.msrb.mxu2 %v9961_v52 }
 0x631   : > { %5644 = vmatpush.msrb.mxu2 %v9962_v32 }
 0x633   : > { %5645 = vmatpush.msrb.mxu2 %v9963_v10 }
 0x635   : > { %5646 = vmatpush.msrb.mxu2 %v9964_v19 }
 0x637   : > { %5647 = vmatpush.msrb.mxu2 %v9965_v11 }
 0x639   : > { %5648 = vmatpush.msrb.mxu2 %v9966_v29 }
 0x63a   : > { %5649 = vmatmul.f32.vlgmr.msrb.gmra.mxu2 %v5617_v21 }
 0x642   : > { %5652 = vmatmul.f32.gmra.mxu2 %v5618_v44 }
 0x64a   : > { %5655 = vmatmul.f32.gmra.mxu2 %v5619_v39 }
 0x652   : > { %5658 = vmatmul.f32.gmra.mxu2 %v5620_v22 }
 0x65a   : > { %5661 = vmatmul.f32.gmra.mxu2 %v5621_v5 }
 0x662   : > { %5664 = vmatmul.f32.gmra.mxu2 %v5622_v27 }
 0x66a   : > { %5667 = vmatmul.f32.gmra.mxu2 %v5623_v58 }
 0x672   : > { %5670 = vmatmul.f32.gmra.mxu2 %v5624_v53 }
 0x67a   : > { %5673 = vmatmul.f32.gmra.mxu2 %v5625_v35 }
 0x682   : > { %5676 = vmatmul.f32.gmra.mxu2 %v5626_v49 }
 0x68a   : > { %5679 = vmatmul.f32.gmra.mxu2 %v5627_v43 }
 0x692   : > { %5682 = vmatmul.f32.gmra.mxu2 %v5628_v13 }
 0x69a   : > { %5685 = vmatmul.f32.gmra.mxu2 %v5629_v59 }
 0x6a2   : > { %5688 = vmatmul.f32.gmra.mxu2 %v5630_v31 }
 0x6aa   : > { %5691 = vmatmul.f32.gmra.mxu2 %v5631_v8 }
 0x6b2   : > { %5694 = vmatmul.f32.gmra.mxu2 %v5632_v62 }
 0x6bd   : > { %v5650_v7 = vpop.f32.mrf.mxu2 }
 0x6c5   : > { %v5653_v26 = vpop.f32.mrf.mxu2 }
 0x6cd   : > { %v5656_v48 = vpop.f32.mrf.mxu2 }
 0x6d5   : > { %v5659_v34 = vpop.f32.mrf.mxu2 }
 0x6dd   : > { %v5662_v0 = vpop.f32.mrf.mxu2 }
 0x6e5   : > { %v5665_v4 = vpop.f32.mrf.mxu2 }
 0x6ed   : > { %v5668_v41 = vpop.f32.mrf.mxu2 }
 0x6f5   : > { %v5671_v56 = vpop.f32.mrf.mxu2 }
 0x6fd   : > { %v5674_v12 = vpop.f32.mrf.mxu2 }
 0x6fe   : > { %v5698_v46 = vmax.f32 %v5650_v7, %v5674_v12 }
 0x700   : > { %5706 = vst.msk [vmem:[%s244_s16] sm:$0xff] %vm2951_vm2, %v5698_v46 }
 0x705   : > { %v5677_v15 = vpop.f32.mrf.mxu2 }
 0x706   : > { %v5699_v51 = vmax.f32 %v5653_v26, %v5677_v15 }
 0x708   : > { %5707 = vst.msk [vmem:[%s244_s16 + $0x8] sm:$0xff] %vm2951_vm2, %v5699_v51 }
 0x70d   : > { %v5680_v6 = vpop.f32.mrf.mxu2 }
 0x70e   : > { %v5700_v30 = vmax.f32 %v5656_v48, %v5680_v6 }
 0x710   : > { %5708 = vst.msk [vmem:[%s244_s16 + $0x10] sm:$0xff] %vm2951_vm2, %v5700_v30 }
 0x715   : > { %v5683_v55 = vpop.f32.mrf.mxu2 }
 0x716   : > { %v5701_v16 = vmax.f32 %v5659_v34, %v5683_v55 }
 0x718   : > { %5709 = vst.msk [vmem:[%s244_s16 + $0x18] sm:$0xff] %vm2951_vm2, %v5701_v16 }
 0x71d   : > { %v5686_v37 = vpop.f32.mrf.mxu2 }
 0x71e   : > { %v5702_v1 = vmax.f32 %v5662_v0, %v5686_v37 }
 0x720   : > { %5710 = vst.msk [vmem:[%s244_s16 + $0x20] sm:$0xff] %vm2951_vm2, %v5702_v1 }
 0x725   : > { %v5689_v61 = vpop.f32.mrf.mxu2 }
 0x726   : > { %v5703_v60 = vmax.f32 %v5665_v4, %v5689_v61 }
 0x728   : > { %5711 = vst.msk [vmem:[%s244_s16 + $0x28] sm:$0xff] %vm2951_vm2, %v5703_v60 }
 0x72d   : > { %v5692_v24 = vpop.f32.mrf.mxu2 }
 0x72e   : > { %v5704_v9 = vmax.f32 %v5668_v41, %v5692_v24 }
 0x730   : > { %5712 = vst.msk [vmem:[%s244_s16 + $0x30] sm:$0xff] %vm2951_vm2, %v5704_v9 }
 0x735   : > { %v5695_v45 = vpop.f32.mrf.mxu2 }
 0x736   : > { %v5705_v3 = vmax.f32 %v5671_v56, %v5695_v45 }
 0x738   : > { %5713 = vst.msk [vmem:[%s244_s16 + $0x38] sm:$0xff] %vm2951_vm2, %v5705_v3 }
 0x739   : > { %6463 = shalt.err (!%p6460_p3)
}
 0x73a   : > { %s6501_s14 = smov 128   ;;  %s6502_s16 = smov 8  }
 0x73b   : > { %6394 = dma.vmem_to_hbm [thread:$0]  (%p6576_p5), %s5728_s26, 1024, %s5730_s28, %s5715_s29, %s6501_s14, %s6501_s14, %s6502_s16  }
 0x73c PF: > { %p6400_p4 = scmp.ge.s32.totalorder %s6498_s24, 2  ;;  %s5744_s17 = sand.u32 1, %s6486_s21  }
 0x73d   : > { %s5745_s18 = scalar_lea.sflag [#allocation5], %s5744_s17 }
 0x73e   : > { %p6397_p7 = pnand %p6400_p4, %p6580_p6 }
 0x740   : > { %p6398_p8 = pneg %p6397_p7 }
 0x742   : > { %6481 = dma.done.wait (%p6398_p8), %s5745_s18, 1024  }
 0x743   : > { %6483 = vsyncadd (%p6398_p8), %s5745_s18, 4294966272  ;;  %p16_p9 = scmp.ge.s32.totalorder %s6563_s27, 4   ;;  %s9967_s21 = smov %s6490_s22 }
 0x744   : > { %s9968_s22 = smov %s6494_s23  ;;  %s9969_s23 = smov %s6574_s30 }
 0x745   : > { %s9970_s24 = smov %s6563_s27  ;;  %18 = sbr.rel (!%p16_p9) target bundleno = 3 (0x3), region = 83 }
 0x74a   :  { %5751 = vsyncpa [#allocation5], 1 }
 0x74b   :  { %5753 = vsyncpa [#allocation5 + $0x1], 1 }

</bundles_post_ra>
